<compile_context>
chip_gen: v7x
topology: tpu7x:2x2x1
jax: 0.10.0
libtpu: 0.0.40
codegen_flags: <defaults>
</compile_context>

<pallas_src>
import functools

import jax
import jax.numpy as jnp
from jax.experimental import pallas as pl
from jax.experimental.pallas import tpu as pltpu

EPS = 1e-5


def relu_conv_bn_kernel(x_ref, w_ref, g_ref, b_ref, o_ref, *, compute_dtype):
    # x_ref : (N, Cin, HW)  full activation (NCHW with spatial flattened)
    # w_ref : (TN, Cin)     Cout tile of the 1x1 conv weight, native (O, I) layout
    # g_ref : (TN, 1)       batchnorm gamma tile
    # b_ref : (TN, 1)       batchnorm beta tile
    # o_ref : (N, TN, HW)   output tile (NCHW layout)
    n_batch, tn, hw = o_ref.shape
    m = n_batch * hw
    inv_m = 1.0 / m

    w = w_ref[...].astype(compute_dtype)

    # Pass 1: ReLU (inline, per step) + 1x1 conv as a channel contraction on the MXU.
    # Raw conv output is stashed in the VMEM-resident output tile; per-channel sums in f32.
    s1 = jnp.zeros((tn, 1), jnp.float32)
    for n in range(n_batch):  # N is small; static unroll of one MXU matmul per image
        y = jnp.maximum(x_ref[n], 0.0).astype(compute_dtype)          # (Cin, HW)
        z = jnp.dot(w, y, preferred_element_type=jnp.float32)          # (TN, HW) f32
        o_ref[n] = z
        s1 = s1 + jnp.sum(z, axis=1, keepdims=True)

    mean = s1 * inv_m                                                  # (TN, 1)

    # Pass 2: exact centered variance, re-reading the VMEM-resident conv output.
    s2 = jnp.zeros((tn, 1), jnp.float32)
    for n in range(n_batch):
        d = o_ref[n] - mean
        s2 = s2 + jnp.sum(d * d, axis=1, keepdims=True)

    var = s2 * inv_m                                                   # biased (training BN)
    inv_std = jax.lax.rsqrt(var + EPS)
    scale = inv_std * g_ref[...]                                       # (TN, 1)
    shift = b_ref[...] - mean * scale                                  # (TN, 1)

    # Single fused multiply-add epilogue over the whole (N, TN, HW) tile.
    o_ref[...] = o_ref[...] * scale + shift


def relu_conv_bn(x_nchw, w_oi, gamma, beta, *, tn=None, compute_dtype=jnp.float32):
    """ReLU -> 1x1 conv (no bias) -> BatchNorm (batch stats).

    x_nchw: (N, Cin, H, W); w_oi: (Cout, Cin); gamma/beta: (Cout,). Returns NCHW f32.
    tn=None -> single grid step (best on single-TC v5e/v6e); pass tn=Cout//2 on v7x so the
    "parallel" Cout axis is split across its 2 TensorCores.
    compute_dtype=jnp.bfloat16 casts the MXU operands (f32 accumulation & f32 BN stats).
    """
    N, Cin, H, W = x_nchw.shape
    Cout = w_oi.shape[0]
    HW = H * W

    if tn is None:
        tn = Cout
    assert Cout % tn == 0, "Cout must be a multiple of the output-channel tile"

    # Glue is reshape-only (no transposes, no extra HBM passes).
    x3 = x_nchw.reshape(N, Cin, HW)
    g2 = gamma.reshape(Cout, 1).astype(jnp.float32)
    b2 = beta.reshape(Cout, 1).astype(jnp.float32)

    cost = pl.CostEstimate(
        flops=2 * N * HW * Cin * Cout + 8 * N * HW * Cout + N * HW * Cin,
        transcendentals=Cout,
        bytes_accessed=x3.dtype.itemsize * N * Cin * HW
        + w_oi.dtype.itemsize * Cout * Cin
        + 4 * (N * Cout * HW + 2 * Cout),
    )

    kernel = functools.partial(relu_conv_bn_kernel, compute_dtype=compute_dtype)

    out3 = pl.pallas_call(
        kernel,
        out_shape=jax.ShapeDtypeStruct((N, Cout, HW), jnp.float32),
        grid_spec=pltpu.PrefetchScalarGridSpec(
            num_scalar_prefetch=0,
            grid=(Cout // tn,),
            in_specs=[
                pl.BlockSpec((N, Cin, HW), lambda j: (0, 0, 0)),  # full activation
                pl.BlockSpec((tn, Cin), lambda j: (j, 0)),        # Cout tile of weights
                pl.BlockSpec((tn, 1), lambda j: (j, 0)),          # gamma tile
                pl.BlockSpec((tn, 1), lambda j: (j, 0)),          # beta tile
            ],
            out_specs=pl.BlockSpec((N, tn, HW), lambda j: (0, j, 0)),
        ),
        compiler_params=pltpu.CompilerParams(
            # No cross-step state anymore: Cout tiles are fully independent (BN stats are
            # per-channel), so the axis can be sharded across TensorCores on v7x.
            dimension_semantics=("parallel",),
            # Explicit, conservative scoped-VMEM limit (safe on v5e/v6e/v7x). At the
            # production shape (1,1024,14,14 -> 256) total residency is ~2 MiB.
            # TODO(synk): for much larger N*H*W, switch to an M-tiled two-phase
            # (sum/sumsq grid pass, then normalize pass) sized against v7x's 64 MiB VMEM.
            vmem_limit_bytes=32 * 1024 * 1024,
        ),
        cost_estimate=cost,
    )(x3, w_oi, g2, b2)

    return out3.reshape(N, Cout, H, W)


def reference(x_nchw, w_oi, gamma, beta):
    y = jnp.maximum(x_nchw, 0.0)
    # 1x1 conv, NCHW: out[n,o,h,w] = sum_i y[n,i,h,w] * w[o,i]
    z = jnp.einsum("nihw,oi->nohw", y, w_oi)
    mean = jnp.mean(z, axis=(0, 2, 3), keepdims=True)
    var = jnp.mean((z - mean) ** 2, axis=(0, 2, 3), keepdims=True)
    zhat = (z - mean) / jnp.sqrt(var + EPS)
    return zhat * gamma.reshape(1, -1, 1, 1) + beta.reshape(1, -1, 1, 1)


if __name__ == "__main__":
    # Small shapes consistent with the module's structure (original: 1x1024x14x14 -> 256 ch).
    N, Cin, H, W = 2, 256, 14, 14
    Cout = 256

    key = jax.random.PRNGKey(0)
    kx, kw, kg, kb = jax.random.split(key, 4)

    x = jax.random.normal(kx, (N, Cin, H, W), dtype=jnp.float32)
    w = jax.random.normal(kw, (Cout, Cin), dtype=jnp.float32) * (1.0 / Cin) ** 0.5
    gamma = 1.0 + 0.1 * jax.random.normal(kg, (Cout,), dtype=jnp.float32)
    beta = 0.1 * jax.random.normal(kb, (Cout,), dtype=jnp.float32)

    ref = reference(x, w, gamma, beta)

    # 1) Default config: single grid step, f32 MXU operands (v5e/v6e sweet spot).
    out = jax.block_until_ready(relu_conv_bn(x, w, gamma, beta))
    assert out.shape == (N, Cout, H, W)
    assert jnp.allclose(out, ref, atol=1e-3, rtol=1e-3), "mismatch vs reference (f32, 1 tile)"

    # 2) Two Cout tiles on the "parallel" axis (the v7x 2-TensorCore configuration).
    out2 = jax.block_until_ready(relu_conv_bn(x, w, gamma, beta, tn=Cout // 2))
    assert jnp.allclose(out2, ref, atol=1e-3, rtol=1e-3), "mismatch vs reference (f32, 2 tiles)"

    # 3) bf16 MXU operands, f32 accumulation / f32 BN stats (production roofline config).
    out3 = jax.block_until_ready(
        relu_conv_bn(x, w, gamma, beta, compute_dtype=jnp.bfloat16)
    )
    assert jnp.allclose(out3, ref, atol=3e-2, rtol=3e-2), "mismatch vs reference (bf16 matmul)"

    print("KERNEL_OK")
</pallas_src>

<mosaic_0001>
module attributes {stable_mosaic.version = 11 : i64} {
  func.func @relu_conv_bn_kernel(%arg0: i32, %arg1: memref<2x256x196xf32, #tpu.memory_space<vmem>>, %arg2: memref<256x256xf32, #tpu.memory_space<vmem>>, %arg3: memref<256x1xf32, #tpu.memory_space<vmem>>, %arg4: memref<256x1xf32, #tpu.memory_space<vmem>>, %arg5: memref<2x256x196xf32, #tpu.memory_space<vmem>>) attributes {dimension_semantics = [#tpu.dimension_semantics<parallel>], iteration_bounds = array<i64: 1>, scalar_prefetch = 0 : i64, scratch_operands = 0 : i64, tpu.core_type = #tpu.core_type<tc>, window_params = [{pipeline_mode = #tpu.pipeline_mode<synchronous>, transform_indices = @transform_0, window_bounds = array<i64: 2, 256, 196>}, {transform_indices = @transform_1, window_bounds = array<i64: 256, 256>}, {transform_indices = @transform_2, window_bounds = array<i64: 256, 1>}, {transform_indices = @transform_3, window_bounds = array<i64: 256, 1>}, {transform_indices = @transform_4, window_bounds = array<i64: 2, 256, 196>}]} {
    %c0 = arith.constant 0 : index
    %c0_0 = arith.constant 0 : index
    %0 = vector.load %arg2[%c0, %c0_0] : memref<256x256xf32, #tpu.memory_space<vmem>>, vector<256x256xf32>
    %cst = arith.constant 0.000000e+00 : f32
    %1 = vector.broadcast %cst : f32 to vector<256x1xf32>
    %c0_1 = arith.constant 0 : index
    %c0_2 = arith.constant 0 : index
    %c0_3 = arith.constant 0 : index
    %2 = vector.load %arg1[%c0_1, %c0_2, %c0_3] : memref<2x256x196xf32, #tpu.memory_space<vmem>>, vector<1x256x196xf32>
    %3 = vector.shape_cast %2 : vector<1x256x196xf32> to vector<256x196xf32>
    %cst_4 = arith.constant 0.000000e+00 : f32
    %4 = vector.broadcast %cst_4 : f32 to vector<256x196xf32>
    %5 = arith.maximumf %3, %4 : vector<256x196xf32>
    %cst_5 = arith.constant dense<0.000000e+00> : vector<256x196xf32>
    %6 = tpu.matmul %0, %5, %cst_5 {dimension_numbers = #tpu.dot_dimension_numbers<[1], [0], [0], [1], [0, 0, 1, 1], [], []>} : vector<256x256xf32>, vector<256x196xf32>, vector<256x196xf32> -> vector<256x196xf32>
    %c0_6 = arith.constant 0 : index
    %c0_7 = arith.constant 0 : index
    %c0_8 = arith.constant 0 : index
    %7 = vector.load %arg5[%c0_6, %c0_7, %c0_8] : memref<2x256x196xf32, #tpu.memory_space<vmem>>, vector<1x256x196xf32>
    %8 = vector.shape_cast %7 : vector<1x256x196xf32> to vector<256x196xf32>
    %9 = vector.shape_cast %6 : vector<256x196xf32> to vector<1x256x196xf32>
    tpu.vector_store %arg5[%c0_6, %c0_7, %c0_8], %9 {strides = array<i32>} : memref<2x256x196xf32, #tpu.memory_space<vmem>>, vector<1x256x196xf32>,
    %cst_9 = arith.constant dense<0.000000e+00> : vector<256xf32>
    %10 = vector.multi_reduction <add>, %6, %cst_9 [1] : vector<256x196xf32> to vector<256xf32>
    %11 = vector.shape_cast %10 : vector<256xf32> to vector<256x1xf32>
    %12 = arith.addf %1, %11 : vector<256x1xf32>
    %c1 = arith.constant 1 : index
    %c0_10 = arith.constant 0 : index
    %c0_11 = arith.constant 0 : index
    %13 = vector.load %arg1[%c1, %c0_10, %c0_11] : memref<2x256x196xf32, #tpu.memory_space<vmem>>, vector<1x256x196xf32>
    %14 = vector.shape_cast %13 : vector<1x256x196xf32> to vector<256x196xf32>
    %cst_12 = arith.constant 0.000000e+00 : f32
    %15 = vector.broadcast %cst_12 : f32 to vector<256x196xf32>
    %16 = arith.maximumf %14, %15 : vector<256x196xf32>
    %cst_13 = arith.constant dense<0.000000e+00> : vector<256x196xf32>
    %17 = tpu.matmul %0, %16, %cst_13 {dimension_numbers = #tpu.dot_dimension_numbers<[1], [0], [0], [1], [0, 0, 1, 1], [], []>} : vector<256x256xf32>, vector<256x196xf32>, vector<256x196xf32> -> vector<256x196xf32>
    %c1_14 = arith.constant 1 : index
    %c0_15 = arith.constant 0 : index
    %c0_16 = arith.constant 0 : index
    %18 = vector.load %arg5[%c1_14, %c0_15, %c0_16] : memref<2x256x196xf32, #tpu.memory_space<vmem>>, vector<1x256x196xf32>
    %19 = vector.shape_cast %18 : vector<1x256x196xf32> to vector<256x196xf32>
    %20 = vector.shape_cast %17 : vector<256x196xf32> to vector<1x256x196xf32>
    tpu.vector_store %arg5[%c1_14, %c0_15, %c0_16], %20 {strides = array<i32>} : memref<2x256x196xf32, #tpu.memory_space<vmem>>, vector<1x256x196xf32>,
    %cst_17 = arith.constant dense<0.000000e+00> : vector<256xf32>
    %21 = vector.multi_reduction <add>, %17, %cst_17 [1] : vector<256x196xf32> to vector<256xf32>
    %22 = vector.shape_cast %21 : vector<256xf32> to vector<256x1xf32>
    %23 = arith.addf %12, %22 : vector<256x1xf32>
    %cst_18 = arith.constant 0.00255102036 : f32
    %24 = vector.broadcast %cst_18 : f32 to vector<256x1xf32>
    %25 = arith.mulf %23, %24 : vector<256x1xf32>
    %cst_19 = arith.constant 0.000000e+00 : f32
    %26 = vector.broadcast %cst_19 : f32 to vector<256x1xf32>
    %c0_20 = arith.constant 0 : index
    %c0_21 = arith.constant 0 : index
    %c0_22 = arith.constant 0 : index
    %27 = vector.load %arg5[%c0_20, %c0_21, %c0_22] : memref<2x256x196xf32, #tpu.memory_space<vmem>>, vector<1x256x196xf32>
    %28 = vector.shape_cast %27 : vector<1x256x196xf32> to vector<256x196xf32>
    %29 = vector.broadcast %25 : vector<256x1xf32> to vector<256x196xf32>
    %30 = arith.subf %28, %29 : vector<256x196xf32>
    %31 = arith.mulf %30, %30 : vector<256x196xf32>
    %cst_23 = arith.constant dense<0.000000e+00> : vector<256xf32>
    %32 = vector.multi_reduction <add>, %31, %cst_23 [1] : vector<256x196xf32> to vector<256xf32>
    %33 = vector.shape_cast %32 : vector<256xf32> to vector<256x1xf32>
    %34 = arith.addf %26, %33 : vector<256x1xf32>
    %c1_24 = arith.constant 1 : index
    %c0_25 = arith.constant 0 : index
    %c0_26 = arith.constant 0 : index
    %35 = vector.load %arg5[%c1_24, %c0_25, %c0_26] : memref<2x256x196xf32, #tpu.memory_space<vmem>>, vector<1x256x196xf32>
    %36 = vector.shape_cast %35 : vector<1x256x196xf32> to vector<256x196xf32>
    %37 = vector.broadcast %25 : vector<256x1xf32> to vector<256x196xf32>
    %38 = arith.subf %36, %37 : vector<256x196xf32>
    %39 = arith.mulf %38, %38 : vector<256x196xf32>
    %cst_27 = arith.constant dense<0.000000e+00> : vector<256xf32>
    %40 = vector.multi_reduction <add>, %39, %cst_27 [1] : vector<256x196xf32> to vector<256xf32>
    %41 = vector.shape_cast %40 : vector<256xf32> to vector<256x1xf32>
    %42 = arith.addf %34, %41 : vector<256x1xf32>
    %cst_28 = arith.constant 0.00255102036 : f32
    %43 = vector.broadcast %cst_28 : f32 to vector<256x1xf32>
    %44 = arith.mulf %42, %43 : vector<256x1xf32>
    %cst_29 = arith.constant 9.99999974E-6 : f32
    %45 = vector.broadcast %cst_29 : f32 to vector<256x1xf32>
    %46 = arith.addf %44, %45 : vector<256x1xf32>
    %47 = math.rsqrt %46 : vector<256x1xf32>
    %c0_30 = arith.constant 0 : index
    %c0_31 = arith.constant 0 : index
    %48 = vector.load %arg3[%c0_30, %c0_31] : memref<256x1xf32, #tpu.memory_space<vmem>>, vector<256x1xf32>
    %49 = arith.mulf %47, %48 : vector<256x1xf32>
    %c0_32 = arith.constant 0 : index
    %c0_33 = arith.constant 0 : index
    %50 = vector.load %arg4[%c0_32, %c0_33] : memref<256x1xf32, #tpu.memory_space<vmem>>, vector<256x1xf32>
    %51 = arith.mulf %25, %49 : vector<256x1xf32>
    %52 = arith.subf %50, %51 : vector<256x1xf32>
    %c0_34 = arith.constant 0 : index
    %c0_35 = arith.constant 0 : index
    %c0_36 = arith.constant 0 : index
    %53 = vector.load %arg5[%c0_34, %c0_35, %c0_36] : memref<2x256x196xf32, #tpu.memory_space<vmem>>, vector<2x256x196xf32>
    %54 = vector.shape_cast %49 : vector<256x1xf32> to vector<1x256x1xf32>
    %55 = vector.broadcast %54 : vector<1x256x1xf32> to vector<2x256x196xf32>
    %56 = arith.mulf %53, %55 : vector<2x256x196xf32>
    %57 = vector.shape_cast %52 : vector<256x1xf32> to vector<1x256x1xf32>
    %58 = vector.broadcast %57 : vector<1x256x1xf32> to vector<2x256x196xf32>
    %59 = arith.addf %56, %58 : vector<2x256x196xf32>
    %c0_37 = arith.constant 0 : index
    %c0_38 = arith.constant 0 : index
    %c0_39 = arith.constant 0 : index
    %60 = vector.load %arg5[%c0_37, %c0_38, %c0_39] : memref<2x256x196xf32, #tpu.memory_space<vmem>>, vector<2x256x196xf32>
    tpu.vector_store %arg5[%c0_37, %c0_38, %c0_39], %59 {strides = array<i32>} : memref<2x256x196xf32, #tpu.memory_space<vmem>>, vector<2x256x196xf32>,
    return
  }
  func.func @transform_0(%arg0: i32) -> (i32, i32, i32) {
    %c0_i32 = arith.constant 0 : i32
    %c0_i32_0 = arith.constant 0 : i32
    %c0_i32_1 = arith.constant 0 : i32
    %c0_i32_2 = arith.constant 0 : i32
    return %c0_i32, %c0_i32_0, %c0_i32_1 : i32, i32, i32
  }
  func.func @transform_1(%arg0: i32) -> (i32, i32) {
    %c0_i32 = arith.constant 0 : i32
    %c0_i32_0 = arith.constant 0 : i32
    return %arg0, %c0_i32 : i32, i32
  }
  func.func @transform_2(%arg0: i32) -> (i32, i32) {
    %c0_i32 = arith.constant 0 : i32
    %c0_i32_0 = arith.constant 0 : i32
    return %arg0, %c0_i32 : i32, i32
  }
  func.func @transform_3(%arg0: i32) -> (i32, i32) {
    %c0_i32 = arith.constant 0 : i32
    %c0_i32_0 = arith.constant 0 : i32
    return %arg0, %c0_i32 : i32, i32
  }
  func.func @transform_4(%arg0: i32) -> (i32, i32, i32) {
    %c0_i32 = arith.constant 0 : i32
    %c0_i32_0 = arith.constant 0 : i32
    %c0_i32_1 = arith.constant 0 : i32
    return %c0_i32, %arg0, %c0_i32_0 : i32, i32, i32
  }
}

</mosaic_0001>

<bundles_post_ra>
// kernel: tpu_custom_call.1
= control target key start
LH: loop header
LB: loop body
LE: loop exit
PB: predicated region body
PF: predicated region fallthrough
CT: control target
= control target key end

     0   :  { %vm467_vm0 = vcmask 556032   ;;  %s6312_s0 = inlined_call_operand.vmem [shape: f32[2,256,196], index: 0, kind: input, shape index: {}]   ;;  %s6313_s1 = inlined_call_operand.vmem [shape: f32[256,256], index: 1, kind: input, shape index: {}]   ;;  %s6314_s4 = inlined_call_operand.vmem [shape: f32[2,256,196], index: 4, kind: output, shape index: {}]   ;;  %s6315_s2 = inlined_call_operand.vmem [shape: f32[256,1], index: 2, kind: input, shape index: {}]   ;;  %s6316_s3 = inlined_call_operand.vmem [shape: f32[256,1], index: 3, kind: input, shape index: {}]  }
   0x1   :  { %v82_v0 = vld [vmem:[%s6312_s0 + $0x8] sm:$0xff]  ;;  %v84_v1 = vld [vmem:[%s6312_s0 + $0x18] sm:$0xff]  ;;  %v81_v7 = vld [vmem:[%s6312_s0] sm:$0xff] }
   0x2   :  { %v3067_v2 = vld [vmem:[%s6312_s0 + $0x208] sm:$0xff]  ;;  %v146_v3 = vmax.f32 %v82_v0, 0.0  ;;  %v148_v4 = vmax.f32 %v84_v1, 0.0  ;;  %v3069_v5 = vld [vmem:[%s6312_s0 + $0x218] sm:$0xff]  ;;  %v83_v8 = vld [vmem:[%s6312_s0 + $0x10] sm:$0xff]  ;;  %v145_v10 = vmax.f32 %v81_v7, 0.0 }
   0x3   :  { %v757_v6 = vmax.f32 %v3067_v2, 0.0  ;;  %v759_v9 = vmax.f32 %v3069_v5, 0.0  ;;  %v147_v11 = vmax.f32 %v83_v8, 0.0  ;;  %v3066_v12 = vld [vmem:[%s6312_s0 + $0x200] sm:$0xff]  ;;  %v3068_v13 = vld [vmem:[%s6312_s0 + $0x210] sm:$0xff]  ;;  %v86_v14 = vld [vmem:[%s6312_s0 + $0x28] sm:$0xff] }
   0x4   :  { %v3258_v15 = vpack.c.bf16 %v148_v4, %v146_v3  ;;  %v756_v16 = vmax.f32 %v3066_v12, 0.0  ;;  %v758_v17 = vmax.f32 %v3068_v13, 0.0  ;;  %v88_v18 = vld [vmem:[%s6312_s0 + $0x38] sm:$0xff]  ;;  %v150_v19 = vmax.f32 %v86_v14, 0.0  ;;  %v3071_v20 = vld [vmem:[%s6312_s0 + $0x228] sm:$0xff]  ;;  %v85_v26 = vld [vmem:[%s6312_s0 + $0x20] sm:$0xff] }
   0x5   :  { %v3073_v21 = vld [vmem:[%s6312_s0 + $0x238] sm:$0xff]  ;;  %v3322_v22 = vpack.c.bf16 %v759_v9, %v757_v6  ;;  %v3260_v23 = vpack.c.bf16 %v147_v11, %v145_v10  ;;  %v152_v24 = vmax.f32 %v88_v18, 0.0  ;;  %v761_v25 = vmax.f32 %v3071_v20, 0.0  ;;  %v87_v27 = vld [vmem:[%s6312_s0 + $0x30] sm:$0xff]  ;;  %v3070_v28 = vld [vmem:[%s6312_s0 + $0x220] sm:$0xff] }
   0x6   :  { %3259 = vmatprep.subr.bf16.mxu0 %v3258_v15  ;;  %v3324_v29 = vpack.c.bf16 %v758_v17, %v756_v16  ;;  %v763_v30 = vmax.f32 %v3073_v21, 0.0  ;;  %v149_v31 = vmax.f32 %v85_v26, 0.0  ;;  %v151_v32 = vmax.f32 %v87_v27, 0.0  ;;  %v3072_v33 = vld [vmem:[%s6312_s0 + $0x230] sm:$0xff]  ;;  %v90_v34 = vld [vmem:[%s6312_s0 + $0x48] sm:$0xff]  ;;  %v92_v35 = vld [vmem:[%s6312_s0 + $0x58] sm:$0xff] }
   0x7   :  { %3323 = vmatprep.subr.bf16.mxu1 %v3322_v22  ;;  %3261 = vmatpush1.bf16.msra.mxu0 %v3260_v23  ;;  %v3262_v36 = vpack.c.bf16 %v152_v24, %v150_v19  ;;  %v760_v37 = vmax.f32 %v3070_v28, 0.0  ;;  %v762_v38 = vmax.f32 %v3072_v33, 0.0  ;;  %v154_v39 = vmax.f32 %v90_v34, 0.0  ;;  %v3075_v40 = vld [vmem:[%s6312_s0 + $0x248] sm:$0xff]  ;;  %v3077_v41 = vld [vmem:[%s6312_s0 + $0x258] sm:$0xff]  ;;  %v89_v42 = vld [vmem:[%s6312_s0 + $0x40] sm:$0xff] }
   0x8   :  { %3325 = vmatpush1.bf16.msra.mxu1 %v3324_v29  ;;  %v3326_v43 = vpack.c.bf16 %v763_v30, %v761_v25  ;;  %v3264_v44 = vpack.c.bf16 %v151_v32, %v149_v31  ;;  %v156_v45 = vmax.f32 %v92_v35, 0.0  ;;  %v765_v46 = vmax.f32 %v3075_v40, 0.0  ;;  %v91_v47 = vld [vmem:[%s6312_s0 + $0x50] sm:$0xff]  ;;  %v3074_v48 = vld [vmem:[%s6312_s0 + $0x240] sm:$0xff]  ;;  %v94_v54 = vld [vmem:[%s6312_s0 + $0x68] sm:$0xff] }
   0x9   :  { %v3076_v49 = vld [vmem:[%s6312_s0 + $0x250] sm:$0xff]  ;;  %3263 = vmatprep.subr.bf16.mxu0 %v3262_v36  ;;  %v3328_v50 = vpack.c.bf16 %v762_v38, %v760_v37  ;;  %v767_v51 = vmax.f32 %v3077_v41, 0.0  ;;  %v153_v52 = vmax.f32 %v89_v42, 0.0  ;;  %v155_v53 = vmax.f32 %v91_v47, 0.0  ;;  %v96_v55 = vld [vmem:[%s6312_s0 + $0x78] sm:$0xff]  ;;  %v3079_v56 = vld [vmem:[%s6312_s0 + $0x268] sm:$0xff] }
   0xa   :  { %3327 = vmatprep.subr.bf16.mxu1 %v3326_v43  ;;  %v3266_v57 = vpack.c.bf16 %v156_v45, %v154_v39  ;;  %v764_v58 = vmax.f32 %v3074_v48, 0.0  ;;  %v766_v59 = vmax.f32 %v3076_v49, 0.0  ;;  %v158_v60 = vmax.f32 %v94_v54, 0.0  ;;  %v3081_v61 = vld [vmem:[%s6312_s0 + $0x278] sm:$0xff]  ;;  %v93_v62 = vld [vmem:[%s6312_s0 + $0x60] sm:$0xff]  ;;  %v95_v63 = vld [vmem:[%s6312_s0 + $0x70] sm:$0xff] }
   0xb   :  { %3265 = vmatpush1.bf16.msra.mxu0 %v3264_v44  ;;  %v3330_v0 = vpack.c.bf16 %v767_v51, %v765_v46  ;;  %v3268_v1 = vpack.c.bf16 %v155_v53, %v153_v52  ;;  %v160_v2 = vmax.f32 %v96_v55, 0.0  ;;  %v769_v3 = vmax.f32 %v3079_v56, 0.0  ;;  %v3078_v4 = vld [vmem:[%s6312_s0 + $0x260] sm:$0xff]  ;;  %v3080_v5 = vld [vmem:[%s6312_s0 + $0x270] sm:$0xff]  ;;  %v98_v6 = vld [vmem:[%s6312_s0 + $0x88] sm:$0xff] }
   0xc   :  { %3329 = vmatpush1.bf16.msra.mxu1 %v3328_v50  ;;  %3267 = vmatprep.subr.bf16.mxu0 %v3266_v57  ;;  %v3332_v7 = vpack.c.bf16 %v766_v59, %v764_v58  ;;  %v771_v8 = vmax.f32 %v3081_v61, 0.0  ;;  %v157_v9 = vmax.f32 %v93_v62, 0.0  ;;  %v159_v10 = vmax.f32 %v95_v63, 0.0  ;;  %v100_v11 = vld [vmem:[%s6312_s0 + $0x98] sm:$0xff]  ;;  %v3083_v12 = vld [vmem:[%s6312_s0 + $0x288] sm:$0xff]  ;;  %v97_v18 = vld [vmem:[%s6312_s0 + $0x80] sm:$0xff] }
   0xd   :  { %v3085_v13 = vld [vmem:[%s6312_s0 + $0x298] sm:$0xff]  ;;  %3331 = vmatprep.subr.bf16.mxu1 %v3330_v0  ;;  %v3270_v14 = vpack.c.bf16 %v160_v2, %v158_v60  ;;  %v768_v15 = vmax.f32 %v3078_v4, 0.0  ;;  %v770_v16 = vmax.f32 %v3080_v5, 0.0  ;;  %v162_v17 = vmax.f32 %v98_v6, 0.0  ;;  %v99_v19 = vld [vmem:[%s6312_s0 + $0x90] sm:$0xff]  ;;  %v3082_v20 = vld [vmem:[%s6312_s0 + $0x280] sm:$0xff] }
   0xe   :  { %v3334_v21 = vpack.c.bf16 %v771_v8, %v769_v3  ;;  %v3272_v22 = vpack.c.bf16 %v159_v10, %v157_v9  ;;  %v164_v23 = vmax.f32 %v100_v11, 0.0  ;;  %v773_v24 = vmax.f32 %v3083_v12, 0.0  ;;  %v3084_v25 = vld [vmem:[%s6312_s0 + $0x290] sm:$0xff]  ;;  %v102_v26 = vld [vmem:[%s6312_s0 + $0xa8] sm:$0xff]  ;;  %v104_v27 = vld [vmem:[%s6312_s0 + $0xb8] sm:$0xff] }
   0xf   :  { %3269 = vmatpush1.bf16.msra.mxu0 %v3268_v1  ;;  %v3336_v28 = vpack.c.bf16 %v770_v16, %v768_v15  ;;  %v775_v29 = vmax.f32 %v3085_v13, 0.0  ;;  %v161_v30 = vmax.f32 %v97_v18, 0.0  ;;  %v163_v31 = vmax.f32 %v99_v19, 0.0  ;;  %v3087_v32 = vld [vmem:[%s6312_s0 + $0x2a8] sm:$0xff]  ;;  %v3089_v33 = vld [vmem:[%s6312_s0 + $0x2b8] sm:$0xff]  ;;  %v101_v34 = vld [vmem:[%s6312_s0 + $0xa0] sm:$0xff] }
  0x10   :  { %3333 = vmatpush1.bf16.msra.mxu1 %v3332_v7  ;;  %3271 = vmatprep.subr.bf16.mxu0 %v3270_v14  ;;  %v3274_v35 = vpack.c.bf16 %v164_v23, %v162_v17  ;;  %v772_v36 = vmax.f32 %v3082_v20, 0.0  ;;  %v774_v37 = vmax.f32 %v3084_v25, 0.0  ;;  %v166_v38 = vmax.f32 %v102_v26, 0.0  ;;  %v103_v39 = vld [vmem:[%s6312_s0 + $0xb0] sm:$0xff]  ;;  %v3086_v40 = vld [vmem:[%s6312_s0 + $0x2a0] sm:$0xff]  ;;  %v106_v45 = vld [vmem:[%s6312_s0 + $0xc8] sm:$0xff] }
  0x11   :  { %v3088_v41 = vld [vmem:[%s6312_s0 + $0x2b0] sm:$0xff]  ;;  %3335 = vmatprep.subr.bf16.mxu1 %v3334_v21  ;;  %v3338_v42 = vpack.c.bf16 %v775_v29, %v773_v24  ;;  %v168_v43 = vmax.f32 %v104_v27, 0.0  ;;  %v777_v44 = vmax.f32 %v3087_v32, 0.0  ;;  %v108_v46 = vld [vmem:[%s6312_s0 + $0xd8] sm:$0xff]  ;;  %v3276_v47 = vpack.c.bf16 %v163_v31, %v161_v30  ;;  %v3091_v49 = vld [vmem:[%s6312_s0 + $0x2c8] sm:$0xff] }
  0x12   :  { %v779_v48 = vmax.f32 %v3089_v33, 0.0  ;;  %v3093_v50 = vld [vmem:[%s6312_s0 + $0x2d8] sm:$0xff]  ;;  %v165_v51 = vmax.f32 %v101_v34, 0.0  ;;  %v167_v52 = vmax.f32 %v103_v39, 0.0  ;;  %v776_v53 = vmax.f32 %v3086_v40, 0.0  ;;  %v105_v55 = vld [vmem:[%s6312_s0 + $0xc0] sm:$0xff] }
  0x13   :  { %3273 = vmatpush1.bf16.msra.mxu0 %v3272_v22  ;;  %v778_v54 = vmax.f32 %v3088_v41, 0.0  ;;  %v107_v56 = vld [vmem:[%s6312_s0 + $0xd0] sm:$0xff]  ;;  %v3340_v57 = vpack.c.bf16 %v774_v37, %v772_v36  ;;  %v3278_v58 = vpack.c.bf16 %v168_v43, %v166_v38  ;;  %v170_v59 = vmax.f32 %v106_v45, 0.0  ;;  %v3090_v61 = vld [vmem:[%s6312_s0 + $0x2c0] sm:$0xff]  ;;  %v110_v2 = vld [vmem:[%s6312_s0 + $0xe8] sm:$0xff] }
  0x14   :  { %3337 = vmatpush1.bf16.msra.mxu1 %v3336_v28  ;;  %3275 = vmatprep.subr.bf16.mxu0 %v3274_v35  ;;  %v172_v60 = vmax.f32 %v108_v46, 0.0  ;;  %v3342_v62 = vpack.c.bf16 %v779_v48, %v777_v44  ;;  %v781_v63 = vmax.f32 %v3091_v49, 0.0  ;;  %v783_v0 = vmax.f32 %v3093_v50, 0.0  ;;  %v3092_v1 = vld [vmem:[%s6312_s0 + $0x2d0] sm:$0xff]  ;;  %v112_v3 = vld [vmem:[%s6312_s0 + $0xf8] sm:$0xff]  ;;  %v3095_v6 = vld [vmem:[%s6312_s0 + $0x2e8] sm:$0xff] }
  0x15   :  { %3339 = vmatprep.subr.bf16.mxu1 %v3338_v42  ;;  %v169_v4 = vmax.f32 %v105_v55, 0.0  ;;  %v171_v5 = vmax.f32 %v107_v56, 0.0  ;;  %v3097_v7 = vld [vmem:[%s6312_s0 + $0x2f8] sm:$0xff]  ;;  %v3280_v8 = vpack.c.bf16 %v167_v52, %v165_v51  ;;  %v3344_v9 = vpack.c.bf16 %v778_v54, %v776_v53  ;;  %v109_v11 = vld [vmem:[%s6312_s0 + $0xe0] sm:$0xff]  ;;  %v111_v12 = vld [vmem:[%s6312_s0 + $0xf0] sm:$0xff] }
  0x16   :  { %v780_v10 = vmax.f32 %v3090_v61, 0.0  ;;  %v3094_v13 = vld [vmem:[%s6312_s0 + $0x2e0] sm:$0xff]  ;;  %v3282_v14 = vpack.c.bf16 %v172_v60, %v170_v59  ;;  %v782_v15 = vmax.f32 %v3092_v1, 0.0  ;;  %v174_v16 = vmax.f32 %v110_v2, 0.0  ;;  %v3096_v18 = vld [vmem:[%s6312_s0 + $0x2f0] sm:$0xff]  ;;  %v114_v19 = vld [vmem:[%s6312_s0 + $0x108] sm:$0xff] }
  0x17   :  { %3277 = vmatpush1.bf16.msra.mxu0 %v3276_v47  ;;  %v176_v17 = vmax.f32 %v112_v3, 0.0  ;;  %v116_v20 = vld [vmem:[%s6312_s0 + $0x118] sm:$0xff]  ;;  %v3346_v21 = vpack.c.bf16 %v783_v0, %v781_v63  ;;  %v785_v22 = vmax.f32 %v3095_v6, 0.0  ;;  %v787_v23 = vmax.f32 %v3097_v7, 0.0  ;;  %v3099_v27 = vld [vmem:[%s6312_s0 + $0x308] sm:$0xff]  ;;  %v113_v33 = vld [vmem:[%s6312_s0 + $0x100] sm:$0xff] }
  0x18   :  { %3341 = vmatpush1.bf16.msra.mxu1 %v3340_v57  ;;  %3279 = vmatprep.subr.bf16.mxu0 %v3278_v58  ;;  %v3284_v24 = vpack.c.bf16 %v171_v5, %v169_v4  ;;  %v173_v25 = vmax.f32 %v109_v11, 0.0  ;;  %v175_v26 = vmax.f32 %v111_v12, 0.0  ;;  %v3101_v28 = vld [vmem:[%s6312_s0 + $0x318] sm:$0xff]  ;;  %v784_v29 = vmax.f32 %v3094_v13, 0.0  ;;  %v115_v34 = vld [vmem:[%s6312_s0 + $0x110] sm:$0xff]  ;;  %v3098_v37 = vld [vmem:[%s6312_s0 + $0x300] sm:$0xff] }
  0x19   :  { %3343 = vmatprep.subr.bf16.mxu1 %v3342_v62  ;;  %v786_v30 = vmax.f32 %v3096_v18, 0.0  ;;  %v178_v31 = vmax.f32 %v114_v19, 0.0  ;;  %v180_v32 = vmax.f32 %v116_v20, 0.0  ;;  %v3348_v35 = vpack.c.bf16 %v782_v15, %v780_v10  ;;  %v3100_v41 = vld [vmem:[%s6312_s0 + $0x310] sm:$0xff]  ;;  %v118_v42 = vld [vmem:[%s6312_s0 + $0x128] sm:$0xff]  ;;  %v120_v43 = vld [vmem:[%s6312_s0 + $0x138] sm:$0xff] }
  0x1a   :  { %v3286_v36 = vpack.c.bf16 %v176_v17, %v174_v16  ;;  %v3350_v38 = vpack.c.bf16 %v787_v23, %v785_v22  ;;  %v789_v39 = vmax.f32 %v3099_v27, 0.0  ;;  %v791_v40 = vmax.f32 %v3101_v28, 0.0  ;;  %v3103_v46 = vld [vmem:[%s6312_s0 + $0x328] sm:$0xff]  ;;  %v3105_v47 = vld [vmem:[%s6312_s0 + $0x338] sm:$0xff]  ;;  %v117_v48 = vld [vmem:[%s6312_s0 + $0x120] sm:$0xff] }
  0x1b   :  { %3281 = vmatpush1.bf16.msra.mxu0 %v3280_v8  ;;  %v177_v44 = vmax.f32 %v113_v33, 0.0  ;;  %v179_v45 = vmax.f32 %v115_v34, 0.0  ;;  %v3288_v49 = vpack.c.bf16 %v175_v26, %v173_v25  ;;  %v3352_v50 = vpack.c.bf16 %v786_v30, %v784_v29  ;;  %v119_v52 = vld [vmem:[%s6312_s0 + $0x130] sm:$0xff]  ;;  %v3102_v53 = vld [vmem:[%s6312_s0 + $0x320] sm:$0xff]  ;;  %v122_v59 = vld [vmem:[%s6312_s0 + $0x148] sm:$0xff] }
  0x1c   :  { %3345 = vmatpush1.bf16.msra.mxu1 %v3344_v9  ;;  %3283 = vmatprep.subr.bf16.mxu0 %v3282_v14  ;;  %v3290_v51 = vpack.c.bf16 %v180_v32, %v178_v31  ;;  %v3104_v54 = vld [vmem:[%s6312_s0 + $0x330] sm:$0xff]  ;;  %v788_v55 = vmax.f32 %v3098_v37, 0.0  ;;  %v790_v56 = vmax.f32 %v3100_v41, 0.0  ;;  %v182_v57 = vmax.f32 %v118_v42, 0.0  ;;  %v124_v60 = vld [vmem:[%s6312_s0 + $0x158] sm:$0xff]  ;;  %v3107_v3 = vld [vmem:[%s6312_s0 + $0x348] sm:$0xff] }
  0x1d   :  { %3347 = vmatprep.subr.bf16.mxu1 %v3346_v21  ;;  %v184_v58 = vmax.f32 %v120_v43, 0.0  ;;  %v3354_v61 = vpack.c.bf16 %v791_v40, %v789_v39  ;;  %v793_v62 = vmax.f32 %v3103_v46, 0.0  ;;  %v795_v63 = vmax.f32 %v3105_v47, 0.0  ;;  %v3109_v4 = vld [vmem:[%s6312_s0 + $0x358] sm:$0xff]  ;;  %v121_v9 = vld [vmem:[%s6312_s0 + $0x140] sm:$0xff]  ;;  %v123_v10 = vld [vmem:[%s6312_s0 + $0x150] sm:$0xff] }
  0x1e   :  { %v3292_v0 = vpack.c.bf16 %v179_v45, %v177_v44  ;;  %v181_v1 = vmax.f32 %v117_v48, 0.0  ;;  %v183_v2 = vmax.f32 %v119_v52, 0.0  ;;  %v792_v5 = vmax.f32 %v3102_v53, 0.0  ;;  %v3106_v13 = vld [vmem:[%s6312_s0 + $0x340] sm:$0xff]  ;;  %v3108_v17 = vld [vmem:[%s6312_s0 + $0x350] sm:$0xff]  ;;  %v126_v18 = vld [vmem:[%s6312_s0 + $0x168] sm:$0xff] }
  0x1f   :  { %3285 = vmatpush1.bf16.msra.mxu0 %v3284_v24  ;;  %v794_v6 = vmax.f32 %v3104_v54, 0.0  ;;  %v186_v7 = vmax.f32 %v122_v59, 0.0  ;;  %v188_v8 = vmax.f32 %v124_v60, 0.0  ;;  %v3356_v11 = vpack.c.bf16 %v790_v56, %v788_v55  ;;  %v128_v19 = vld [vmem:[%s6312_s0 + $0x178] sm:$0xff]  ;;  %v3111_v22 = vld [vmem:[%s6312_s0 + $0x368] sm:$0xff]  ;;  %v125_v24 = vld [vmem:[%s6312_s0 + $0x160] sm:$0xff] }
  0x20   :  { %3349 = vmatpush1.bf16.msra.mxu1 %v3348_v35  ;;  %3287 = vmatprep.subr.bf16.mxu0 %v3286_v36  ;;  %v3294_v12 = vpack.c.bf16 %v184_v58, %v182_v57  ;;  %v3358_v14 = vpack.c.bf16 %v795_v63, %v793_v62  ;;  %v797_v15 = vmax.f32 %v3107_v3, 0.0  ;;  %v799_v16 = vmax.f32 %v3109_v4, 0.0  ;;  %v3113_v23 = vld [vmem:[%s6312_s0 + $0x378] sm:$0xff]  ;;  %v127_v28 = vld [vmem:[%s6312_s0 + $0x170] sm:$0xff]  ;;  %v3110_v29 = vld [vmem:[%s6312_s0 + $0x360] sm:$0xff] }
  0x21   :  { %3351 = vmatprep.subr.bf16.mxu1 %v3350_v38  ;;  %v185_v20 = vmax.f32 %v121_v9, 0.0  ;;  %v187_v21 = vmax.f32 %v123_v10, 0.0  ;;  %v3296_v25 = vpack.c.bf16 %v183_v2, %v181_v1  ;;  %v3360_v26 = vpack.c.bf16 %v794_v6, %v792_v5  ;;  %v3112_v30 = vld [vmem:[%s6312_s0 + $0x370] sm:$0xff]  ;;  %v130_v35 = vld [vmem:[%s6312_s0 + $0x188] sm:$0xff]  ;;  %v132_v36 = vld [vmem:[%s6312_s0 + $0x198] sm:$0xff] }
  0x22   :  { %v3298_v27 = vpack.c.bf16 %v188_v8, %v186_v7  ;;  %v796_v31 = vmax.f32 %v3106_v13, 0.0  ;;  %v798_v32 = vmax.f32 %v3108_v17, 0.0  ;;  %v190_v33 = vmax.f32 %v126_v18, 0.0  ;;  %v3115_v43 = vld [vmem:[%s6312_s0 + $0x388] sm:$0xff]  ;;  %v3117_v44 = vld [vmem:[%s6312_s0 + $0x398] sm:$0xff]  ;;  %v129_v45 = vld [vmem:[%s6312_s0 + $0x180] sm:$0xff] }
  0x23   :  { %3289 = vmatpush1.bf16.msra.mxu0 %v3288_v49  ;;  %v192_v34 = vmax.f32 %v128_v19, 0.0  ;;  %v3362_v37 = vpack.c.bf16 %v799_v16, %v797_v15  ;;  %v801_v38 = vmax.f32 %v3111_v22, 0.0  ;;  %v803_v39 = vmax.f32 %v3113_v23, 0.0  ;;  %v3114_v54 = vld [vmem:[%s6312_s0 + $0x380] sm:$0xff]  ;;  %v3116_v58 = vld [vmem:[%s6312_s0 + $0x390] sm:$0xff]  ;;  %v134_v59 = vld [vmem:[%s6312_s0 + $0x1a8] sm:$0xff] }
  0x24   :  { %3353 = vmatpush1.bf16.msra.mxu1 %v3352_v50  ;;  %3291 = vmatprep.subr.bf16.mxu0 %v3290_v51  ;;  %v3300_v40 = vpack.c.bf16 %v187_v21, %v185_v20  ;;  %v189_v41 = vmax.f32 %v125_v24, 0.0  ;;  %v191_v42 = vmax.f32 %v127_v28, 0.0  ;;  %v800_v46 = vmax.f32 %v3110_v29, 0.0  ;;  %v131_v50 = vld [vmem:[%s6312_s0 + $0x190] sm:$0xff]  ;;  %v18_v51 = vld [vmem:[%s6313_s1 + $0x8] sm:$0xff]  ;;  %v136_v60 = vld [vmem:[%s6312_s0 + $0x1b8] sm:$0xff] }
  0x25   :  { %3355 = vmatprep.subr.bf16.mxu1 %v3354_v61  ;;  %v802_v47 = vmax.f32 %v3112_v30, 0.0  ;;  %v194_v48 = vmax.f32 %v130_v35, 0.0  ;;  %v196_v49 = vmax.f32 %v132_v36, 0.0  ;;  %v3364_v52 = vpack.c.bf16 %v798_v32, %v796_v31  ;;  %273 = vmatprep.mubr.f32.mxu0 %v18_v51  ;;  %v3119_v63 = vld [vmem:[%s6312_s0 + $0x3a8] sm:$0xff]  ;;  %v133_v1 = vld [vmem:[%s6312_s0 + $0x1a0] sm:$0xff]  ;;  %v135_v5 = vld [vmem:[%s6312_s0 + $0x1b0] sm:$0xff] }
  0x26   :  { %v3302_v53 = vpack.c.bf16 %v192_v34, %v190_v33  ;;  %v3366_v55 = vpack.c.bf16 %v803_v39, %v801_v38  ;;  %v805_v56 = vmax.f32 %v3115_v43, 0.0  ;;  %v807_v57 = vmax.f32 %v3117_v44, 0.0  ;;  %884 = vmatprep.mubr.f32.mxu1 %v18_v51  ;;  %v3118_v6 = vld [vmem:[%s6312_s0 + $0x3a0] sm:$0xff]  ;;  %v3120_v7 = vld [vmem:[%s6312_s0 + $0x3b0] sm:$0xff]  ;;  %v140_v13 = vld [vmem:[%s6312_s0 + $0x1d8] sm:$0xff] }
  0x27   :  { %3293 = vmatpush1.bf16.msra.mxu0 %v3292_v0  ;;  %v193_v61 = vmax.f32 %v129_v45, 0.0  ;;  %v195_v62 = vmax.f32 %v131_v50, 0.0  ;;  %v3121_v0 = vld [vmem:[%s6312_s0 + $0x3b8] sm:$0xff]  ;;  %v3304_v2 = vpack.c.bf16 %v191_v42, %v189_v41  ;;  %v3368_v3 = vpack.c.bf16 %v802_v47, %v800_v46  ;;  %v3123_v20 = vld [vmem:[%s6312_s0 + $0x3c8] sm:$0xff]  ;;  %v137_v28 = vld [vmem:[%s6312_s0 + $0x1c0] sm:$0xff] }
  0x28   :  { %3357 = vmatpush1.bf16.msra.mxu1 %v3356_v11  ;;  %3295 = vmatprep.subr.bf16.mxu0 %v3294_v12  ;;  %v3306_v4 = vpack.c.bf16 %v196_v49, %v194_v48  ;;  %v804_v8 = vmax.f32 %v3114_v54, 0.0  ;;  %v806_v9 = vmax.f32 %v3116_v58, 0.0  ;;  %v198_v10 = vmax.f32 %v134_v59, 0.0  ;;  %v138_v12 = vld [vmem:[%s6312_s0 + $0x1c8] sm:$0xff]  ;;  %v3125_v21 = vld [vmem:[%s6312_s0 + $0x3d8] sm:$0xff]  ;;  %v139_v29 = vld [vmem:[%s6312_s0 + $0x1d0] sm:$0xff] }
  0x29   :  { %3359 = vmatprep.subr.bf16.mxu1 %v3358_v14  ;;  %v200_v11 = vmax.f32 %v136_v60, 0.0  ;;  %v3370_v14 = vpack.c.bf16 %v807_v57, %v805_v56  ;;  %v809_v15 = vmax.f32 %v3119_v63, 0.0  ;;  %v811_v16 = vmax.f32 %v3121_v0, 0.0  ;;  %v3122_v30 = vld [vmem:[%s6312_s0 + $0x3c0] sm:$0xff]  ;;  %v3124_v34 = vld [vmem:[%s6312_s0 + $0x3d0] sm:$0xff]  ;;  %v142_v35 = vld [vmem:[%s6312_s0 + $0x1e8] sm:$0xff] }
  0x2a   :  { %v3308_v17 = vpack.c.bf16 %v195_v62, %v193_v61  ;;  %v197_v18 = vmax.f32 %v133_v1, 0.0  ;;  %v199_v19 = vmax.f32 %v135_v5, 0.0  ;;  %v808_v22 = vmax.f32 %v3118_v6, 0.0  ;;  %v144_v36 = vld [vmem:[%s6312_s0 + $0x1f8] sm:$0xff]  ;;  %v3127_v38 = vld [vmem:[%s6312_s0 + $0x3e8] sm:$0xff]  ;;  %v141_v48 = vld [vmem:[%s6312_s0 + $0x1e0] sm:$0xff] }
  0x2b   :  { %3297 = vmatpush1.bf16.msra.mxu0 %v3296_v25  ;;  %v810_v23 = vmax.f32 %v3120_v7, 0.0  ;;  %v202_v24 = vmax.f32 %v138_v12, 0.0  ;;  %v204_v25 = vmax.f32 %v140_v13, 0.0  ;;  %v3374_v31 = vpack.c.bf16 %v811_v16, %v809_v15  ;;  %v3129_v39 = vld [vmem:[%s6312_s0 + $0x3f8] sm:$0xff]  ;;  %v143_v49 = vld [vmem:[%s6312_s0 + $0x1f0] sm:$0xff]  ;;  %v17_v1 = vld [vmem:[%s6313_s1] sm:$0xff] }
  0x2c   :  { %3361 = vmatpush1.bf16.msra.mxu1 %v3360_v26  ;;  %3299 = vmatprep.subr.bf16.mxu0 %v3298_v27  ;;  %v3372_v26 = vpack.c.bf16 %v806_v9, %v804_v8  ;;  %v3310_v27 = vpack.c.bf16 %v200_v11, %v198_v10  ;;  %v813_v32 = vmax.f32 %v3123_v20, 0.0  ;;  %v815_v33 = vmax.f32 %v3125_v21, 0.0  ;;  %v3128_v54 = vld [vmem:[%s6312_s0 + $0x3f0] sm:$0xff]  ;;  %v21_v5 = vld [vmem:[%s6313_s1 + $0x20] sm:$0xff]  ;;  %v24_v6 = vld [vmem:[%s6313_s1 + $0x38] sm:$0xff] }
  0x2d   :  { %3363 = vmatprep.subr.bf16.mxu1 %v3362_v37  ;;  %v3312_v37 = vpack.c.bf16 %v199_v19, %v197_v18  ;;  %v3314_v41 = vpack.c.bf16 %v204_v25, %v202_v24  ;;  %v201_v42 = vmax.f32 %v137_v28, 0.0  ;;  %v203_v43 = vmax.f32 %v139_v29, 0.0  ;;  %v23_v7 = vld [vmem:[%s6313_s1 + $0x30] sm:$0xff]  ;;  %v26_v8 = vld [vmem:[%s6313_s1 + $0x48] sm:$0xff]  ;;  %v25_v9 = vld [vmem:[%s6313_s1 + $0x40] sm:$0xff] }
  0x2e   :  { %v812_v44 = vmax.f32 %v3122_v30, 0.0  ;;  %v814_v45 = vmax.f32 %v3124_v34, 0.0  ;;  %v206_v46 = vmax.f32 %v142_v35, 0.0  ;;  %v208_v47 = vmax.f32 %v144_v36, 0.0  ;;  %v28_v10 = vld [vmem:[%s6313_s1 + $0x58] sm:$0xff]  ;;  %v27_v11 = vld [vmem:[%s6313_s1 + $0x50] sm:$0xff] }
  0x2f   :  { %3301 = vmatpush1.bf16.msra.mxu0 %v3300_v40  ;;  %v3376_v40 = vpack.c.bf16 %v810_v23, %v808_v22  ;;  %v3378_v50 = vpack.c.bf16 %v815_v33, %v813_v32  ;;  %v817_v51 = vmax.f32 %v3127_v38, 0.0  ;;  %v205_v56 = vmax.f32 %v141_v48, 0.0  ;;  %v30_v12 = vld [vmem:[%s6313_s1 + $0x68] sm:$0xff]  ;;  %v29_v13 = vld [vmem:[%s6313_s1 + $0x60] sm:$0xff]  ;;  %v31_v15 = vld [vmem:[%s6313_s1 + $0x70] sm:$0xff] }
  0x30   :  { %3365 = vmatpush1.bf16.msra.mxu1 %v3364_v52  ;;  %3303 = vmatprep.subr.bf16.mxu0 %v3302_v53  ;;  %v819_v52 = vmax.f32 %v3129_v39, 0.0  ;;  %v3126_v53 = vld [vmem:[%s6312_s0 + $0x3e0] sm:$0xff]  ;;  %v207_v57 = vmax.f32 %v143_v49, 0.0  ;;  %v3380_v58 = vpack.c.bf16 %v814_v45, %v812_v44  ;;  %v3318_v59 = vpack.c.bf16 %v208_v47, %v206_v46  ;;  %v34_v16 = vld [vmem:[%s6313_s1 + $0x88] sm:$0xff]  ;;  %v36_v18 = vld [vmem:[%s6313_s1 + $0x98] sm:$0xff] }
  0x31   :  { %3367 = vmatprep.subr.bf16.mxu1 %v3366_v55  ;;  %v3316_v55 = vpack.c.bf16 %v203_v43, %v201_v42  ;;  %v816_v60 = vmax.f32 %v3126_v53, 0.0  ;;  %v818_v61 = vmax.f32 %v3128_v54, 0.0  ;;  %v35_v19 = vld [vmem:[%s6313_s1 + $0x90] sm:$0xff]  ;;  %v38_v20 = vld [vmem:[%s6313_s1 + $0xa8] sm:$0xff]  ;;  %v37_v21 = vld [vmem:[%s6313_s1 + $0xa0] sm:$0xff] }
  0x32   :  { %v3382_v62 = vpack.c.bf16 %v819_v52, %v817_v51  ;;  %v3320_v63 = vpack.c.bf16 %v207_v57, %v205_v56  ;;  %v40_v22 = vld [vmem:[%s6313_s1 + $0xb8] sm:$0xff]  ;;  %v39_v23 = vld [vmem:[%s6313_s1 + $0xb0] sm:$0xff]  ;;  %v42_v24 = vld [vmem:[%s6313_s1 + $0xc8] sm:$0xff] }
  0x33   :  { %3305 = vmatpush1.bf16.msra.mxu0 %v3304_v2  ;;  %v3384_v0 = vpack.c.bf16 %v818_v61, %v816_v60  ;;  %v20_v2 = vld [vmem:[%s6313_s1 + $0x18] sm:$0xff]  ;;  %v41_v25 = vld [vmem:[%s6313_s1 + $0xc0] sm:$0xff]  ;;  %v46_v28 = vld [vmem:[%s6313_s1 + $0xe8] sm:$0xff] }
  0x34   :  { %3369 = vmatpush1.bf16.msra.mxu1 %v3368_v3  ;;  %3307 = vmatprep.subr.bf16.mxu0 %v3306_v4  ;;  %v19_v3 = vld [vmem:[%s6313_s1 + $0x10] sm:$0xff]  ;;  %v22_v4 = vld [vmem:[%s6313_s1 + $0x28] sm:$0xff]  ;;  %v45_v29 = vld [vmem:[%s6313_s1 + $0xe0] sm:$0xff] }
  0x35   :  { %3371 = vmatprep.subr.bf16.mxu1 %v3370_v14  ;;  %v32_v14 = vld [vmem:[%s6313_s1 + $0x78] sm:$0xff]  ;;  %v50_v32 = vld [vmem:[%s6313_s1 + $0x108] sm:$0xff]  ;;  %v49_v33 = vld [vmem:[%s6313_s1 + $0x100] sm:$0xff] }
  0x36   :  { %v48_v30 = vld [vmem:[%s6313_s1 + $0xf8] sm:$0xff]  ;;  %v51_v35 = vld [vmem:[%s6313_s1 + $0x110] sm:$0xff]  ;;  %v54_v36 = vld [vmem:[%s6313_s1 + $0x128] sm:$0xff] }
  0x37   :  { %3309 = vmatpush1.bf16.msra.mxu0 %v3308_v17  ;;  %v33_v17 = vld [vmem:[%s6313_s1 + $0x80] sm:$0xff]  ;;  %v52_v34 = vld [vmem:[%s6313_s1 + $0x118] sm:$0xff]  ;;  %v55_v39 = vld [vmem:[%s6313_s1 + $0x130] sm:$0xff] }
  0x38   :  { %3373 = vmatpush1.bf16.msra.mxu1 %v3372_v26  ;;  %3311 = vmatprep.subr.bf16.mxu0 %v3310_v27  ;;  %v44_v26 = vld [vmem:[%s6313_s1 + $0xd8] sm:$0xff]  ;;  %v43_v27 = vld [vmem:[%s6313_s1 + $0xd0] sm:$0xff]  ;;  %v62_v44 = vld [vmem:[%s6313_s1 + $0x168] sm:$0xff] }
  0x39   :  { %3375 = vmatprep.subr.bf16.mxu1 %v3374_v31  ;;  %v47_v31 = vld [vmem:[%s6313_s1 + $0xf0] sm:$0xff]  ;;  %v56_v38 = vld [vmem:[%s6313_s1 + $0x138] sm:$0xff]  ;;  %v61_v45 = vld [vmem:[%s6313_s1 + $0x160] sm:$0xff] }
  0x3a   :  { %v60_v42 = vld [vmem:[%s6313_s1 + $0x158] sm:$0xff]  ;;  %v59_v43 = vld [vmem:[%s6313_s1 + $0x150] sm:$0xff]  ;;  %v66_v48 = vld [vmem:[%s6313_s1 + $0x188] sm:$0xff] }
  0x3b   :  { %3313 = vmatpush1.bf16.msra.mxu0 %v3312_v37  ;;  %v53_v37 = vld [vmem:[%s6313_s1 + $0x120] sm:$0xff]  ;;  %v64_v46 = vld [vmem:[%s6313_s1 + $0x178] sm:$0xff]  ;;  %v63_v47 = vld [vmem:[%s6313_s1 + $0x170] sm:$0xff] }
  0x3c   :  { %3377 = vmatpush1.bf16.msra.mxu1 %v3376_v40  ;;  %3315 = vmatprep.subr.bf16.mxu0 %v3314_v41  ;;  %v58_v40 = vld [vmem:[%s6313_s1 + $0x148] sm:$0xff]  ;;  %v57_v41 = vld [vmem:[%s6313_s1 + $0x140] sm:$0xff]  ;;  %v67_v51 = vld [vmem:[%s6313_s1 + $0x190] sm:$0xff] }
  0x3d   :  { %3379 = vmatprep.subr.bf16.mxu1 %v3378_v50  ;;  %v65_v49 = vld [vmem:[%s6313_s1 + $0x180] sm:$0xff]  ;;  %v68_v50 = vld [vmem:[%s6313_s1 + $0x198] sm:$0xff]  ;;  %v70_v52 = vld [vmem:[%s6313_s1 + $0x1a8] sm:$0xff] }
  0x3e   :  { %v69_v53 = vld [vmem:[%s6313_s1 + $0x1a0] sm:$0xff]  ;;  %v72_v54 = vld [vmem:[%s6313_s1 + $0x1b8] sm:$0xff]  ;;  %v74_v56 = vld [vmem:[%s6313_s1 + $0x1c8] sm:$0xff] }
  0x3f   :  { %3317 = vmatpush1.bf16.msra.mxu0 %v3316_v55  ;;  %v71_v55 = vld [vmem:[%s6313_s1 + $0x1b0] sm:$0xff]  ;;  %v73_v57 = vld [vmem:[%s6313_s1 + $0x1c0] sm:$0xff]  ;;  %v78_v60 = vld [vmem:[%s6313_s1 + $0x1e8] sm:$0xff] }
  0x40   :  { %3381 = vmatpush1.bf16.msra.mxu1 %v3380_v58  ;;  %3319 = vmatprep.subr.bf16.mxu0 %v3318_v59  ;;  %v76_v58 = vld [vmem:[%s6313_s1 + $0x1d8] sm:$0xff]  ;;  %v75_v59 = vld [vmem:[%s6313_s1 + $0x1d0] sm:$0xff]  ;;  %v77_v61 = vld [vmem:[%s6313_s1 + $0x1e0] sm:$0xff] }
  0x41   :  { %3383 = vmatprep.subr.bf16.mxu1 %v3382_v62  ;;  %v80_v62 = vld [vmem:[%s6313_s1 + $0x1f8] sm:$0xff] }
  0x43   :  { %3321 = vmatpush1.bf16.msra.mxu0 %v3320_v63  ;;  %v79_v63 = vld [vmem:[%s6313_s1 + $0x1f0] sm:$0xff] }
  0x44   :  { %3385 = vmatpush1.bf16.msra.mxu1 %v3384_v0 }
  0x46   :  { %274 = vmatmul.mubr.f32.vlgmr.msra.gmra.mrb[0].mxu0 %v17_v1 }
  0x47   :  { %885 = vmatmul.mubr.f32.vlgmr.msra.gmra.mrb[0].mxu1 %v17_v1  ;;  %279 = vmatprep.mubr.f32.mxu0 %v20_v2 }
  0x48   :  { %890 = vmatprep.mubr.f32.mxu1 %v20_v2 }
  0x4a   :  { %280 = vmatmul.mubr.f32.gmra.mrb[2].mxu0 %v19_v3 }
  0x4b   :  { %891 = vmatmul.mubr.f32.gmra.mrb[2].mxu1 %v19_v3  ;;  %285 = vmatprep.mubr.f32.mxu0 %v22_v4 }
  0x4c   :  { %896 = vmatprep.mubr.f32.mxu1 %v22_v4 }
  0x4e   :  { %286 = vmatmul.mubr.f32.gmra.mrb[4].mxu0 %v21_v5 }
  0x4f   :  { %291 = vmatprep.mubr.f32.mxu0 %v24_v6  ;;  %897 = vmatmul.mubr.f32.gmra.mrb[4].mxu1 %v21_v5 }
  0x50   :  { %902 = vmatprep.mubr.f32.mxu1 %v24_v6 }
  0x52   :  { %292 = vmatmul.mubr.f32.gmra.mrb[6].mxu0 %v23_v7 }
  0x53   :  { %297 = vmatprep.mubr.f32.mxu0 %v26_v8  ;;  %903 = vmatmul.mubr.f32.gmra.mrb[6].mxu1 %v23_v7 }
  0x54   :  { %908 = vmatprep.mubr.f32.mxu1 %v26_v8 }
  0x56   :  { %298 = vmatmul.mubr.f32.gmra.mrb[8].mxu0 %v25_v9 }
  0x57   :  { %303 = vmatprep.mubr.f32.mxu0 %v28_v10  ;;  %909 = vmatmul.mubr.f32.gmra.mrb[8].mxu1 %v25_v9 }
  0x58   :  { %914 = vmatprep.mubr.f32.mxu1 %v28_v10 }
  0x5a   :  { %304 = vmatmul.mubr.f32.gmra.mrb[10].mxu0 %v27_v11 }
  0x5b   :  { %309 = vmatprep.mubr.f32.mxu0 %v30_v12  ;;  %915 = vmatmul.mubr.f32.gmra.mrb[10].mxu1 %v27_v11 }
  0x5c   :  { %920 = vmatprep.mubr.f32.mxu1 %v30_v12 }
  0x5e   :  { %310 = vmatmul.mubr.f32.gmra.mrb[12].mxu0 %v29_v13 }
  0x5f   :  { %315 = vmatprep.mubr.f32.mxu0 %v32_v14  ;;  %921 = vmatmul.mubr.f32.gmra.mrb[12].mxu1 %v29_v13 }
  0x60   :  { %926 = vmatprep.mubr.f32.mxu1 %v32_v14 }
  0x62   :  { %316 = vmatmul.mubr.f32.gmra.mrb[14].mxu0 %v31_v15 }
  0x63   :  { %321 = vmatprep.mubr.f32.mxu0 %v34_v16  ;;  %927 = vmatmul.mubr.f32.gmra.mrb[14].mxu1 %v31_v15 }
  0x64   :  { %932 = vmatprep.mubr.f32.mxu1 %v34_v16 }
  0x66   :  { %322 = vmatmul.mubr.f32.gmra.mrb[16].mxu0 %v33_v17 }
  0x67   :  { %327 = vmatprep.mubr.f32.mxu0 %v36_v18  ;;  %933 = vmatmul.mubr.f32.gmra.mrb[16].mxu1 %v33_v17 }
  0x68   :  { %938 = vmatprep.mubr.f32.mxu1 %v36_v18 }
  0x6a   :  { %328 = vmatmul.mubr.f32.gmra.mrb[18].mxu0 %v35_v19 }
  0x6b   :  { %333 = vmatprep.mubr.f32.mxu0 %v38_v20  ;;  %939 = vmatmul.mubr.f32.gmra.mrb[18].mxu1 %v35_v19 }
  0x6c   :  { %944 = vmatprep.mubr.f32.mxu1 %v38_v20 }
  0x6e   :  { %334 = vmatmul.mubr.f32.gmra.mrb[20].mxu0 %v37_v21 }
  0x6f   :  { %339 = vmatprep.mubr.f32.mxu0 %v40_v22  ;;  %945 = vmatmul.mubr.f32.gmra.mrb[20].mxu1 %v37_v21 }
  0x70   :  { %950 = vmatprep.mubr.f32.mxu1 %v40_v22 }
  0x72   :  { %340 = vmatmul.mubr.f32.gmra.mrb[22].mxu0 %v39_v23 }
  0x73   :  { %345 = vmatprep.mubr.f32.mxu0 %v42_v24  ;;  %951 = vmatmul.mubr.f32.gmra.mrb[22].mxu1 %v39_v23 }
  0x74   :  { %956 = vmatprep.mubr.f32.mxu1 %v42_v24 }
  0x76   :  { %346 = vmatmul.mubr.f32.gmra.mrb[24].mxu0 %v41_v25 }
  0x77   :  { %351 = vmatprep.mubr.f32.mxu0 %v44_v26  ;;  %957 = vmatmul.mubr.f32.gmra.mrb[24].mxu1 %v41_v25 }
  0x78   :  { %962 = vmatprep.mubr.f32.mxu1 %v44_v26 }
  0x7a   :  { %352 = vmatmul.mubr.f32.gmra.mrb[26].mxu0 %v43_v27 }
  0x7b   :  { %357 = vmatprep.mubr.f32.mxu0 %v46_v28  ;;  %963 = vmatmul.mubr.f32.gmra.mrb[26].mxu1 %v43_v27 }
  0x7c   :  { %968 = vmatprep.mubr.f32.mxu1 %v46_v28 }
  0x7e   :  { %358 = vmatmul.mubr.f32.gmra.mrb[28].mxu0 %v45_v29 }
  0x7f   :  { %363 = vmatprep.mubr.f32.mxu0 %v48_v30  ;;  %969 = vmatmul.mubr.f32.gmra.mrb[28].mxu1 %v45_v29 }
  0x80   :  { %974 = vmatprep.mubr.f32.mxu1 %v48_v30 }
  0x82   :  { %364 = vmatmul.mubr.f32.gmra.mrb[30].mxu0 %v47_v31 }
  0x83   :  { %369 = vmatprep.mubr.f32.mxu0 %v50_v32  ;;  %975 = vmatmul.mubr.f32.gmra.mrb[30].mxu1 %v47_v31 }
  0x84   :  { %980 = vmatprep.mubr.f32.mxu1 %v50_v32 }
  0x86   :  { %370 = vmatmul.mubr.f32.gmra.mrb[32].mxu0 %v49_v33 }
  0x87   :  { %375 = vmatprep.mubr.f32.mxu0 %v52_v34  ;;  %981 = vmatmul.mubr.f32.gmra.mrb[32].mxu1 %v49_v33 }
  0x88   :  { %986 = vmatprep.mubr.f32.mxu1 %v52_v34 }
  0x8a   :  { %376 = vmatmul.mubr.f32.gmra.mrb[34].mxu0 %v51_v35 }
  0x8b   :  { %381 = vmatprep.mubr.f32.mxu0 %v54_v36  ;;  %987 = vmatmul.mubr.f32.gmra.mrb[34].mxu1 %v51_v35 }
  0x8c   :  { %992 = vmatprep.mubr.f32.mxu1 %v54_v36 }
  0x8e   :  { %382 = vmatmul.mubr.f32.gmra.mrb[36].mxu0 %v53_v37 }
  0x8f   :  { %387 = vmatprep.mubr.f32.mxu0 %v56_v38  ;;  %993 = vmatmul.mubr.f32.gmra.mrb[36].mxu1 %v53_v37 }
  0x90   :  { %998 = vmatprep.mubr.f32.mxu1 %v56_v38 }
  0x92   :  { %388 = vmatmul.mubr.f32.gmra.mrb[38].mxu0 %v55_v39 }
  0x93   :  { %393 = vmatprep.mubr.f32.mxu0 %v58_v40  ;;  %999 = vmatmul.mubr.f32.gmra.mrb[38].mxu1 %v55_v39 }
  0x94   :  { %1004 = vmatprep.mubr.f32.mxu1 %v58_v40 }
  0x96   :  { %394 = vmatmul.mubr.f32.gmra.mrb[40].mxu0 %v57_v41 }
  0x97   :  { %399 = vmatprep.mubr.f32.mxu0 %v60_v42  ;;  %1005 = vmatmul.mubr.f32.gmra.mrb[40].mxu1 %v57_v41 }
  0x98   :  { %1010 = vmatprep.mubr.f32.mxu1 %v60_v42 }
  0x9a   :  { %400 = vmatmul.mubr.f32.gmra.mrb[42].mxu0 %v59_v43 }
  0x9b   :  { %405 = vmatprep.mubr.f32.mxu0 %v62_v44  ;;  %1011 = vmatmul.mubr.f32.gmra.mrb[42].mxu1 %v59_v43 }
  0x9c   :  { %1016 = vmatprep.mubr.f32.mxu1 %v62_v44 }
  0x9e   :  { %406 = vmatmul.mubr.f32.gmra.mrb[44].mxu0 %v61_v45 }
  0x9f   :  { %411 = vmatprep.mubr.f32.mxu0 %v64_v46  ;;  %1017 = vmatmul.mubr.f32.gmra.mrb[44].mxu1 %v61_v45 }
  0xa0   :  { %1022 = vmatprep.mubr.f32.mxu1 %v64_v46 }
  0xa2   :  { %412 = vmatmul.mubr.f32.gmra.mrb[46].mxu0 %v63_v47 }
  0xa3   :  { %417 = vmatprep.mubr.f32.mxu0 %v66_v48  ;;  %1023 = vmatmul.mubr.f32.gmra.mrb[46].mxu1 %v63_v47 }
  0xa4   :  { %1028 = vmatprep.mubr.f32.mxu1 %v66_v48 }
  0xa6   :  { %418 = vmatmul.mubr.f32.gmra.mrb[48].mxu0 %v65_v49 }
  0xa7   :  { %423 = vmatprep.mubr.f32.mxu0 %v68_v50  ;;  %1029 = vmatmul.mubr.f32.gmra.mrb[48].mxu1 %v65_v49 }
  0xa8   :  { %1034 = vmatprep.mubr.f32.mxu1 %v68_v50 }
  0xaa   :  { %424 = vmatmul.mubr.f32.gmra.mrb[50].mxu0 %v67_v51 }
  0xab   :  { %429 = vmatprep.mubr.f32.mxu0 %v70_v52  ;;  %1035 = vmatmul.mubr.f32.gmra.mrb[50].mxu1 %v67_v51 }
  0xac   :  { %1040 = vmatprep.mubr.f32.mxu1 %v70_v52 }
  0xae   :  { %430 = vmatmul.mubr.f32.gmra.mrb[52].mxu0 %v69_v53 }
  0xaf   :  { %435 = vmatprep.mubr.f32.mxu0 %v72_v54  ;;  %1041 = vmatmul.mubr.f32.gmra.mrb[52].mxu1 %v69_v53 }
  0xb0   :  { %1046 = vmatprep.mubr.f32.mxu1 %v72_v54 }
  0xb2   :  { %436 = vmatmul.mubr.f32.gmra.mrb[54].mxu0 %v71_v55 }
  0xb3   :  { %441 = vmatprep.mubr.f32.mxu0 %v74_v56  ;;  %1047 = vmatmul.mubr.f32.gmra.mrb[54].mxu1 %v71_v55 }
  0xb4   :  { %1052 = vmatprep.mubr.f32.mxu1 %v74_v56 }
  0xb6   :  { %442 = vmatmul.mubr.f32.gmra.mrb[56].mxu0 %v73_v57 }
  0xb7   :  { %447 = vmatprep.mubr.f32.mxu0 %v76_v58  ;;  %1053 = vmatmul.mubr.f32.gmra.mrb[56].mxu1 %v73_v57 }
  0xb8   :  { %1058 = vmatprep.mubr.f32.mxu1 %v76_v58 }
  0xba   :  { %448 = vmatmul.mubr.f32.gmra.mrb[58].mxu0 %v75_v59 }
  0xbb   :  { %453 = vmatprep.mubr.f32.mxu0 %v78_v60  ;;  %1059 = vmatmul.mubr.f32.gmra.mrb[58].mxu1 %v75_v59 }
  0xbc   :  { %1064 = vmatprep.mubr.f32.mxu1 %v78_v60 }
  0xbe   :  { %454 = vmatmul.mubr.f32.gmra.mrb[60].mxu0 %v77_v61 }
  0xbf   :  { %459 = vmatprep.mubr.f32.mxu0 %v80_v62  ;;  %1065 = vmatmul.mubr.f32.gmra.mrb[60].mxu1 %v77_v61 }
  0xc0   :  { %1070 = vmatprep.mubr.f32.mxu1 %v80_v62 }
  0xc2   :  { %460 = vmatmul.mubr.f32.gmra.mrb[62].mxu0 %v79_v63 }
  0xc3   :  { %1071 = vmatmul.mubr.f32.gmra.mrb[62].mxu1 %v79_v63 }
 0x119   :  { %v4114_v0 = vpop.f32.mrb[0].mxu0 }
 0x11a   :  { %v277_v1 = vpop.f32.mrb[1].mxu0  ;;  %v4116_v2 = vpop.f32.mrb[0].mxu1 }
 0x11b   :  { %468 = vst.msk [vmem:[%s6314_s4 + $0x8] sm:$0xff] %vm467_vm0, %v277_v1  ;;  %3130 = vst [vmem:[%s6314_s4 + $0x200] sm:$0xff] %v4116_v2  ;;  %v888_v3 = vpop.f32.mrb[1].mxu1  ;;  %v531_v4 = vsel %vm467_vm0, %v277_v1, 0.0 }
 0x11c   :  { %3131 = vst.msk [vmem:[%s6314_s4 + $0x208] sm:$0xff] %vm467_vm0, %v888_v3  ;;  %v1142_v5 = vsel %vm467_vm0, %v888_v3, 0.0  ;;  %v532_v6 = vadd.f32 %v531_v4, %v4114_v0 }
 0x11d   :  { %v4133_v7 = vpop.f32.mrb[2].mxu0  ;;  %v1143_v8 = vadd.f32 %v1142_v5, %v4116_v2 }
 0x11e   :  { %v4136_v9 = vpop.f32.mrb[2].mxu1  ;;  %533 = vadd.xlane.f32.xlu0 %v532_v6  ;;  %v283_v10 = vpop.f32.mrb[3].mxu0 }
 0x11f   :  { %3132 = vst [vmem:[%s6314_s4 + $0x210] sm:$0xff] %v4136_v9  ;;  %v894_v11 = vpop.f32.mrb[3].mxu1  ;;  %470 = vst.msk [vmem:[%s6314_s4 + $0x18] sm:$0xff] %vm467_vm0, %v283_v10  ;;  %v535_v12 = vsel %vm467_vm0, %v283_v10, 0.0 }
 0x120   :  { %3133 = vst.msk [vmem:[%s6314_s4 + $0x218] sm:$0xff] %vm467_vm0, %v894_v11  ;;  %v1146_v13 = vsel %vm467_vm0, %v894_v11, 0.0  ;;  %v536_v14 = vadd.f32 %v535_v12, %v4133_v7 }
 0x121   :  { %v4153_v15 = vpop.f32.mrb[4].mxu0  ;;  %v1147_v16 = vadd.f32 %v1146_v13, %v4136_v9 }
 0x122   :  { %1144 = vadd.xlane.f32.xlu0 %v1143_v8  ;;  %v289_v17 = vpop.f32.mrb[5].mxu0  ;;  %v4156_v18 = vpop.f32.mrb[4].mxu1 }
 0x123   :  { %1148 = vadd.xlane.f32.xlu1 %v1147_v16  ;;  %472 = vst.msk [vmem:[%s6314_s4 + $0x28] sm:$0xff] %vm467_vm0, %v289_v17  ;;  %v539_v19 = vsel %vm467_vm0, %v289_v17, 0.0  ;;  %3134 = vst [vmem:[%s6314_s4 + $0x220] sm:$0xff] %v4156_v18  ;;  %v900_v20 = vpop.f32.mrb[5].mxu1 }
 0x124   :  { %3135 = vst.msk [vmem:[%s6314_s4 + $0x228] sm:$0xff] %vm467_vm0, %v900_v20  ;;  %v1150_v21 = vsel %vm467_vm0, %v900_v20, 0.0  ;;  %v540_v22 = vadd.f32 %v539_v19, %v4153_v15 }
 0x125   :  { %v4173_v23 = vpop.f32.mrb[6].mxu0  ;;  %v1151_v24 = vadd.f32 %v1150_v21, %v4156_v18 }
 0x126   :  { %537 = vadd.xlane.f32.xlu0 %v536_v14  ;;  %v295_v25 = vpop.f32.mrb[7].mxu0  ;;  %v4176_v26 = vpop.f32.mrb[6].mxu1 }
 0x127   :  { %541 = vadd.xlane.f32.xlu1 %v540_v22  ;;  %474 = vst.msk [vmem:[%s6314_s4 + $0x38] sm:$0xff] %vm467_vm0, %v295_v25  ;;  %v543_v27 = vsel %vm467_vm0, %v295_v25, 0.0  ;;  %3136 = vst [vmem:[%s6314_s4 + $0x230] sm:$0xff] %v4176_v26  ;;  %v906_v28 = vpop.f32.mrb[7].mxu1 }
 0x128   :  { %3137 = vst.msk [vmem:[%s6314_s4 + $0x238] sm:$0xff] %vm467_vm0, %v906_v28  ;;  %v1154_v29 = vsel %vm467_vm0, %v906_v28, 0.0  ;;  %v544_v30 = vadd.f32 %v543_v27, %v4173_v23 }
 0x129   :  { %v4193_v31 = vpop.f32.mrb[8].mxu0  ;;  %v1155_v32 = vadd.f32 %v1154_v29, %v4176_v26 }
 0x12a   :  { %1152 = vadd.xlane.f32.xlu0 %v1151_v24  ;;  %v301_v33 = vpop.f32.mrb[9].mxu0  ;;  %v4196_v34 = vpop.f32.mrb[8].mxu1 }
 0x12b   :  { %545 = vadd.xlane.f32.xlu1 %v544_v30  ;;  %476 = vst.msk [vmem:[%s6314_s4 + $0x48] sm:$0xff] %vm467_vm0, %v301_v33  ;;  %v547_v35 = vsel %vm467_vm0, %v301_v33, 0.0  ;;  %3138 = vst [vmem:[%s6314_s4 + $0x240] sm:$0xff] %v4196_v34  ;;  %v912_v36 = vpop.f32.mrb[9].mxu1 }
 0x12c   :  { %3139 = vst.msk [vmem:[%s6314_s4 + $0x248] sm:$0xff] %vm467_vm0, %v912_v36  ;;  %v1158_v37 = vsel %vm467_vm0, %v912_v36, 0.0  ;;  %v548_v38 = vadd.f32 %v547_v35, %v4193_v31 }
 0x12d   :  { %v305_v39 = vpop.f32.mrb[10].mxu0  ;;  %v1159_v40 = vadd.f32 %v1158_v37, %v4196_v34 }
 0x12e   :  { %477 = vst [vmem:[%s6314_s4 + $0x50] sm:$0xff] %v305_v39  ;;  %549 = vadd.xlane.f32.xlu0 %v548_v38  ;;  %v307_v41 = vpop.f32.mrb[11].mxu0  ;;  %v916_v42 = vpop.f32.mrb[10].mxu1 }
 0x12f   :  { %1156 = vadd.xlane.f32.xlu1 %v1155_v32  ;;  %478 = vst.msk [vmem:[%s6314_s4 + $0x58] sm:$0xff] %vm467_vm0, %v307_v41  ;;  %v551_v43 = vsel %vm467_vm0, %v307_v41, 0.0  ;;  %3140 = vst [vmem:[%s6314_s4 + $0x250] sm:$0xff] %v916_v42  ;;  %v918_v44 = vpop.f32.mrb[11].mxu1 }
 0x130   :  { %3141 = vst.msk [vmem:[%s6314_s4 + $0x258] sm:$0xff] %vm467_vm0, %v918_v44  ;;  %v1162_v45 = vsel %vm467_vm0, %v918_v44, 0.0  ;;  %v552_v46 = vadd.f32 %v551_v43, %v305_v39 }
 0x131   :  { %v311_v47 = vpop.f32.mrb[12].mxu0  ;;  %v1163_v48 = vadd.f32 %v1162_v45, %v916_v42 }
 0x132   :  { %479 = vst [vmem:[%s6314_s4 + $0x60] sm:$0xff] %v311_v47  ;;  %1160 = vadd.xlane.f32.xlu0 %v1159_v40  ;;  %v313_v49 = vpop.f32.mrb[13].mxu0  ;;  %v922_v50 = vpop.f32.mrb[12].mxu1 }
 0x133   :  { %553 = vadd.xlane.f32.xlu1 %v552_v46  ;;  %480 = vst.msk [vmem:[%s6314_s4 + $0x68] sm:$0xff] %vm467_vm0, %v313_v49  ;;  %v555_v51 = vsel %vm467_vm0, %v313_v49, 0.0  ;;  %3142 = vst [vmem:[%s6314_s4 + $0x260] sm:$0xff] %v922_v50  ;;  %v924_v52 = vpop.f32.mrb[13].mxu1 }
 0x134   :  { %3143 = vst.msk [vmem:[%s6314_s4 + $0x268] sm:$0xff] %vm467_vm0, %v924_v52  ;;  %v1166_v53 = vsel %vm467_vm0, %v924_v52, 0.0  ;;  %v556_v54 = vadd.f32 %v555_v51, %v311_v47 }
 0x135   :  { %v317_v55 = vpop.f32.mrb[14].mxu0  ;;  %v1167_v56 = vadd.f32 %v1166_v53, %v922_v50 }
 0x136   :  { %481 = vst [vmem:[%s6314_s4 + $0x70] sm:$0xff] %v317_v55  ;;  %557 = vadd.xlane.f32.xlu0 %v556_v54  ;;  %v319_v57 = vpop.f32.mrb[15].mxu0  ;;  %v928_v58 = vpop.f32.mrb[14].mxu1 }
 0x137   :  { %1164 = vadd.xlane.f32.xlu1 %v1163_v48  ;;  %482 = vst.msk [vmem:[%s6314_s4 + $0x78] sm:$0xff] %vm467_vm0, %v319_v57  ;;  %v559_v59 = vsel %vm467_vm0, %v319_v57, 0.0  ;;  %3144 = vst [vmem:[%s6314_s4 + $0x270] sm:$0xff] %v928_v58  ;;  %v930_v60 = vpop.f32.mrb[15].mxu1 }
 0x138   :  { %3145 = vst.msk [vmem:[%s6314_s4 + $0x278] sm:$0xff] %vm467_vm0, %v930_v60  ;;  %v1170_v61 = vsel %vm467_vm0, %v930_v60, 0.0  ;;  %v560_v62 = vadd.f32 %v559_v59, %v317_v55 }
 0x139   :  { %v323_v63 = vpop.f32.mrb[16].mxu0  ;;  %v1171_v1 = vadd.f32 %v1170_v61, %v928_v58 }
 0x13a   :  { %483 = vst [vmem:[%s6314_s4 + $0x80] sm:$0xff] %v323_v63  ;;  %1168 = vadd.xlane.f32.xlu0 %v1167_v56  ;;  %v325_v3 = vpop.f32.mrb[17].mxu0  ;;  %v934_v4 = vpop.f32.mrb[16].mxu1 }
 0x13b   :  { %561 = vadd.xlane.f32.xlu1 %v560_v62  ;;  %484 = vst.msk [vmem:[%s6314_s4 + $0x88] sm:$0xff] %vm467_vm0, %v325_v3  ;;  %v563_v5 = vsel %vm467_vm0, %v325_v3, 0.0  ;;  %3146 = vst [vmem:[%s6314_s4 + $0x280] sm:$0xff] %v934_v4  ;;  %v936_v6 = vpop.f32.mrb[17].mxu1 }
 0x13c   :  { %3147 = vst.msk [vmem:[%s6314_s4 + $0x288] sm:$0xff] %vm467_vm0, %v936_v6  ;;  %v1174_v8 = vsel %vm467_vm0, %v936_v6, 0.0  ;;  %v564_v10 = vadd.f32 %v563_v5, %v323_v63 }
 0x13d   :  { %v329_v11 = vpop.f32.mrb[18].mxu0  ;;  %v1175_v12 = vadd.f32 %v1174_v8, %v934_v4 }
 0x13e   :  { %485 = vst [vmem:[%s6314_s4 + $0x90] sm:$0xff] %v329_v11  ;;  %565 = vadd.xlane.f32.xlu0 %v564_v10  ;;  %v331_v13 = vpop.f32.mrb[19].mxu0  ;;  %v940_v14 = vpop.f32.mrb[18].mxu1 }
 0x13f   :  { %1172 = vadd.xlane.f32.xlu1 %v1171_v1  ;;  %486 = vst.msk [vmem:[%s6314_s4 + $0x98] sm:$0xff] %vm467_vm0, %v331_v13  ;;  %v567_v16 = vsel %vm467_vm0, %v331_v13, 0.0  ;;  %3148 = vst [vmem:[%s6314_s4 + $0x290] sm:$0xff] %v940_v14  ;;  %v942_v17 = vpop.f32.mrb[19].mxu1 }
 0x140   :  { %3149 = vst.msk [vmem:[%s6314_s4 + $0x298] sm:$0xff] %vm467_vm0, %v942_v17  ;;  %v1178_v19 = vsel %vm467_vm0, %v942_v17, 0.0  ;;  %v568_v20 = vadd.f32 %v567_v16, %v329_v11 }
 0x141   :  { %v335_v21 = vpop.f32.mrb[20].mxu0  ;;  %v1179_v22 = vadd.f32 %v1178_v19, %v940_v14 }
 0x142   :  { %487 = vst [vmem:[%s6314_s4 + $0xa0] sm:$0xff] %v335_v21  ;;  %1176 = vadd.xlane.f32.xlu0 %v1175_v12  ;;  %v337_v24 = vpop.f32.mrb[21].mxu0  ;;  %v946_v25 = vpop.f32.mrb[20].mxu1 }
 0x143   :  { %569 = vadd.xlane.f32.xlu1 %v568_v20  ;;  %488 = vst.msk [vmem:[%s6314_s4 + $0xa8] sm:$0xff] %vm467_vm0, %v337_v24  ;;  %v571_v27 = vsel %vm467_vm0, %v337_v24, 0.0  ;;  %3150 = vst [vmem:[%s6314_s4 + $0x2a0] sm:$0xff] %v946_v25  ;;  %v948_v28 = vpop.f32.mrb[21].mxu1 }
 0x144   :  { %3151 = vst.msk [vmem:[%s6314_s4 + $0x2a8] sm:$0xff] %vm467_vm0, %v948_v28  ;;  %v1182_v29 = vsel %vm467_vm0, %v948_v28, 0.0  ;;  %v572_v30 = vadd.f32 %v571_v27, %v335_v21 }
 0x145   :  { %v341_v32 = vpop.f32.mrb[22].mxu0  ;;  %v1183_v33 = vadd.f32 %v1182_v29, %v946_v25 }
 0x146   :  { %489 = vst [vmem:[%s6314_s4 + $0xb0] sm:$0xff] %v341_v32  ;;  %573 = vadd.xlane.f32.xlu0 %v572_v30  ;;  %v343_v35 = vpop.f32.mrb[23].mxu0  ;;  %v952_v36 = vpop.f32.mrb[22].mxu1 }
 0x147   :  { %1180 = vadd.xlane.f32.xlu1 %v1179_v22  ;;  %490 = vst.msk [vmem:[%s6314_s4 + $0xb8] sm:$0xff] %vm467_vm0, %v343_v35  ;;  %v575_v37 = vsel %vm467_vm0, %v343_v35, 0.0  ;;  %3152 = vst [vmem:[%s6314_s4 + $0x2b0] sm:$0xff] %v952_v36  ;;  %v954_v38 = vpop.f32.mrb[23].mxu1 }
 0x148   :  { %3153 = vst.msk [vmem:[%s6314_s4 + $0x2b8] sm:$0xff] %vm467_vm0, %v954_v38  ;;  %v1186_v39 = vsel %vm467_vm0, %v954_v38, 0.0  ;;  %v576_v40 = vadd.f32 %v575_v37, %v341_v32 }
 0x149   :  { %v347_v41 = vpop.f32.mrb[24].mxu0  ;;  %v1187_v42 = vadd.f32 %v1186_v39, %v952_v36 }
 0x14a   :  { %491 = vst [vmem:[%s6314_s4 + $0xc0] sm:$0xff] %v347_v41  ;;  %1184 = vadd.xlane.f32.xlu0 %v1183_v33  ;;  %v349_v43 = vpop.f32.mrb[25].mxu0  ;;  %v958_v44 = vpop.f32.mrb[24].mxu1 }
 0x14b   :  { %577 = vadd.xlane.f32.xlu1 %v576_v40  ;;  %492 = vst.msk [vmem:[%s6314_s4 + $0xc8] sm:$0xff] %vm467_vm0, %v349_v43  ;;  %v579_v45 = vsel %vm467_vm0, %v349_v43, 0.0  ;;  %3154 = vst [vmem:[%s6314_s4 + $0x2c0] sm:$0xff] %v958_v44  ;;  %v960_v46 = vpop.f32.mrb[25].mxu1 }
 0x14c   :  { %3155 = vst.msk [vmem:[%s6314_s4 + $0x2c8] sm:$0xff] %vm467_vm0, %v960_v46  ;;  %v1190_v47 = vsel %vm467_vm0, %v960_v46, 0.0  ;;  %v580_v48 = vadd.f32 %v579_v45, %v347_v41 }
 0x14d   :  { %v353_v49 = vpop.f32.mrb[26].mxu0  ;;  %v1191_v50 = vadd.f32 %v1190_v47, %v958_v44 }
 0x14e   :  { %493 = vst [vmem:[%s6314_s4 + $0xd0] sm:$0xff] %v353_v49  ;;  %581 = vadd.xlane.f32.xlu0 %v580_v48  ;;  %v355_v51 = vpop.f32.mrb[27].mxu0  ;;  %v964_v52 = vpop.f32.mrb[26].mxu1 }
 0x14f   :  { %1188 = vadd.xlane.f32.xlu1 %v1187_v42  ;;  %494 = vst.msk [vmem:[%s6314_s4 + $0xd8] sm:$0xff] %vm467_vm0, %v355_v51  ;;  %v583_v53 = vsel %vm467_vm0, %v355_v51, 0.0  ;;  %3156 = vst [vmem:[%s6314_s4 + $0x2d0] sm:$0xff] %v964_v52  ;;  %v966_v54 = vpop.f32.mrb[27].mxu1 }
 0x150   :  { %3157 = vst.msk [vmem:[%s6314_s4 + $0x2d8] sm:$0xff] %vm467_vm0, %v966_v54  ;;  %v1194_v55 = vsel %vm467_vm0, %v966_v54, 0.0  ;;  %v584_v56 = vadd.f32 %v583_v53, %v353_v49 }
 0x151   :  { %v359_v57 = vpop.f32.mrb[28].mxu0  ;;  %v1195_v58 = vadd.f32 %v1194_v55, %v964_v52 }
 0x152   :  { %495 = vst [vmem:[%s6314_s4 + $0xe0] sm:$0xff] %v359_v57  ;;  %1192 = vadd.xlane.f32.xlu0 %v1191_v50  ;;  %v361_v59 = vpop.f32.mrb[29].mxu0  ;;  %v970_v60 = vpop.f32.mrb[28].mxu1 }
 0x153   :  { %585 = vadd.xlane.f32.xlu1 %v584_v56  ;;  %496 = vst.msk [vmem:[%s6314_s4 + $0xe8] sm:$0xff] %vm467_vm0, %v361_v59  ;;  %v587_v61 = vsel %vm467_vm0, %v361_v59, 0.0  ;;  %3158 = vst [vmem:[%s6314_s4 + $0x2e0] sm:$0xff] %v970_v60  ;;  %v972_v62 = vpop.f32.mrb[29].mxu1 }
 0x154   :  { %3159 = vst.msk [vmem:[%s6314_s4 + $0x2e8] sm:$0xff] %vm467_vm0, %v972_v62  ;;  %v1198_v63 = vsel %vm467_vm0, %v972_v62, 0.0  ;;  %v588_v1 = vadd.f32 %v587_v61, %v359_v57 }
 0x155   :  { %v365_v3 = vpop.f32.mrb[30].mxu0  ;;  %v1199_v4 = vadd.f32 %v1198_v63, %v970_v60 }
 0x156   :  { %497 = vst [vmem:[%s6314_s4 + $0xf0] sm:$0xff] %v365_v3  ;;  %589 = vadd.xlane.f32.xlu0 %v588_v1  ;;  %v367_v5 = vpop.f32.mrb[31].mxu0  ;;  %v976_v6 = vpop.f32.mrb[30].mxu1 }
 0x157   :  { %1196 = vadd.xlane.f32.xlu1 %v1195_v58  ;;  %498 = vst.msk [vmem:[%s6314_s4 + $0xf8] sm:$0xff] %vm467_vm0, %v367_v5  ;;  %v591_v8 = vsel %vm467_vm0, %v367_v5, 0.0  ;;  %3160 = vst [vmem:[%s6314_s4 + $0x2f0] sm:$0xff] %v976_v6  ;;  %v978_v10 = vpop.f32.mrb[31].mxu1 }
 0x158   :  { %3161 = vst.msk [vmem:[%s6314_s4 + $0x2f8] sm:$0xff] %vm467_vm0, %v978_v10  ;;  %v1202_v11 = vsel %vm467_vm0, %v978_v10, 0.0  ;;  %v592_v12 = vadd.f32 %v591_v8, %v365_v3 }
 0x159   :  { %v371_v13 = vpop.f32.mrb[32].mxu0  ;;  %v1203_v14 = vadd.f32 %v1202_v11, %v976_v6 }
 0x15a   :  { %499 = vst [vmem:[%s6314_s4 + $0x100] sm:$0xff] %v371_v13  ;;  %1200 = vadd.xlane.f32.xlu0 %v1199_v4  ;;  %v373_v16 = vpop.f32.mrb[33].mxu0  ;;  %v982_v17 = vpop.f32.mrb[32].mxu1 }
 0x15b   :  { %593 = vadd.xlane.f32.xlu1 %v592_v12  ;;  %500 = vst.msk [vmem:[%s6314_s4 + $0x108] sm:$0xff] %vm467_vm0, %v373_v16  ;;  %v595_v19 = vsel %vm467_vm0, %v373_v16, 0.0  ;;  %3162 = vst [vmem:[%s6314_s4 + $0x300] sm:$0xff] %v982_v17  ;;  %v984_v20 = vpop.f32.mrb[33].mxu1 }
 0x15c   :  { %3163 = vst.msk [vmem:[%s6314_s4 + $0x308] sm:$0xff] %vm467_vm0, %v984_v20  ;;  %v1206_v21 = vsel %vm467_vm0, %v984_v20, 0.0  ;;  %v596_v22 = vadd.f32 %v595_v19, %v371_v13 }
 0x15d   :  { %v377_v24 = vpop.f32.mrb[34].mxu0  ;;  %v1207_v25 = vadd.f32 %v1206_v21, %v982_v17 }
 0x15e   :  { %501 = vst [vmem:[%s6314_s4 + $0x110] sm:$0xff] %v377_v24  ;;  %597 = vadd.xlane.f32.xlu0 %v596_v22  ;;  %v379_v27 = vpop.f32.mrb[35].mxu0  ;;  %v988_v28 = vpop.f32.mrb[34].mxu1 }
 0x15f   :  { %1204 = vadd.xlane.f32.xlu1 %v1203_v14  ;;  %502 = vst.msk [vmem:[%s6314_s4 + $0x118] sm:$0xff] %vm467_vm0, %v379_v27  ;;  %v599_v29 = vsel %vm467_vm0, %v379_v27, 0.0  ;;  %3164 = vst [vmem:[%s6314_s4 + $0x310] sm:$0xff] %v988_v28  ;;  %v990_v30 = vpop.f32.mrb[35].mxu1 }
 0x160   :  { %3165 = vst.msk [vmem:[%s6314_s4 + $0x318] sm:$0xff] %vm467_vm0, %v990_v30  ;;  %v1210_v32 = vsel %vm467_vm0, %v990_v30, 0.0  ;;  %v600_v33 = vadd.f32 %v599_v29, %v377_v24 }
 0x161   :  { %v383_v35 = vpop.f32.mrb[36].mxu0  ;;  %v1211_v36 = vadd.f32 %v1210_v32, %v988_v28 }
 0x162   :  { %503 = vst [vmem:[%s6314_s4 + $0x120] sm:$0xff] %v383_v35  ;;  %1208 = vadd.xlane.f32.xlu0 %v1207_v25  ;;  %v385_v37 = vpop.f32.mrb[37].mxu0  ;;  %v994_v38 = vpop.f32.mrb[36].mxu1 }
 0x163   :  { %601 = vadd.xlane.f32.xlu1 %v600_v33  ;;  %504 = vst.msk [vmem:[%s6314_s4 + $0x128] sm:$0xff] %vm467_vm0, %v385_v37  ;;  %v603_v39 = vsel %vm467_vm0, %v385_v37, 0.0  ;;  %3166 = vst [vmem:[%s6314_s4 + $0x320] sm:$0xff] %v994_v38  ;;  %v996_v40 = vpop.f32.mrb[37].mxu1 }
 0x164   :  { %3167 = vst.msk [vmem:[%s6314_s4 + $0x328] sm:$0xff] %vm467_vm0, %v996_v40  ;;  %v1214_v41 = vsel %vm467_vm0, %v996_v40, 0.0  ;;  %v604_v42 = vadd.f32 %v603_v39, %v383_v35 }
 0x165   :  { %v389_v43 = vpop.f32.mrb[38].mxu0  ;;  %v1215_v44 = vadd.f32 %v1214_v41, %v994_v38 }
 0x166   :  { %505 = vst [vmem:[%s6314_s4 + $0x130] sm:$0xff] %v389_v43  ;;  %605 = vadd.xlane.f32.xlu0 %v604_v42  ;;  %v391_v45 = vpop.f32.mrb[39].mxu0  ;;  %v1000_v46 = vpop.f32.mrb[38].mxu1 }
 0x167   :  { %1212 = vadd.xlane.f32.xlu1 %v1211_v36  ;;  %506 = vst.msk [vmem:[%s6314_s4 + $0x138] sm:$0xff] %vm467_vm0, %v391_v45  ;;  %v607_v47 = vsel %vm467_vm0, %v391_v45, 0.0  ;;  %3168 = vst [vmem:[%s6314_s4 + $0x330] sm:$0xff] %v1000_v46  ;;  %v1002_v48 = vpop.f32.mrb[39].mxu1 }
 0x168   :  { %3169 = vst.msk [vmem:[%s6314_s4 + $0x338] sm:$0xff] %vm467_vm0, %v1002_v48  ;;  %v1218_v49 = vsel %vm467_vm0, %v1002_v48, 0.0  ;;  %v608_v50 = vadd.f32 %v607_v47, %v389_v43 }
 0x169   :  { %v395_v51 = vpop.f32.mrb[40].mxu0  ;;  %v1219_v52 = vadd.f32 %v1218_v49, %v1000_v46 }
 0x16a   :  { %507 = vst [vmem:[%s6314_s4 + $0x140] sm:$0xff] %v395_v51  ;;  %1216 = vadd.xlane.f32.xlu0 %v1215_v44  ;;  %v397_v53 = vpop.f32.mrb[41].mxu0  ;;  %v1006_v54 = vpop.f32.mrb[40].mxu1 }
 0x16b   :  { %609 = vadd.xlane.f32.xlu1 %v608_v50  ;;  %508 = vst.msk [vmem:[%s6314_s4 + $0x148] sm:$0xff] %vm467_vm0, %v397_v53  ;;  %v611_v55 = vsel %vm467_vm0, %v397_v53, 0.0  ;;  %3170 = vst [vmem:[%s6314_s4 + $0x340] sm:$0xff] %v1006_v54  ;;  %v1008_v56 = vpop.f32.mrb[41].mxu1 }
 0x16c   :  { %3171 = vst.msk [vmem:[%s6314_s4 + $0x348] sm:$0xff] %vm467_vm0, %v1008_v56  ;;  %v1222_v57 = vsel %vm467_vm0, %v1008_v56, 0.0  ;;  %v612_v58 = vadd.f32 %v611_v55, %v395_v51 }
 0x16d   :  { %v401_v59 = vpop.f32.mrb[42].mxu0  ;;  %v1223_v60 = vadd.f32 %v1222_v57, %v1006_v54 }
 0x16e   :  { %509 = vst [vmem:[%s6314_s4 + $0x150] sm:$0xff] %v401_v59  ;;  %613 = vadd.xlane.f32.xlu0 %v612_v58  ;;  %v403_v61 = vpop.f32.mrb[43].mxu0  ;;  %v1012_v62 = vpop.f32.mrb[42].mxu1 }
 0x16f   :  { %1220 = vadd.xlane.f32.xlu1 %v1219_v52  ;;  %510 = vst.msk [vmem:[%s6314_s4 + $0x158] sm:$0xff] %vm467_vm0, %v403_v61  ;;  %v615_v63 = vsel %vm467_vm0, %v403_v61, 0.0  ;;  %3172 = vst [vmem:[%s6314_s4 + $0x350] sm:$0xff] %v1012_v62  ;;  %v1014_v1 = vpop.f32.mrb[43].mxu1 }
 0x170   :  { %3173 = vst.msk [vmem:[%s6314_s4 + $0x358] sm:$0xff] %vm467_vm0, %v1014_v1  ;;  %v1226_v3 = vsel %vm467_vm0, %v1014_v1, 0.0  ;;  %v616_v4 = vadd.f32 %v615_v63, %v401_v59 }
 0x171   :  { %v407_v5 = vpop.f32.mrb[44].mxu0  ;;  %v1227_v6 = vadd.f32 %v1226_v3, %v1012_v62 }
 0x172   :  { %511 = vst [vmem:[%s6314_s4 + $0x160] sm:$0xff] %v407_v5  ;;  %1224 = vadd.xlane.f32.xlu0 %v1223_v60  ;;  %v409_v8 = vpop.f32.mrb[45].mxu0  ;;  %v1018_v10 = vpop.f32.mrb[44].mxu1 }
 0x173   :  { %617 = vadd.xlane.f32.xlu1 %v616_v4  ;;  %512 = vst.msk [vmem:[%s6314_s4 + $0x168] sm:$0xff] %vm467_vm0, %v409_v8  ;;  %v619_v11 = vsel %vm467_vm0, %v409_v8, 0.0  ;;  %3174 = vst [vmem:[%s6314_s4 + $0x360] sm:$0xff] %v1018_v10  ;;  %v1020_v12 = vpop.f32.mrb[45].mxu1 }
 0x174   :  { %3175 = vst.msk [vmem:[%s6314_s4 + $0x368] sm:$0xff] %vm467_vm0, %v1020_v12  ;;  %v1230_v13 = vsel %vm467_vm0, %v1020_v12, 0.0  ;;  %v620_v14 = vadd.f32 %v619_v11, %v407_v5 }
 0x175   :  { %v413_v16 = vpop.f32.mrb[46].mxu0  ;;  %v1231_v17 = vadd.f32 %v1230_v13, %v1018_v10 }
 0x176   :  { %513 = vst [vmem:[%s6314_s4 + $0x170] sm:$0xff] %v413_v16  ;;  %621 = vadd.xlane.f32.xlu0 %v620_v14  ;;  %v415_v19 = vpop.f32.mrb[47].mxu0  ;;  %v1024_v20 = vpop.f32.mrb[46].mxu1 }
 0x177   :  { %1228 = vadd.xlane.f32.xlu1 %v1227_v6  ;;  %514 = vst.msk [vmem:[%s6314_s4 + $0x178] sm:$0xff] %vm467_vm0, %v415_v19  ;;  %v623_v21 = vsel %vm467_vm0, %v415_v19, 0.0  ;;  %3176 = vst [vmem:[%s6314_s4 + $0x370] sm:$0xff] %v1024_v20  ;;  %v1026_v22 = vpop.f32.mrb[47].mxu1 }
 0x178   :  { %3177 = vst.msk [vmem:[%s6314_s4 + $0x378] sm:$0xff] %vm467_vm0, %v1026_v22  ;;  %v1234_v24 = vsel %vm467_vm0, %v1026_v22, 0.0  ;;  %v624_v25 = vadd.f32 %v623_v21, %v413_v16 }
 0x179   :  { %v419_v27 = vpop.f32.mrb[48].mxu0  ;;  %v1235_v28 = vadd.f32 %v1234_v24, %v1024_v20 }
 0x17a   :  { %515 = vst [vmem:[%s6314_s4 + $0x180] sm:$0xff] %v419_v27  ;;  %1232 = vadd.xlane.f32.xlu0 %v1231_v17  ;;  %v421_v29 = vpop.f32.mrb[49].mxu0  ;;  %v1030_v30 = vpop.f32.mrb[48].mxu1 }
 0x17b   :  { %625 = vadd.xlane.f32.xlu1 %v624_v25  ;;  %516 = vst.msk [vmem:[%s6314_s4 + $0x188] sm:$0xff] %vm467_vm0, %v421_v29  ;;  %v627_v32 = vsel %vm467_vm0, %v421_v29, 0.0  ;;  %3178 = vst [vmem:[%s6314_s4 + $0x380] sm:$0xff] %v1030_v30  ;;  %v1032_v33 = vpop.f32.mrb[49].mxu1 }
 0x17c   :  { %3179 = vst.msk [vmem:[%s6314_s4 + $0x388] sm:$0xff] %vm467_vm0, %v1032_v33  ;;  %v1238_v35 = vsel %vm467_vm0, %v1032_v33, 0.0  ;;  %v628_v36 = vadd.f32 %v627_v32, %v419_v27 }
 0x17d   :  { %v425_v37 = vpop.f32.mrb[50].mxu0  ;;  %v1239_v38 = vadd.f32 %v1238_v35, %v1030_v30 }
 0x17e   :  { %517 = vst [vmem:[%s6314_s4 + $0x190] sm:$0xff] %v425_v37  ;;  %629 = vadd.xlane.f32.xlu0 %v628_v36  ;;  %v427_v39 = vpop.f32.mrb[51].mxu0  ;;  %v1036_v40 = vpop.f32.mrb[50].mxu1 }
 0x17f   :  { %1236 = vadd.xlane.f32.xlu1 %v1235_v28  ;;  %518 = vst.msk [vmem:[%s6314_s4 + $0x198] sm:$0xff] %vm467_vm0, %v427_v39  ;;  %v631_v41 = vsel %vm467_vm0, %v427_v39, 0.0  ;;  %3180 = vst [vmem:[%s6314_s4 + $0x390] sm:$0xff] %v1036_v40  ;;  %v1038_v42 = vpop.f32.mrb[51].mxu1 }
 0x180   :  { %3181 = vst.msk [vmem:[%s6314_s4 + $0x398] sm:$0xff] %vm467_vm0, %v1038_v42  ;;  %v1242_v43 = vsel %vm467_vm0, %v1038_v42, 0.0  ;;  %v632_v44 = vadd.f32 %v631_v41, %v425_v37 }
 0x181   :  { %v431_v45 = vpop.f32.mrb[52].mxu0  ;;  %v1243_v46 = vadd.f32 %v1242_v43, %v1036_v40 }
 0x182   :  { %519 = vst [vmem:[%s6314_s4 + $0x1a0] sm:$0xff] %v431_v45  ;;  %1240 = vadd.xlane.f32.xlu0 %v1239_v38  ;;  %v433_v47 = vpop.f32.mrb[53].mxu0  ;;  %v1042_v48 = vpop.f32.mrb[52].mxu1 }
 0x183   :  { %633 = vadd.xlane.f32.xlu1 %v632_v44  ;;  %520 = vst.msk [vmem:[%s6314_s4 + $0x1a8] sm:$0xff] %vm467_vm0, %v433_v47  ;;  %v635_v49 = vsel %vm467_vm0, %v433_v47, 0.0  ;;  %3182 = vst [vmem:[%s6314_s4 + $0x3a0] sm:$0xff] %v1042_v48  ;;  %v1044_v50 = vpop.f32.mrb[53].mxu1 }
 0x184   :  { %3183 = vst.msk [vmem:[%s6314_s4 + $0x3a8] sm:$0xff] %vm467_vm0, %v1044_v50  ;;  %v1246_v51 = vsel %vm467_vm0, %v1044_v50, 0.0  ;;  %v636_v52 = vadd.f32 %v635_v49, %v431_v45 }
 0x185   :  { %v437_v53 = vpop.f32.mrb[54].mxu0  ;;  %v1247_v54 = vadd.f32 %v1246_v51, %v1042_v48  ;;  %v3195_v51 = vld [vmem:[%s6314_s4 + $0x208] sm:$0xff] }
 0x186   :  { %521 = vst [vmem:[%s6314_s4 + $0x1b0] sm:$0xff] %v437_v53  ;;  %637 = vadd.xlane.f32.xlu0 %v636_v52  ;;  %v439_v55 = vpop.f32.mrb[55].mxu0  ;;  %v1048_v56 = vpop.f32.mrb[54].mxu1 }
 0x187   :  { %1244 = vadd.xlane.f32.xlu1 %v1243_v46  ;;  %522 = vst.msk [vmem:[%s6314_s4 + $0x1b8] sm:$0xff] %vm467_vm0, %v439_v55  ;;  %v639_v57 = vsel %vm467_vm0, %v439_v55, 0.0  ;;  %3184 = vst [vmem:[%s6314_s4 + $0x3b0] sm:$0xff] %v1048_v56  ;;  %v1050_v58 = vpop.f32.mrb[55].mxu1  ;;  %v1335_v46 = vld [vmem:[%s6314_s4 + $0x8] sm:$0xff] }
 0x188   :  { %3185 = vst.msk [vmem:[%s6314_s4 + $0x3b8] sm:$0xff] %vm467_vm0, %v1050_v58  ;;  %v1250_v59 = vsel %vm467_vm0, %v1050_v58, 0.0  ;;  %v640_v60 = vadd.f32 %v639_v57, %v437_v53 }
 0x189   :  { %v443_v61 = vpop.f32.mrb[56].mxu0  ;;  %v1251_v62 = vadd.f32 %v1250_v59, %v1048_v56 }
 0x18a   :  { %523 = vst [vmem:[%s6314_s4 + $0x1c0] sm:$0xff] %v443_v61  ;;  %1248 = vadd.xlane.f32.xlu0 %v1247_v54  ;;  %v445_v63 = vpop.f32.mrb[57].mxu0  ;;  %v1054_v1 = vpop.f32.mrb[56].mxu1 }
 0x18b   :  { %641 = vadd.xlane.f32.xlu1 %v640_v60  ;;  %524 = vst.msk [vmem:[%s6314_s4 + $0x1c8] sm:$0xff] %vm467_vm0, %v445_v63  ;;  %v643_v3 = vsel %vm467_vm0, %v445_v63, 0.0  ;;  %3186 = vst [vmem:[%s6314_s4 + $0x3c0] sm:$0xff] %v1054_v1  ;;  %v1056_v4 = vpop.f32.mrb[57].mxu1  ;;  %v1337_v60 = vld [vmem:[%s6314_s4 + $0x18] sm:$0xff] }
 0x18c   :  { %3187 = vst.msk [vmem:[%s6314_s4 + $0x3c8] sm:$0xff] %vm467_vm0, %v1056_v4  ;;  %v1254_v5 = vsel %vm467_vm0, %v1056_v4, 0.0  ;;  %v644_v6 = vadd.f32 %v643_v3, %v443_v61  ;;  %v3197_v3 = vld [vmem:[%s6314_s4 + $0x218] sm:$0xff] }
 0x18d   :  { %v449_v8 = vpop.f32.mrb[58].mxu0  ;;  %v1255_v10 = vadd.f32 %v1254_v5, %v1054_v1 }
 0x18e   :  { %525 = vst [vmem:[%s6314_s4 + $0x1d0] sm:$0xff] %v449_v8  ;;  %645 = vadd.xlane.f32.xlu0 %v644_v6  ;;  %v451_v11 = vpop.f32.mrb[59].mxu0  ;;  %v1060_v12 = vpop.f32.mrb[58].mxu1 }
 0x18f   :  { %1252 = vadd.xlane.f32.xlu1 %v1251_v62  ;;  %526 = vst.msk [vmem:[%s6314_s4 + $0x1d8] sm:$0xff] %vm467_vm0, %v451_v11  ;;  %v647_v13 = vsel %vm467_vm0, %v451_v11, 0.0  ;;  %3188 = vst [vmem:[%s6314_s4 + $0x3d0] sm:$0xff] %v1060_v12  ;;  %v1062_v14 = vpop.f32.mrb[59].mxu1 }
 0x190   :  { %3189 = vst.msk [vmem:[%s6314_s4 + $0x3d8] sm:$0xff] %vm467_vm0, %v1062_v14  ;;  %v1258_v16 = vsel %vm467_vm0, %v1062_v14, 0.0  ;;  %v648_v17 = vadd.f32 %v647_v13, %v449_v8 }
 0x191   :  { %v455_v19 = vpop.f32.mrb[60].mxu0  ;;  %v1259_v20 = vadd.f32 %v1258_v16, %v1060_v12  ;;  %v1339_v16 = vld [vmem:[%s6314_s4 + $0x28] sm:$0xff] }
 0x192   :  { %527 = vst [vmem:[%s6314_s4 + $0x1e0] sm:$0xff] %v455_v19  ;;  %1256 = vadd.xlane.f32.xlu0 %v1255_v10  ;;  %v457_v21 = vpop.f32.mrb[61].mxu0  ;;  %v1066_v22 = vpop.f32.mrb[60].mxu1 }
 0x193   :  { %649 = vadd.xlane.f32.xlu1 %v648_v17  ;;  %528 = vst.msk [vmem:[%s6314_s4 + $0x1e8] sm:$0xff] %vm467_vm0, %v457_v21  ;;  %v651_v24 = vsel %vm467_vm0, %v457_v21, 0.0  ;;  %3190 = vst [vmem:[%s6314_s4 + $0x3e0] sm:$0xff] %v1066_v22  ;;  %v1068_v25 = vpop.f32.mrb[61].mxu1 }
 0x194   :  { %3191 = vst.msk [vmem:[%s6314_s4 + $0x3e8] sm:$0xff] %vm467_vm0, %v1068_v25  ;;  %v1262_v27 = vsel %vm467_vm0, %v1068_v25, 0.0  ;;  %v652_v28 = vadd.f32 %v651_v24, %v455_v19  ;;  %v3199_v24 = vld [vmem:[%s6314_s4 + $0x228] sm:$0xff] }
 0x195   :  { %v461_v29 = vpop.f32.mrb[62].mxu0  ;;  %v1263_v30 = vadd.f32 %v1262_v27, %v1066_v22 }
 0x196   :  { %529 = vst [vmem:[%s6314_s4 + $0x1f0] sm:$0xff] %v461_v29  ;;  %653 = vadd.xlane.f32.xlu0 %v652_v28  ;;  %v463_v32 = vpop.f32.mrb[63].mxu0  ;;  %v1072_v33 = vpop.f32.mrb[62].mxu1 }
 0x197   :  { %1260 = vadd.xlane.f32.xlu1 %v1259_v20  ;;  %530 = vst.msk [vmem:[%s6314_s4 + $0x1f8] sm:$0xff] %vm467_vm0, %v463_v32  ;;  %v655_v35 = vsel %vm467_vm0, %v463_v32, 0.0  ;;  %3192 = vst [vmem:[%s6314_s4 + $0x3f0] sm:$0xff] %v1072_v33  ;;  %v1074_v36 = vpop.f32.mrb[63].mxu1 }
 0x198   :  { %3193 = vst.msk [vmem:[%s6314_s4 + $0x3f8] sm:$0xff] %vm467_vm0, %v1074_v36  ;;  %v1266_v37 = vsel %vm467_vm0, %v1074_v36, 0.0  ;;  %v656_v38 = vadd.f32 %v655_v35, %v461_v29 }
 0x199   :  { %v1267_v39 = vadd.f32 %v1266_v37, %v1072_v33 }
 0x19a   :  { %1264 = vadd.xlane.f32.xlu0 %v1263_v30 }
 0x19b   :  { %657 = vadd.xlane.f32.xlu1 %v656_v38 }
 0x19f   :  { %1268 = vadd.xlane.f32.xlu1 %v1267_v39 }
 0x1ab   :  { %v534_v40 = vpop.xlane.xlu0 %533 }
 0x1af   :  { %v1145_v41 = vpop.xlane.xlu0 %1144 }
 0x1b0   :  { %v1149_v42 = vpop.xlane.xlu1 %1148  ;;  %v1270_v43 = vadd.f32 %v1145_v41, %v534_v40 }
 0x1b2   :  { %v4646_v44 = vmul.f32 0.0025510204, %v1270_v43 }
 0x1b3   :  { %v538_v45 = vpop.xlane.xlu0 %537 }
 0x1b4   :  { %v1271_v47 = vadd.f32 %v1149_v42, %v538_v45  ;;  %v542_v48 = vpop.xlane.xlu1 %541  ;;  %v1398_v49 = vsub.f32 %v4114_v0, %v4646_v44  ;;  %v1399_v50 = vsub.f32 %v1335_v46, %v4646_v44  ;;  %v1750_v52 = vsub.f32 %v4116_v2, %v4646_v44  ;;  %v1341_v42 = vld [vmem:[%s6314_s4 + $0x38] sm:$0xff] }
 0x1b5   :  { %v1751_v53 = vsub.f32 %v3195_v51, %v4646_v44 }
 0x1b6   :  { %v4660_v54 = vmul.f32 0.0025510204, %v1271_v47  ;;  %v1462_v55 = vmul.f32 %v1398_v49, %v1398_v49  ;;  %v1463_v56 = vmul.f32 %v1399_v50, %v1399_v50  ;;  %v1814_v58 = vmul.f32 %v1750_v52, %v1750_v52 }
 0x1b7   :  { %v1153_v57 = vpop.xlane.xlu0 %1152  ;;  %v1815_v59 = vmul.f32 %v1751_v53, %v1751_v53 }
 0x1b8   :  { %v1272_v61 = vadd.f32 %v1153_v57, %v542_v48  ;;  %v546_v62 = vpop.xlane.xlu1 %545  ;;  %v1526_v63 = vsel %vm467_vm0, %v1463_v56, 0.0  ;;  %v1400_v2 = vsub.f32 %v4133_v7, %v4660_v54  ;;  %v1401_v1 = vsub.f32 %v1337_v60, %v4660_v54  ;;  %v3201_v48 = vld [vmem:[%s6314_s4 + $0x238] sm:$0xff]  ;;  %v1343_v56 = vld [vmem:[%s6314_s4 + $0x48] sm:$0xff] }
 0x1b9   :  { %v1527_v4 = vadd.f32 %v1526_v63, %v1462_v55  ;;  %v1878_v5 = vsel %vm467_vm0, %v1815_v59, 0.0  ;;  %v1752_v6 = vsub.f32 %v4136_v9, %v4660_v54  ;;  %v1753_v8 = vsub.f32 %v3197_v3, %v4660_v54 }
 0x1ba   :  { %v4676_v10 = vmul.f32 0.0025510204, %v1272_v61  ;;  %v1464_v11 = vmul.f32 %v1400_v2, %v1400_v2  ;;  %v1465_v12 = vmul.f32 %v1401_v1, %v1401_v1  ;;  %v1879_v14 = vadd.f32 %v1878_v5, %v1814_v58 }
 0x1bb   :  { %v550_v13 = vpop.xlane.xlu0 %549  ;;  %1528 = vadd.xlane.f32.xlu0 %v1527_v4  ;;  %v1816_v17 = vmul.f32 %v1752_v6, %v1752_v6  ;;  %v1817_v19 = vmul.f32 %v1753_v8, %v1753_v8 }
 0x1bc   :  { %v1157_v20 = vpop.xlane.xlu1 %1156  ;;  %v1530_v21 = vsel %vm467_vm0, %v1465_v12, 0.0  ;;  %v1402_v9 = vsub.f32 %v4153_v15, %v4676_v10  ;;  %v1403_v22 = vsub.f32 %v1339_v16, %v4676_v10  ;;  %v1754_v25 = vsub.f32 %v4156_v18, %v4676_v10 }
 0x1bd   :  { %v1273_v27 = vadd.f32 %v1157_v20, %v546_v62  ;;  %v1531_v28 = vadd.f32 %v1530_v21, %v1464_v11  ;;  %v1882_v29 = vsel %vm467_vm0, %v1817_v19, 0.0  ;;  %v1755_v30 = vsub.f32 %v3199_v24, %v4676_v10  ;;  %v1345_v20 = vld [vmem:[%s6314_s4 + $0x58] sm:$0xff] }
 0x1be   :  { %v1466_v32 = vmul.f32 %v1402_v9, %v1402_v9  ;;  %v1467_v33 = vmul.f32 %v1403_v22, %v1403_v22  ;;  %v1883_v41 = vadd.f32 %v1882_v29, %v1816_v17  ;;  %v1818_v18 = vmul.f32 %v1754_v25, %v1754_v25  ;;  %v3204_v25 = vld [vmem:[%s6314_s4 + $0x250] sm:$0xff] }
 0x1bf   :  { %v4692_v35 = vmul.f32 0.0025510204, %v1273_v27  ;;  %v1161_v36 = vpop.xlane.xlu0 %1160  ;;  %1880 = vadd.xlane.f32.xlu0 %v1879_v14  ;;  %1532 = vadd.xlane.f32.xlu1 %v1531_v28  ;;  %v1819_v37 = vmul.f32 %v1755_v30, %v1755_v30  ;;  %v3205_v27 = vld [vmem:[%s6314_s4 + $0x258] sm:$0xff] }
 0x1c0   :  { %v1274_v38 = vadd.f32 %v1161_v36, %v550_v13  ;;  %v554_v39 = vpop.xlane.xlu1 %553  ;;  %v1534_v40 = vsel %vm467_vm0, %v1467_v33, 0.0 }
 0x1c1   :  { %v1535_v43 = vadd.f32 %v1534_v40, %v1466_v32  ;;  %v1886_v45 = vsel %vm467_vm0, %v1819_v37, 0.0  ;;  %v1404_v46 = vsub.f32 %v4173_v23, %v4692_v35  ;;  %v1405_v47 = vsub.f32 %v1341_v42, %v4692_v35 }
 0x1c2   :  { %v4705_v49 = vmul.f32 0.0025510204, %v1274_v38  ;;  %v1756_v50 = vsub.f32 %v4176_v26, %v4692_v35  ;;  %v1757_v51 = vsub.f32 %v3201_v48, %v4692_v35  ;;  %v1887_v58 = vadd.f32 %v1886_v45, %v1818_v18  ;;  %v3203_v26 = vld [vmem:[%s6314_s4 + $0x248] sm:$0xff]  ;;  %v1346_v38 = vld [vmem:[%s6314_s4 + $0x60] sm:$0xff] }
 0x1c3   :  { %v558_v52 = vpop.xlane.xlu0 %557  ;;  %1536 = vadd.xlane.f32.xlu0 %v1535_v43  ;;  %1884 = vadd.xlane.f32.xlu1 %v1883_v41  ;;  %v1468_v53 = vmul.f32 %v1404_v46, %v1404_v46  ;;  %v1469_v55 = vmul.f32 %v1405_v47, %v1405_v47  ;;  %v3206_v45 = vld [vmem:[%s6314_s4 + $0x260] sm:$0xff]  ;;  %v3207_v46 = vld [vmem:[%s6314_s4 + $0x268] sm:$0xff] }
 0x1c4   :  { %v1165_v57 = vpop.xlane.xlu1 %1164  ;;  %v1406_v59 = vsub.f32 %v4193_v31, %v4705_v49  ;;  %v1407_v60 = vsub.f32 %v1343_v56, %v4705_v49  ;;  %v1821_v61 = vmul.f32 %v1757_v51, %v1757_v51  ;;  %v1758_v2 = vsub.f32 %v4196_v34, %v4705_v49  ;;  %v1344_v34 = vld [vmem:[%s6314_s4 + $0x50] sm:$0xff] }
 0x1c5   :  { %v1275_v62 = vadd.f32 %v1165_v57, %v554_v39  ;;  %v1538_v63 = vsel %vm467_vm0, %v1469_v55, 0.0  ;;  %v1759_v1 = vsub.f32 %v3203_v26, %v4705_v49  ;;  %v1820_v6 = vmul.f32 %v1756_v50, %v1756_v50  ;;  %v1347_v39 = vld [vmem:[%s6314_s4 + $0x68] sm:$0xff] }
 0x1c6   :  { %v1539_v3 = vadd.f32 %v1538_v63, %v1468_v53  ;;  %v1470_v4 = vmul.f32 %v1406_v59, %v1406_v59  ;;  %v1471_v5 = vmul.f32 %v1407_v60, %v1407_v60  ;;  %v1890_v12 = vsel %vm467_vm0, %v1821_v61, 0.0 }
 0x1c7   :  { %v4723_v8 = vmul.f32 0.0025510204, %v1275_v62  ;;  %v1169_v11 = vpop.xlane.xlu0 %1168  ;;  %1888 = vadd.xlane.f32.xlu0 %v1887_v58  ;;  %v1823_v13 = vmul.f32 %v1759_v1, %v1759_v1  ;;  %v1822_v19 = vmul.f32 %v1758_v2, %v1758_v2  ;;  %v1891_v29 = vadd.f32 %v1890_v12, %v1820_v6  ;;  %v1348_v2 = vld [vmem:[%s6314_s4 + $0x70] sm:$0xff]  ;;  %v1349_v1 = vld [vmem:[%s6314_s4 + $0x78] sm:$0xff] }
 0x1c8   :  { %v1276_v14 = vadd.f32 %v1169_v11, %v558_v52  ;;  %v562_v16 = vpop.xlane.xlu1 %561  ;;  %1540 = vadd.xlane.f32.xlu1 %v1539_v3  ;;  %v1542_v17 = vsel %vm467_vm0, %v1471_v5, 0.0  ;;  %v3208_v11 = vld [vmem:[%s6314_s4 + $0x270] sm:$0xff]  ;;  %v3209_v12 = vld [vmem:[%s6314_s4 + $0x278] sm:$0xff] }
 0x1c9   :  { %v1543_v21 = vadd.f32 %v1542_v17, %v1470_v4  ;;  %v1894_v9 = vsel %vm467_vm0, %v1823_v13, 0.0  ;;  %v1408_v22 = vsub.f32 %v1344_v34, %v4723_v8  ;;  %v1409_v24 = vsub.f32 %v1345_v20, %v4723_v8 }
 0x1ca   :  { %v4742_v28 = vmul.f32 0.0025510204, %v1276_v14  ;;  %v1760_v30 = vsub.f32 %v3204_v25, %v4723_v8  ;;  %v1761_v32 = vsub.f32 %v3205_v27, %v4723_v8  ;;  %v1895_v41 = vadd.f32 %v1894_v9, %v1822_v19  ;;  %v1351_v9 = vld [vmem:[%s6314_s4 + $0x88] sm:$0xff] }
 0x1cb   :  { %v566_v33 = vpop.xlane.xlu0 %565  ;;  %1544 = vadd.xlane.f32.xlu0 %v1543_v21  ;;  %v1472_v36 = vmul.f32 %v1408_v22, %v1408_v22  ;;  %v1473_v37 = vmul.f32 %v1409_v24, %v1409_v24  ;;  %v1350_v21 = vld [vmem:[%s6314_s4 + $0x80] sm:$0xff] }
 0x1cc   :  { %v1173_v40 = vpop.xlane.xlu1 %1172  ;;  %1892 = vadd.xlane.f32.xlu1 %v1891_v29  ;;  %v1410_v18 = vsub.f32 %v1346_v38, %v4742_v28  ;;  %v1411_v42 = vsub.f32 %v1347_v39, %v4742_v28  ;;  %v1825_v43 = vmul.f32 %v1761_v32, %v1761_v32  ;;  %v1762_v50 = vsub.f32 %v3206_v45, %v4742_v28  ;;  %v3211_v32 = vld [vmem:[%s6314_s4 + $0x288] sm:$0xff] }
 0x1cd   :  { %v1277_v47 = vadd.f32 %v1173_v40, %v562_v16  ;;  %v1546_v48 = vsel %vm467_vm0, %v1473_v37, 0.0  ;;  %v1763_v51 = vsub.f32 %v3207_v46, %v4742_v28  ;;  %v1824_v56 = vmul.f32 %v1760_v30, %v1760_v30  ;;  %v3210_v30 = vld [vmem:[%s6314_s4 + $0x280] sm:$0xff] }
 0x1ce   :  { %v1547_v52 = vadd.f32 %v1546_v48, %v1472_v36  ;;  %v1474_v53 = vmul.f32 %v1410_v18, %v1410_v18  ;;  %v1475_v55 = vmul.f32 %v1411_v42, %v1411_v42  ;;  %v1898_v59 = vsel %vm467_vm0, %v1825_v43, 0.0 }
 0x1cf   :  { %v4763_v57 = vmul.f32 0.0025510204, %v1277_v47  ;;  %v1177_v58 = vpop.xlane.xlu0 %1176  ;;  %1896 = vadd.xlane.f32.xlu0 %v1895_v41  ;;  %v1827_v60 = vmul.f32 %v1763_v51, %v1763_v51  ;;  %v1826_v63 = vmul.f32 %v1762_v50, %v1762_v50  ;;  %v1899_v14 = vadd.f32 %v1898_v59, %v1824_v56 }
 0x1d0   :  { %v1278_v61 = vadd.f32 %v1177_v58, %v566_v33  ;;  %v570_v26 = vpop.xlane.xlu1 %569  ;;  %1548 = vadd.xlane.f32.xlu1 %v1547_v52  ;;  %v1550_v62 = vsel %vm467_vm0, %v1475_v55, 0.0  ;;  %v1352_v52 = vld [vmem:[%s6314_s4 + $0x90] sm:$0xff] }
 0x1d1   :  { %v1551_v3 = vadd.f32 %v1550_v62, %v1474_v53  ;;  %v1902_v4 = vsel %vm467_vm0, %v1827_v60, 0.0  ;;  %v1412_v5 = vsub.f32 %v1348_v2, %v4763_v57  ;;  %v1413_v6 = vsub.f32 %v1349_v1, %v4763_v57  ;;  %v1353_v53 = vld [vmem:[%s6314_s4 + $0x98] sm:$0xff]  ;;  %v3212_v60 = vld [vmem:[%s6314_s4 + $0x290] sm:$0xff] }
 0x1d2   :  { %v4782_v13 = vmul.f32 0.0025510204, %v1278_v61  ;;  %v1764_v16 = vsub.f32 %v3208_v11, %v4763_v57  ;;  %v1765_v17 = vsub.f32 %v3209_v12, %v4763_v57  ;;  %v1903_v24 = vadd.f32 %v1902_v4, %v1826_v63  ;;  %v3213_v61 = vld [vmem:[%s6314_s4 + $0x298] sm:$0xff] }
 0x1d3   :  { %v574_v19 = vpop.xlane.xlu0 %573  ;;  %1552 = vadd.xlane.f32.xlu0 %v1551_v3  ;;  %v1476_v34 = vmul.f32 %v1412_v5, %v1412_v5  ;;  %v1477_v20 = vmul.f32 %v1413_v6, %v1413_v6  ;;  %v1354_v5 = vld [vmem:[%s6314_s4 + $0xa0] sm:$0xff]  ;;  %v1355_v6 = vld [vmem:[%s6314_s4 + $0xa8] sm:$0xff] }
 0x1d4   :  { %v1181_v22 = vpop.xlane.xlu1 %1180  ;;  %1900 = vadd.xlane.f32.xlu1 %v1899_v14  ;;  %v1414_v25 = vsub.f32 %v1350_v21, %v4782_v13  ;;  %v1415_v27 = vsub.f32 %v1351_v9, %v4782_v13  ;;  %v1829_v29 = vmul.f32 %v1765_v17, %v1765_v17  ;;  %v1766_v37 = vsub.f32 %v3210_v30, %v4782_v13 }
 0x1d5   :  { %v1279_v33 = vadd.f32 %v1181_v22, %v570_v26  ;;  %v1554_v36 = vsel %vm467_vm0, %v1477_v20, 0.0  ;;  %v1767_v38 = vsub.f32 %v3211_v32, %v4782_v13  ;;  %v1828_v18 = vmul.f32 %v1764_v16, %v1764_v16 }
 0x1d6   :  { %v1555_v39 = vadd.f32 %v1554_v36, %v1476_v34  ;;  %v1478_v40 = vmul.f32 %v1414_v25, %v1414_v25  ;;  %v1479_v41 = vmul.f32 %v1415_v27, %v1415_v27  ;;  %v1906_v45 = vsel %vm467_vm0, %v1829_v29, 0.0  ;;  %v3215_v34 = vld [vmem:[%s6314_s4 + $0x2a8] sm:$0xff] }
 0x1d7   :  { %v4803_v42 = vmul.f32 0.0025510204, %v1279_v33  ;;  %v1185_v43 = vpop.xlane.xlu0 %1184  ;;  %1904 = vadd.xlane.f32.xlu0 %v1903_v24  ;;  %v1831_v46 = vmul.f32 %v1767_v38, %v1767_v38  ;;  %v1830_v51 = vmul.f32 %v1766_v37, %v1766_v37  ;;  %v1907_v62 = vadd.f32 %v1906_v45, %v1828_v18  ;;  %v1357_v18 = vld [vmem:[%s6314_s4 + $0xb8] sm:$0xff] }
 0x1d8   :  { %v1280_v47 = vadd.f32 %v1185_v43, %v574_v19  ;;  %v578_v48 = vpop.xlane.xlu1 %577  ;;  %1556 = vadd.xlane.f32.xlu1 %v1555_v39  ;;  %v1558_v50 = vsel %vm467_vm0, %v1479_v41, 0.0  ;;  %v3214_v19 = vld [vmem:[%s6314_s4 + $0x2a0] sm:$0xff]  ;;  %v1356_v41 = vld [vmem:[%s6314_s4 + $0xb0] sm:$0xff] }
 0x1d9   :  { %v1559_v55 = vadd.f32 %v1558_v50, %v1478_v40  ;;  %v1910_v56 = vsel %vm467_vm0, %v1831_v46, 0.0  ;;  %v1416_v58 = vsub.f32 %v1352_v52, %v4803_v42  ;;  %v1417_v59 = vsub.f32 %v1353_v53, %v4803_v42  ;;  %v3217_v50 = vld [vmem:[%s6314_s4 + $0x2b8] sm:$0xff] }
 0x1da   :  { %v4822_v26 = vmul.f32 0.0025510204, %v1280_v47  ;;  %v1768_v63 = vsub.f32 %v3212_v60, %v4803_v42  ;;  %v1769_v2 = vsub.f32 %v3213_v61, %v4803_v42  ;;  %v1911_v12 = vadd.f32 %v1910_v56, %v1830_v51  ;;  %v1358_v61 = vld [vmem:[%s6314_s4 + $0xc0] sm:$0xff] }
 0x1db   :  { %v582_v1 = vpop.xlane.xlu0 %581  ;;  %1560 = vadd.xlane.f32.xlu0 %v1559_v55  ;;  %v1480_v3 = vmul.f32 %v1416_v58, %v1416_v58  ;;  %v1481_v4 = vmul.f32 %v1417_v59, %v1417_v59  ;;  %v3512_v51 = vmov 0  }
 0x1dc   :  { %v1189_v11 = vpop.xlane.xlu1 %1188  ;;  %1908 = vadd.xlane.f32.xlu1 %v1907_v62  ;;  %v1418_v14 = vsub.f32 %v1354_v5, %v4822_v26  ;;  %v1419_v16 = vsub.f32 %v1355_v6, %v4822_v26  ;;  %v1833_v17 = vmul.f32 %v1769_v2, %v1769_v2  ;;  %v1770_v9 = vsub.f32 %v3214_v19, %v4822_v26  ;;  %v1359_v62 = vld [vmem:[%s6314_s4 + $0xc8] sm:$0xff]  ;;  %v3218_v5 = vld [vmem:[%s6314_s4 + $0x2c0] sm:$0xff] }
 0x1dd   :  { %v1281_v20 = vadd.f32 %v1189_v11, %v578_v48  ;;  %v1562_v21 = vsel %vm467_vm0, %v1481_v4, 0.0  ;;  %v1771_v22 = vsub.f32 %v3215_v34, %v4822_v26  ;;  %v1832_v29 = vmul.f32 %v1768_v63, %v1768_v63  ;;  %v3216_v48 = vld [vmem:[%s6314_s4 + $0x2b0] sm:$0xff]  ;;  %3387 = vset.pattern.permute.xlu0 %v3512_v51  ;;  %3388 = vset.pattern.permute.xlu1 %v3512_v51  ;;  %v3219_v6 = vld [vmem:[%s6314_s4 + $0x2c8] sm:$0xff] }
 0x1de   :  { %v1563_v24 = vadd.f32 %v1562_v21, %v1480_v3  ;;  %v1482_v25 = vmul.f32 %v1418_v14, %v1418_v14  ;;  %v1483_v27 = vmul.f32 %v1419_v16, %v1419_v16  ;;  %v1914_v33 = vsel %vm467_vm0, %v1833_v17, 0.0 }
 0x1df   :  { %v4843_v30 = vmul.f32 0.0025510204, %v1281_v20  ;;  %v1193_v32 = vpop.xlane.xlu0 %1192  ;;  %1912 = vadd.xlane.f32.xlu0 %v1911_v12  ;;  %v1835_v36 = vmul.f32 %v1771_v22, %v1771_v22  ;;  %v1834_v40 = vmul.f32 %v1770_v9, %v1770_v9  ;;  %v1915_v53 = vadd.f32 %v1914_v33, %v1832_v29  ;;  %v1360_v33 = vld [vmem:[%s6314_s4 + $0xd0] sm:$0xff] }
 0x1e0   :  { %v1282_v37 = vadd.f32 %v1193_v32, %v582_v1  ;;  %v586_v38 = vpop.xlane.xlu1 %585  ;;  %1564 = vadd.xlane.f32.xlu1 %v1563_v24  ;;  %v1566_v39 = vsel %vm467_vm0, %v1483_v27, 0.0 }
 0x1e1   :  { %v1567_v43 = vadd.f32 %v1566_v39, %v1482_v25  ;;  %v1918_v45 = vsel %vm467_vm0, %v1835_v36, 0.0  ;;  %v1420_v46 = vsub.f32 %v1356_v41, %v4843_v30  ;;  %v1421_v47 = vsub.f32 %v1357_v18, %v4843_v30  ;;  %v1361_v36 = vld [vmem:[%s6314_s4 + $0xd8] sm:$0xff]  ;;  %v3220_v41 = vld [vmem:[%s6314_s4 + $0x2d0] sm:$0xff] }
 0x1e2   :  { %v4862_v52 = vmul.f32 0.0025510204, %v1282_v37  ;;  %v1772_v55 = vsub.f32 %v3216_v48, %v4843_v30  ;;  %v1773_v56 = vsub.f32 %v3217_v50, %v4843_v30  ;;  %v1919_v2 = vadd.f32 %v1918_v45, %v1834_v40  ;;  %v3221_v18 = vld [vmem:[%s6314_s4 + $0x2d8] sm:$0xff] }
 0x1e3   :  { %v590_v58 = vpop.xlane.xlu0 %589  ;;  %1568 = vadd.xlane.f32.xlu0 %v1567_v43  ;;  %v1484_v59 = vmul.f32 %v1420_v46, %v1420_v46  ;;  %v1485_v60 = vmul.f32 %v1421_v47, %v1421_v47 }
 0x1e4   :  { %v1197_v63 = vpop.xlane.xlu1 %1196  ;;  %1916 = vadd.xlane.f32.xlu1 %v1915_v53  ;;  %v1422_v1 = vsub.f32 %v1358_v61, %v4862_v52  ;;  %v1423_v3 = vsub.f32 %v1359_v62, %v4862_v52  ;;  %v1837_v4 = vmul.f32 %v1773_v56, %v1773_v56  ;;  %v1774_v14 = vsub.f32 %v3218_v5, %v4862_v52  ;;  %v1362_v53 = vld [vmem:[%s6314_s4 + $0xe0] sm:$0xff] }
 0x1e5   :  { %v1283_v11 = vadd.f32 %v1197_v63, %v586_v38  ;;  %v1570_v12 = vsel %vm467_vm0, %v1485_v60, 0.0  ;;  %v1775_v16 = vsub.f32 %v3219_v6, %v4862_v52  ;;  %v1836_v20 = vmul.f32 %v1772_v55, %v1772_v55  ;;  %v1363_v55 = vld [vmem:[%s6314_s4 + $0xe8] sm:$0xff]  ;;  %v3222_v62 = vld [vmem:[%s6314_s4 + $0x2e0] sm:$0xff] }
 0x1e6   :  { %v1571_v17 = vadd.f32 %v1570_v12, %v1484_v59  ;;  %v1486_v19 = vmul.f32 %v1422_v1, %v1422_v1  ;;  %v1487_v34 = vmul.f32 %v1423_v3, %v1423_v3  ;;  %v1922_v22 = vsel %vm467_vm0, %v1837_v4, 0.0  ;;  %v3223_v63 = vld [vmem:[%s6314_s4 + $0x2e8] sm:$0xff] }
 0x1e7   :  { %v4883_v21 = vmul.f32 0.0025510204, %v1283_v11  ;;  %v1201_v9 = vpop.xlane.xlu0 %1200  ;;  %1920 = vadd.xlane.f32.xlu0 %v1919_v2  ;;  %v1839_v24 = vmul.f32 %v1775_v16, %v1775_v16  ;;  %v1838_v32 = vmul.f32 %v1774_v14, %v1774_v14  ;;  %v1923_v45 = vadd.f32 %v1922_v22, %v1836_v20 }
 0x1e8   :  { %v1284_v25 = vadd.f32 %v1201_v9, %v590_v58  ;;  %v594_v27 = vpop.xlane.xlu1 %593  ;;  %1572 = vadd.xlane.f32.xlu1 %v1571_v17  ;;  %v1574_v29 = vsel %vm467_vm0, %v1487_v34, 0.0 }
 0x1e9   :  { %v1575_v37 = vadd.f32 %v1574_v29, %v1486_v19  ;;  %v1926_v38 = vsel %vm467_vm0, %v1839_v24, 0.0  ;;  %v1424_v39 = vsub.f32 %v1360_v33, %v4883_v21  ;;  %v1425_v40 = vsub.f32 %v1361_v36, %v4883_v21  ;;  %v1364_v24 = vld [vmem:[%s6314_s4 + $0xf0] sm:$0xff] }
 0x1ea   :  { %v4902_v43 = vmul.f32 0.0025510204, %v1284_v25  ;;  %v1776_v46 = vsub.f32 %v3220_v41, %v4883_v21  ;;  %v1777_v47 = vsub.f32 %v3221_v18, %v4883_v21  ;;  %v1927_v58 = vadd.f32 %v1926_v38, %v1838_v32  ;;  %v1365_v25 = vld [vmem:[%s6314_s4 + $0xf8] sm:$0xff]  ;;  %v3224_v36 = vld [vmem:[%s6314_s4 + $0x2f0] sm:$0xff] }
 0x1eb   :  { %v598_v48 = vpop.xlane.xlu0 %597  ;;  %1576 = vadd.xlane.f32.xlu0 %v1575_v37  ;;  %v1488_v50 = vmul.f32 %v1424_v39, %v1424_v39  ;;  %v1489_v51 = vmul.f32 %v1425_v40, %v1425_v40  ;;  %v3225_v37 = vld [vmem:[%s6314_s4 + $0x2f8] sm:$0xff] }
 0x1ec   :  { %v1205_v56 = vpop.xlane.xlu1 %1204  ;;  %1924 = vadd.xlane.f32.xlu1 %v1923_v45  ;;  %v1426_v59 = vsub.f32 %v1362_v53, %v4902_v43  ;;  %v1427_v60 = vsub.f32 %v1363_v55, %v4902_v43  ;;  %v1841_v61 = vmul.f32 %v1777_v47, %v1777_v47  ;;  %v1778_v3 = vsub.f32 %v3222_v62, %v4902_v43  ;;  %v1366_v47 = vld [vmem:[%s6314_s4 + $0x100] sm:$0xff] }
 0x1ed   :  { %v1285_v2 = vadd.f32 %v1205_v56, %v594_v27  ;;  %v1578_v1 = vsel %vm467_vm0, %v1489_v51, 0.0  ;;  %v1779_v4 = vsub.f32 %v3223_v63, %v4902_v43  ;;  %v1840_v12 = vmul.f32 %v1776_v46, %v1776_v46 }
 0x1ee   :  { %v1579_v5 = vadd.f32 %v1578_v1, %v1488_v50  ;;  %v1490_v6 = vmul.f32 %v1426_v59, %v1426_v59  ;;  %v1491_v11 = vmul.f32 %v1427_v60, %v1427_v60  ;;  %v1930_v17 = vsel %vm467_vm0, %v1841_v61, 0.0  ;;  %v3227_v59 = vld [vmem:[%s6314_s4 + $0x308] sm:$0xff] }
 0x1ef   :  { %v4923_v14 = vmul.f32 0.0025510204, %v1285_v2  ;;  %v1209_v16 = vpop.xlane.xlu0 %1208  ;;  %1928 = vadd.xlane.f32.xlu0 %v1927_v58  ;;  %v1843_v19 = vmul.f32 %v1779_v4, %v1779_v4  ;;  %v1842_v22 = vmul.f32 %v1778_v3, %v1778_v3  ;;  %v1931_v39 = vadd.f32 %v1930_v17, %v1840_v12  ;;  %v3226_v58 = vld [vmem:[%s6314_s4 + $0x300] sm:$0xff] }
 0x1f0   :  { %v1286_v34 = vadd.f32 %v1209_v16, %v598_v48  ;;  %v602_v20 = vpop.xlane.xlu1 %601  ;;  %1580 = vadd.xlane.f32.xlu1 %v1579_v5  ;;  %v1582_v9 = vsel %vm467_vm0, %v1491_v11, 0.0  ;;  %v1367_v48 = vld [vmem:[%s6314_s4 + $0x108] sm:$0xff] }
 0x1f1   :  { %v1583_v27 = vadd.f32 %v1582_v9, %v1490_v6  ;;  %v1934_v29 = vsel %vm467_vm0, %v1843_v19, 0.0  ;;  %v1428_v32 = vsub.f32 %v1364_v24, %v4923_v14  ;;  %v1429_v33 = vsub.f32 %v1365_v25, %v4923_v14  ;;  %v1369_v9 = vld [vmem:[%s6314_s4 + $0x118] sm:$0xff] }
 0x1f2   :  { %v4942_v38 = vmul.f32 0.0025510204, %v1286_v34  ;;  %v1780_v40 = vsub.f32 %v3224_v36, %v4923_v14  ;;  %v1781_v41 = vsub.f32 %v3225_v37, %v4923_v14  ;;  %v1935_v51 = vadd.f32 %v1934_v29, %v1842_v22  ;;  %v3228_v29 = vld [vmem:[%s6314_s4 + $0x310] sm:$0xff] }
 0x1f3   :  { %v606_v18 = vpop.xlane.xlu0 %605  ;;  %1584 = vadd.xlane.f32.xlu0 %v1583_v27  ;;  %v1492_v45 = vmul.f32 %v1428_v32, %v1428_v32  ;;  %v1493_v46 = vmul.f32 %v1429_v33, %v1429_v33  ;;  %v3229_v32 = vld [vmem:[%s6314_s4 + $0x318] sm:$0xff] }
 0x1f4   :  { %v1213_v50 = vpop.xlane.xlu1 %1212  ;;  %1932 = vadd.xlane.f32.xlu1 %v1931_v39  ;;  %v1430_v53 = vsub.f32 %v1366_v47, %v4942_v38  ;;  %v1431_v55 = vsub.f32 %v1367_v48, %v4942_v38  ;;  %v1845_v56 = vmul.f32 %v1781_v41, %v1781_v41  ;;  %v1782_v62 = vsub.f32 %v3226_v58, %v4942_v38 }
 0x1f5   :  { %v1287_v60 = vadd.f32 %v1213_v50, %v602_v20  ;;  %v1586_v61 = vsel %vm467_vm0, %v1493_v46, 0.0  ;;  %v1783_v63 = vsub.f32 %v3227_v59, %v4942_v38  ;;  %v1844_v4 = vmul.f32 %v1780_v40, %v1780_v40  ;;  %v1368_v20 = vld [vmem:[%s6314_s4 + $0x110] sm:$0xff]  ;;  %v1371_v46 = vld [vmem:[%s6314_s4 + $0x128] sm:$0xff] }
 0x1f6   :  { %v1587_v2 = vadd.f32 %v1586_v61, %v1492_v45  ;;  %v1494_v1 = vmul.f32 %v1430_v53, %v1430_v53  ;;  %v1495_v3 = vmul.f32 %v1431_v55, %v1431_v55  ;;  %v1938_v11 = vsel %vm467_vm0, %v1845_v56, 0.0  ;;  %v1370_v45 = vld [vmem:[%s6314_s4 + $0x120] sm:$0xff]  ;;  %v3231_v56 = vld [vmem:[%s6314_s4 + $0x328] sm:$0xff] }
 0x1f7   :  { %v4963_v5 = vmul.f32 0.0025510204, %v1287_v60  ;;  %v1217_v6 = vpop.xlane.xlu0 %1216  ;;  %1936 = vadd.xlane.f32.xlu0 %v1935_v51  ;;  %v1847_v12 = vmul.f32 %v1783_v63, %v1783_v63  ;;  %v1846_v34 = vmul.f32 %v1782_v62, %v1782_v62  ;;  %v1939_v36 = vadd.f32 %v1938_v11, %v1844_v4  ;;  %v3230_v55 = vld [vmem:[%s6314_s4 + $0x320] sm:$0xff] }
 0x1f8   :  { %v1288_v16 = vadd.f32 %v1217_v6, %v606_v18  ;;  %v610_v17 = vpop.xlane.xlu1 %609  ;;  %1588 = vadd.xlane.f32.xlu1 %v1587_v2  ;;  %v1590_v19 = vsel %vm467_vm0, %v1495_v3, 0.0 }
 0x1f9   :  { %v1591_v22 = vadd.f32 %v1590_v19, %v1494_v1  ;;  %v1942_v24 = vsel %vm467_vm0, %v1847_v12, 0.0  ;;  %v1432_v25 = vsub.f32 %v1368_v20, %v4963_v5  ;;  %v1433_v27 = vsub.f32 %v1369_v9, %v4963_v5  ;;  %v1373_v20 = vld [vmem:[%s6314_s4 + $0x138] sm:$0xff] }
 0x1fa   :  { %v4982_v33 = vmul.f32 0.0025510204, %v1288_v16  ;;  %v1784_v37 = vsub.f32 %v3228_v29, %v4963_v5  ;;  %v1785_v39 = vsub.f32 %v3229_v32, %v4963_v5  ;;  %v1943_v48 = vadd.f32 %v1942_v24, %v1846_v34  ;;  %v1372_v34 = vld [vmem:[%s6314_s4 + $0x130] sm:$0xff]  ;;  %v3233_v29 = vld [vmem:[%s6314_s4 + $0x338] sm:$0xff] }
 0x1fb   :  { %v614_v40 = vpop.xlane.xlu0 %613  ;;  %1592 = vadd.xlane.f32.xlu0 %v1591_v22  ;;  %v1496_v41 = vmul.f32 %v1432_v25, %v1432_v25  ;;  %v1497_v18 = vmul.f32 %v1433_v27, %v1433_v27  ;;  %v3232_v27 = vld [vmem:[%s6314_s4 + $0x330] sm:$0xff] }
 0x1fc   :  { %v1221_v47 = vpop.xlane.xlu1 %1220  ;;  %1940 = vadd.xlane.f32.xlu1 %v1939_v36  ;;  %v1434_v50 = vsub.f32 %v1370_v45, %v4982_v33  ;;  %v1435_v51 = vsub.f32 %v1371_v46, %v4982_v33  ;;  %v1849_v53 = vmul.f32 %v1785_v39, %v1785_v39  ;;  %v1786_v60 = vsub.f32 %v3230_v55, %v4982_v33  ;;  %v1374_v45 = vld [vmem:[%s6314_s4 + $0x140] sm:$0xff]  ;;  %v1375_v46 = vld [vmem:[%s6314_s4 + $0x148] sm:$0xff] }
 0x1fd   :  { %v1289_v58 = vadd.f32 %v1221_v47, %v610_v17  ;;  %v1594_v59 = vsel %vm467_vm0, %v1497_v18, 0.0  ;;  %v1787_v61 = vsub.f32 %v3231_v56, %v4982_v33  ;;  %v1848_v1 = vmul.f32 %v1784_v37, %v1784_v37  ;;  %v3234_v55 = vld [vmem:[%s6314_s4 + $0x340] sm:$0xff]  ;;  %v3235_v56 = vld [vmem:[%s6314_s4 + $0x348] sm:$0xff] }
 0x1fe   :  { %v1595_v62 = vadd.f32 %v1594_v59, %v1496_v41  ;;  %v1498_v63 = vmul.f32 %v1434_v50, %v1434_v50  ;;  %v1499_v2 = vmul.f32 %v1435_v51, %v1435_v51  ;;  %v1946_v6 = vsel %vm467_vm0, %v1849_v53, 0.0 }
 0x1ff   :  { %v5003_v3 = vmul.f32 0.0025510204, %v1289_v58  ;;  %v1225_v4 = vpop.xlane.xlu0 %1224  ;;  %1944 = vadd.xlane.f32.xlu0 %v1943_v48  ;;  %v1851_v11 = vmul.f32 %v1787_v61, %v1787_v61  ;;  %v1850_v19 = vmul.f32 %v1786_v60, %v1786_v60  ;;  %v1947_v36 = vadd.f32 %v1946_v6, %v1848_v1 }
 0x200   :  { %v1290_v12 = vadd.f32 %v1225_v4, %v614_v40  ;;  %v618_v16 = vpop.xlane.xlu1 %617  ;;  %1596 = vadd.xlane.f32.xlu1 %v1595_v62  ;;  %v1598_v17 = vsel %vm467_vm0, %v1499_v2, 0.0 }
 0x201   :  { %v1599_v9 = vadd.f32 %v1598_v17, %v1498_v63  ;;  %v1950_v22 = vsel %vm467_vm0, %v1851_v11, 0.0  ;;  %v1436_v24 = vsub.f32 %v1372_v34, %v5003_v3  ;;  %v1437_v25 = vsub.f32 %v1373_v20, %v5003_v3  ;;  %v1376_v20 = vld [vmem:[%s6314_s4 + $0x150] sm:$0xff] }
 0x202   :  { %v5022_v32 = vmul.f32 0.0025510204, %v1290_v12  ;;  %v1788_v37 = vsub.f32 %v3232_v27, %v5003_v3  ;;  %v1789_v39 = vsub.f32 %v3233_v29, %v5003_v3  ;;  %v1951_v48 = vadd.f32 %v1950_v22, %v1850_v19  ;;  %v3236_v29 = vld [vmem:[%s6314_s4 + $0x350] sm:$0xff] }
 0x203   :  { %v622_v40 = vpop.xlane.xlu0 %621  ;;  %1600 = vadd.xlane.f32.xlu0 %v1599_v9  ;;  %v1500_v41 = vmul.f32 %v1436_v24, %v1436_v24  ;;  %v1501_v18 = vmul.f32 %v1437_v25, %v1437_v25  ;;  %v1377_v9 = vld [vmem:[%s6314_s4 + $0x158] sm:$0xff] }
 0x204   :  { %v1229_v47 = vpop.xlane.xlu1 %1228  ;;  %1948 = vadd.xlane.f32.xlu1 %v1947_v36  ;;  %v1438_v50 = vsub.f32 %v1374_v45, %v5022_v32  ;;  %v1439_v51 = vsub.f32 %v1375_v46, %v5022_v32  ;;  %v1853_v53 = vmul.f32 %v1789_v39, %v1789_v39  ;;  %v1790_v60 = vsub.f32 %v3234_v55, %v5022_v32  ;;  %v3237_v36 = vld [vmem:[%s6314_s4 + $0x358] sm:$0xff] }
 0x205   :  { %v1291_v58 = vadd.f32 %v1229_v47, %v618_v16  ;;  %v1602_v59 = vsel %vm467_vm0, %v1501_v18, 0.0  ;;  %v1791_v61 = vsub.f32 %v3235_v56, %v5022_v32  ;;  %v1852_v1 = vmul.f32 %v1788_v37, %v1788_v37  ;;  %v1378_v47 = vld [vmem:[%s6314_s4 + $0x160] sm:$0xff] }
 0x206   :  { %v1603_v62 = vadd.f32 %v1602_v59, %v1500_v41  ;;  %v1502_v63 = vmul.f32 %v1438_v50, %v1438_v50  ;;  %v1503_v2 = vmul.f32 %v1439_v51, %v1439_v51  ;;  %v1954_v11 = vsel %vm467_vm0, %v1853_v53, 0.0  ;;  %v3239_v59 = vld [vmem:[%s6314_s4 + $0x368] sm:$0xff] }
 0x207   :  { %v5043_v4 = vmul.f32 0.0025510204, %v1291_v58  ;;  %v1233_v6 = vpop.xlane.xlu0 %1232  ;;  %1952 = vadd.xlane.f32.xlu0 %v1951_v48  ;;  %v1855_v12 = vmul.f32 %v1791_v61, %v1791_v61  ;;  %v1854_v34 = vmul.f32 %v1790_v60, %v1790_v60  ;;  %v1955_v39 = vadd.f32 %v1954_v11, %v1852_v1  ;;  %v1379_v48 = vld [vmem:[%s6314_s4 + $0x168] sm:$0xff]  ;;  %v3238_v58 = vld [vmem:[%s6314_s4 + $0x360] sm:$0xff] }
 0x208   :  { %v1292_v17 = vadd.f32 %v1233_v6, %v622_v40  ;;  %v626_v19 = vpop.xlane.xlu1 %625  ;;  %1604 = vadd.xlane.f32.xlu1 %v1603_v62  ;;  %v1606_v16 = vsel %vm467_vm0, %v1503_v2, 0.0 }
 0x209   :  { %v1607_v22 = vadd.f32 %v1606_v16, %v1502_v63  ;;  %v1958_v24 = vsel %vm467_vm0, %v1855_v12, 0.0  ;;  %v1440_v25 = vsub.f32 %v1376_v20, %v5043_v4  ;;  %v1441_v27 = vsub.f32 %v1377_v9, %v5043_v4 }
 0x20a   :  { %v5062_v37 = vmul.f32 0.0025510204, %v1292_v17  ;;  %v1792_v40 = vsub.f32 %v3236_v29, %v5043_v4  ;;  %v1793_v41 = vsub.f32 %v3237_v36, %v5043_v4  ;;  %v1959_v51 = vadd.f32 %v1958_v24, %v1854_v34  ;;  %v1380_v24 = vld [vmem:[%s6314_s4 + $0x170] sm:$0xff] }
 0x20b   :  { %v630_v18 = vpop.xlane.xlu0 %629  ;;  %1608 = vadd.xlane.f32.xlu0 %v1607_v22  ;;  %v1504_v45 = vmul.f32 %v1440_v25, %v1440_v25  ;;  %v1505_v46 = vmul.f32 %v1441_v27, %v1441_v27  ;;  %v1381_v25 = vld [vmem:[%s6314_s4 + $0x178] sm:$0xff] }
 0x20c   :  { %v1237_v50 = vpop.xlane.xlu1 %1236  ;;  %1956 = vadd.xlane.f32.xlu1 %v1955_v39  ;;  %v1442_v53 = vsub.f32 %v1378_v47, %v5062_v37  ;;  %v1443_v55 = vsub.f32 %v1379_v48, %v5062_v37  ;;  %v1857_v56 = vmul.f32 %v1793_v41, %v1793_v41  ;;  %v1794_v62 = vsub.f32 %v3238_v58, %v5062_v37  ;;  %v3241_v41 = vld [vmem:[%s6314_s4 + $0x378] sm:$0xff] }
 0x20d   :  { %v1293_v60 = vadd.f32 %v1237_v50, %v626_v19  ;;  %v1610_v61 = vsel %vm467_vm0, %v1505_v46, 0.0  ;;  %v1795_v63 = vsub.f32 %v3239_v59, %v5062_v37  ;;  %v1856_v11 = vmul.f32 %v1792_v40, %v1792_v40  ;;  %v3240_v40 = vld [vmem:[%s6314_s4 + $0x370] sm:$0xff] }
 0x20e   :  { %v1611_v2 = vadd.f32 %v1610_v61, %v1504_v45  ;;  %v1506_v1 = vmul.f32 %v1442_v53, %v1442_v53  ;;  %v1507_v6 = vmul.f32 %v1443_v55, %v1443_v55  ;;  %v1962_v16 = vsel %vm467_vm0, %v1857_v56, 0.0  ;;  %v1382_v53 = vld [vmem:[%s6314_s4 + $0x180] sm:$0xff]  ;;  %v1383_v55 = vld [vmem:[%s6314_s4 + $0x188] sm:$0xff] }
 0x20f   :  { %v5083_v12 = vmul.f32 0.0025510204, %v1293_v60  ;;  %v1241_v17 = vpop.xlane.xlu0 %1240  ;;  %1960 = vadd.xlane.f32.xlu0 %v1959_v51  ;;  %v1859_v34 = vmul.f32 %v1795_v63, %v1795_v63  ;;  %v1858_v22 = vmul.f32 %v1794_v62, %v1794_v62  ;;  %v1963_v45 = vadd.f32 %v1962_v16, %v1856_v11  ;;  %v3242_v62 = vld [vmem:[%s6314_s4 + $0x380] sm:$0xff]  ;;  %v3243_v63 = vld [vmem:[%s6314_s4 + $0x388] sm:$0xff] }
 0x210   :  { %v1294_v20 = vadd.f32 %v1241_v17, %v630_v18  ;;  %v634_v9 = vpop.xlane.xlu1 %633  ;;  %1612 = vadd.xlane.f32.xlu1 %v1611_v2  ;;  %v1614_v19 = vsel %vm467_vm0, %v1507_v6, 0.0 }
 0x211   :  { %v1615_v27 = vadd.f32 %v1614_v19, %v1506_v1  ;;  %v1966_v29 = vsel %vm467_vm0, %v1859_v34, 0.0  ;;  %v1444_v36 = vsub.f32 %v1380_v24, %v5083_v12  ;;  %v1445_v39 = vsub.f32 %v1381_v25, %v5083_v12 }
 0x212   :  { %v5102_v18 = vmul.f32 0.0025510204, %v1294_v20  ;;  %v1796_v46 = vsub.f32 %v3240_v40, %v5083_v12  ;;  %v1797_v47 = vsub.f32 %v3241_v41, %v5083_v12  ;;  %v1967_v58 = vadd.f32 %v1966_v29, %v1858_v22  ;;  %v1385_v40 = vld [vmem:[%s6314_s4 + $0x198] sm:$0xff] }
 0x213   :  { %v638_v48 = vpop.xlane.xlu0 %637  ;;  %1616 = vadd.xlane.f32.xlu0 %v1615_v27  ;;  %v1508_v50 = vmul.f32 %v1444_v36, %v1444_v36  ;;  %v1509_v51 = vmul.f32 %v1445_v39, %v1445_v39  ;;  %v1384_v39 = vld [vmem:[%s6314_s4 + $0x190] sm:$0xff] }
 0x214   :  { %v1245_v56 = vpop.xlane.xlu1 %1244  ;;  %1964 = vadd.xlane.f32.xlu1 %v1963_v45  ;;  %v1446_v59 = vsub.f32 %v1382_v53, %v5102_v18  ;;  %v1447_v60 = vsub.f32 %v1383_v55, %v5102_v18  ;;  %v1861_v61 = vmul.f32 %v1797_v47, %v1797_v47  ;;  %v1798_v6 = vsub.f32 %v3242_v62, %v5102_v18  ;;  %v1387_v62 = vld [vmem:[%s6314_s4 + $0x1a8] sm:$0xff] }
 0x215   :  { %v1295_v2 = vadd.f32 %v1245_v56, %v634_v9  ;;  %v1618_v1 = vsel %vm467_vm0, %v1509_v51, 0.0  ;;  %v1799_v11 = vsub.f32 %v3243_v63, %v5102_v18  ;;  %v1860_v20 = vmul.f32 %v1796_v46, %v1796_v46 }
 0x216   :  { %v1619_v17 = vadd.f32 %v1618_v1, %v1508_v50  ;;  %v1510_v16 = vmul.f32 %v1446_v59, %v1446_v59  ;;  %v1511_v34 = vmul.f32 %v1447_v60, %v1447_v60  ;;  %v1970_v24 = vsel %vm467_vm0, %v1861_v61, 0.0  ;;  %v3245_v50 = vld [vmem:[%s6314_s4 + $0x398] sm:$0xff]  ;;  %v1386_v61 = vld [vmem:[%s6314_s4 + $0x1a0] sm:$0xff] }
 0x217   :  { %v5123_v19 = vmul.f32 0.0025510204, %v1295_v2  ;;  %v1249_v22 = vpop.xlane.xlu0 %1248  ;;  %1968 = vadd.xlane.f32.xlu0 %v1967_v58  ;;  %v1863_v25 = vmul.f32 %v1799_v11, %v1799_v11  ;;  %v1862_v36 = vmul.f32 %v1798_v6, %v1798_v6  ;;  %v1971_v53 = vadd.f32 %v1970_v24, %v1860_v20 }
 0x218   :  { %v1296_v27 = vadd.f32 %v1249_v22, %v638_v48  ;;  %v642_v29 = vpop.xlane.xlu1 %641  ;;  %1620 = vadd.xlane.f32.xlu1 %v1619_v17  ;;  %v1622_v9 = vsel %vm467_vm0, %v1511_v34, 0.0  ;;  %v3244_v48 = vld [vmem:[%s6314_s4 + $0x390] sm:$0xff]  ;;  %v3246_v17 = vld [vmem:[%s6314_s4 + $0x3a0] sm:$0xff] }
 0x219   :  { %v1623_v41 = vadd.f32 %v1622_v9, %v1510_v16  ;;  %v1974_v45 = vsel %vm467_vm0, %v1863_v25, 0.0  ;;  %v1448_v46 = vsub.f32 %v1384_v39, %v5123_v19  ;;  %v1449_v47 = vsub.f32 %v1385_v40, %v5123_v19  ;;  %v3247_v16 = vld [vmem:[%s6314_s4 + $0x3a8] sm:$0xff] }
 0x21a   :  { %v5142_v51 = vmul.f32 0.0025510204, %v1296_v27  ;;  %v1800_v55 = vsub.f32 %v3244_v48, %v5123_v19  ;;  %v1801_v56 = vsub.f32 %v3245_v50, %v5123_v19  ;;  %v1975_v2 = vadd.f32 %v1974_v45, %v1862_v36  ;;  %v1388_v50 = vld [vmem:[%s6314_s4 + $0x1b0] sm:$0xff] }
 0x21b   :  { %v646_v58 = vpop.xlane.xlu0 %645  ;;  %1624 = vadd.xlane.f32.xlu0 %v1623_v41  ;;  %v1512_v59 = vmul.f32 %v1448_v46, %v1448_v46  ;;  %v1513_v60 = vmul.f32 %v1449_v47, %v1449_v47 }
 0x21c   :  { %v1253_v63 = vpop.xlane.xlu1 %1252  ;;  %1972 = vadd.xlane.f32.xlu1 %v1971_v53  ;;  %v1450_v1 = vsub.f32 %v1386_v61, %v5142_v51  ;;  %v1451_v6 = vsub.f32 %v1387_v62, %v5142_v51  ;;  %v1865_v11 = vmul.f32 %v1801_v56, %v1801_v56  ;;  %v1802_v22 = vsub.f32 %v3246_v17, %v5142_v51  ;;  %v1389_v53 = vld [vmem:[%s6314_s4 + $0x1b8] sm:$0xff] }
 0x21d   :  { %v1297_v34 = vadd.f32 %v1253_v63, %v642_v29  ;;  %v1626_v20 = vsel %vm467_vm0, %v1513_v60, 0.0  ;;  %v1803_v24 = vsub.f32 %v3247_v16, %v5142_v51  ;;  %v1864_v36 = vmul.f32 %v1800_v55, %v1800_v55  ;;  %v3248_v60 = vld [vmem:[%s6314_s4 + $0x3b0] sm:$0xff]  ;;  %v3249_v61 = vld [vmem:[%s6314_s4 + $0x3b8] sm:$0xff]  ;;  %v1390_v16 = vld [vmem:[%s6314_s4 + $0x1c0] sm:$0xff] }
 0x21e   :  { %v1627_v25 = vadd.f32 %v1626_v20, %v1512_v59  ;;  %v1514_v27 = vmul.f32 %v1450_v1, %v1450_v1  ;;  %v1515_v9 = vmul.f32 %v1451_v6, %v1451_v6  ;;  %v1978_v41 = vsel %vm467_vm0, %v1865_v11, 0.0 }
 0x21f   :  { %v5163_v39 = vmul.f32 0.0025510204, %v1297_v34  ;;  %v1257_v40 = vpop.xlane.xlu0 %1256  ;;  %1976 = vadd.xlane.f32.xlu0 %v1975_v2  ;;  %v1867_v45 = vmul.f32 %v1803_v24, %v1803_v24  ;;  %v1866_v48 = vmul.f32 %v1802_v22, %v1802_v22  ;;  %v1979_v63 = vadd.f32 %v1978_v41, %v1864_v36  ;;  %v1391_v34 = vld [vmem:[%s6314_s4 + $0x1c8] sm:$0xff] }
 0x220   :  { %v1298_v46 = vadd.f32 %v1257_v40, %v646_v58  ;;  %v650_v47 = vpop.xlane.xlu1 %649  ;;  %1628 = vadd.xlane.f32.xlu1 %v1627_v25  ;;  %v1630_v29 = vsel %vm467_vm0, %v1515_v9, 0.0  ;;  %v3250_v9 = vld [vmem:[%s6314_s4 + $0x3c0] sm:$0xff]  ;;  %v3251_v36 = vld [vmem:[%s6314_s4 + $0x3c8] sm:$0xff] }
 0x221   :  { %v1631_v55 = vadd.f32 %v1630_v29, %v1514_v27  ;;  %v1982_v56 = vsel %vm467_vm0, %v1867_v45, 0.0  ;;  %v1452_v59 = vsub.f32 %v1388_v50, %v5163_v39  ;;  %v1453_v58 = vsub.f32 %v1389_v53, %v5163_v39 }
 0x222   :  { %v5182_v62 = vmul.f32 0.0025510204, %v1298_v46  ;;  %v1804_v2 = vsub.f32 %v3248_v60, %v5163_v39  ;;  %v1805_v1 = vsub.f32 %v3249_v61, %v5163_v39  ;;  %v1983_v22 = vadd.f32 %v1982_v56, %v1866_v48 }
 0x223   :  { %1632 = vadd.xlane.f32.xlu0 %v1631_v55  ;;  %v654_v6 = vpop.xlane.xlu0 %653  ;;  %v1516_v11 = vmul.f32 %v1452_v59, %v1452_v59  ;;  %v1517_v17 = vmul.f32 %v1453_v58, %v1453_v58 }
 0x224   :  { %v1261_v20 = vpop.xlane.xlu1 %1260  ;;  %1980 = vadd.xlane.f32.xlu1 %v1979_v63  ;;  %v1454_v24 = vsub.f32 %v1390_v16, %v5182_v62  ;;  %v1455_v25 = vsub.f32 %v1391_v34, %v5182_v62  ;;  %v1869_v27 = vmul.f32 %v1805_v1, %v1805_v1  ;;  %v1806_v45 = vsub.f32 %v3250_v9, %v5182_v62  ;;  %v1392_v1 = vld [vmem:[%s6314_s4 + $0x1d0] sm:$0xff] }
 0x225   :  { %v1299_v40 = vadd.f32 %v1261_v20, %v650_v47  ;;  %v1634_v41 = vsel %vm467_vm0, %v1517_v17, 0.0  ;;  %v1807_v46 = vsub.f32 %v3251_v36, %v5182_v62  ;;  %v1868_v53 = vmul.f32 %v1804_v2, %v1804_v2  ;;  %v1393_v2 = vld [vmem:[%s6314_s4 + $0x1d8] sm:$0xff]  ;;  %v3252_v34 = vld [vmem:[%s6314_s4 + $0x3d0] sm:$0xff] }
 0x226   :  { %v1635_v29 = vadd.f32 %v1634_v41, %v1516_v11  ;;  %v1518_v48 = vmul.f32 %v1454_v24, %v1454_v24  ;;  %v1519_v50 = vmul.f32 %v1455_v25, %v1455_v25  ;;  %v1986_v59 = vsel %vm467_vm0, %v1869_v27, 0.0  ;;  %v3253_v20 = vld [vmem:[%s6314_s4 + $0x3d8] sm:$0xff]  ;;  %v1395_v41 = vld [vmem:[%s6314_s4 + $0x1e8] sm:$0xff] }
 0x227   :  { %v5203_v55 = vmul.f32 0.0025510204, %v1299_v40  ;;  %1984 = vadd.xlane.f32.xlu0 %v1983_v22  ;;  %v1265_v56 = vpop.xlane.xlu0 %1264  ;;  %v1871_v58 = vmul.f32 %v1807_v46, %v1807_v46  ;;  %v1870_v63 = vmul.f32 %v1806_v45, %v1806_v45  ;;  %v1987_v24 = vadd.f32 %v1986_v59, %v1868_v53  ;;  %v1394_v40 = vld [vmem:[%s6314_s4 + $0x1e0] sm:$0xff] }
 0x228   :  { %v1300_v60 = vadd.f32 %v1265_v56, %v654_v6  ;;  %1636 = vadd.xlane.f32.xlu1 %v1635_v29  ;;  %v658_v47 = vpop.xlane.xlu1 %657  ;;  %v1638_v61 = vsel %vm467_vm0, %v1519_v50, 0.0  ;;  %v3254_v53 = vld [vmem:[%s6314_s4 + $0x3e0] sm:$0xff]  ;;  %v3255_v56 = vld [vmem:[%s6314_s4 + $0x3e8] sm:$0xff] }
 0x229   :  { %v1639_v11 = vadd.f32 %v1638_v61, %v1518_v48  ;;  %v1990_v17 = vsel %vm467_vm0, %v1871_v58, 0.0  ;;  %v1456_v16 = vsub.f32 %v1392_v1, %v5203_v55  ;;  %v1457_v6 = vsub.f32 %v1393_v2, %v5203_v55 }
 0x22a   :  { %v5222_v22 = vmul.f32 0.0025510204, %v1300_v60  ;;  %v1808_v25 = vsub.f32 %v3252_v34, %v5203_v55  ;;  %v1809_v27 = vsub.f32 %v3253_v20, %v5203_v55  ;;  %v1991_v46 = vadd.f32 %v1990_v17, %v1870_v63  ;;  %v1397_v20 = vld [vmem:[%s6314_s4 + $0x1f8] sm:$0xff] }
 0x22b   :  { %1640 = vadd.xlane.f32.xlu0 %v1639_v11  ;;  %v1520_v9 = vmul.f32 %v1456_v16, %v1456_v16  ;;  %v1521_v36 = vmul.f32 %v1457_v6, %v1457_v6 }
 0x22c   :  { %1988 = vadd.xlane.f32.xlu1 %v1987_v24  ;;  %v1269_v45 = vpop.xlane.xlu1 %1268  ;;  %v1458_v29 = vsub.f32 %v1394_v40, %v5222_v22  ;;  %v1459_v48 = vsub.f32 %v1395_v41, %v5222_v22  ;;  %v1873_v50 = vmul.f32 %v1809_v27, %v1809_v27  ;;  %v1810_v60 = vsub.f32 %v3254_v53, %v5222_v22  ;;  %v3257_v40 = vld [vmem:[%s6314_s4 + $0x3f8] sm:$0xff] }
 0x22d   :  { %v1301_v59 = vadd.f32 %v1269_v45, %v658_v47  ;;  %v1642_v58 = vsel %vm467_vm0, %v1521_v36, 0.0  ;;  %v1811_v61 = vsub.f32 %v3255_v56, %v5222_v22  ;;  %v1872_v11 = vmul.f32 %v1808_v25, %v1808_v25  ;;  %v1396_v47 = vld [vmem:[%s6314_s4 + $0x1f0] sm:$0xff] }
 0x22e   :  { %v1643_v63 = vadd.f32 %v1642_v58, %v1520_v9  ;;  %v1522_v1 = vmul.f32 %v1458_v29, %v1458_v29  ;;  %v1523_v2 = vmul.f32 %v1459_v48, %v1459_v48  ;;  %v1994_v16 = vsel %vm467_vm0, %v1873_v50, 0.0  ;;  %v3256_v36 = vld [vmem:[%s6314_s4 + $0x3f0] sm:$0xff] }
 0x22f   :  { %v5243_v17 = vmul.f32 0.0025510204, %v1301_v59  ;;  %1992 = vadd.xlane.f32.xlu0 %v1991_v46  ;;  %v1875_v6 = vmul.f32 %v1811_v61, %v1811_v61  ;;  %v1874_v27 = vmul.f32 %v1810_v60, %v1810_v60  ;;  %v1995_v41 = vadd.f32 %v1994_v16, %v1872_v11 }
 0x230   :  { %1644 = vadd.xlane.f32.xlu1 %v1643_v63  ;;  %v1646_v34 = vsel %vm467_vm0, %v1523_v2, 0.0 }
 0x231   :  { %v1647_v24 = vadd.f32 %v1646_v34, %v1522_v1  ;;  %v1460_v25 = vsub.f32 %v1396_v47, %v5243_v17  ;;  %v1461_v9 = vsub.f32 %v1397_v20, %v5243_v17  ;;  %v1998_v45 = vsel %vm467_vm0, %v1875_v6, 0.0 }
 0x232   :  { %v1812_v46 = vsub.f32 %v3256_v36, %v5243_v17  ;;  %v1813_v29 = vsub.f32 %v3257_v40, %v5243_v17  ;;  %v1999_v56 = vadd.f32 %v1998_v45, %v1874_v27 }
 0x233   :  { %1648 = vadd.xlane.f32.xlu0 %v1647_v24  ;;  %v1524_v48 = vmul.f32 %v1460_v25, %v1460_v25  ;;  %v1525_v50 = vmul.f32 %v1461_v9, %v1461_v9 }
 0x234   :  { %1996 = vadd.xlane.f32.xlu1 %v1995_v41  ;;  %v1877_v53 = vmul.f32 %v1813_v29, %v1813_v29  ;;  %v1876_v60 = vmul.f32 %v1812_v46, %v1812_v46 }
 0x235   :  { %v1650_v59 = vsel %vm467_vm0, %v1525_v50, 0.0  ;;  %v2134_v50 = vld [vmem:[%s6315_s2] sm:$0xff] }
 0x236   :  { %v1651_v58 = vadd.f32 %v1650_v59, %v1524_v48  ;;  %v2002_v61 = vsel %vm467_vm0, %v1877_v53, 0.0 }
 0x237   :  { %2000 = vadd.xlane.f32.xlu0 %v1999_v56  ;;  %v2003_v63 = vadd.f32 %v2002_v61, %v1876_v60 }
 0x238   :  { %1652 = vadd.xlane.f32.xlu1 %v1651_v58 }
 0x23c   :  { %2004 = vadd.xlane.f32.xlu1 %v2003_v63 }
 0x248   :  { %v1529_v1 = vpop.xlane.xlu0 %1528 }
 0x24c   :  { %v1881_v2 = vpop.xlane.xlu0 %1880  ;;  %v1533_v11 = vpop.xlane.xlu1 %1532 }
 0x24d   :  { %v2006_v16 = vadd.f32 %v1881_v2, %v1529_v1  ;;  %v2135_v1 = vld [vmem:[%s6315_s2 + $0x8] sm:$0xff] }
 0x24f   :  { %v2038_v6 = vmul.f32 0.0025510204, %v2006_v16 }
 0x250   :  { %v1537_v34 = vpop.xlane.xlu0 %1536  ;;  %v1885_v47 = vpop.xlane.xlu1 %1884 }
 0x251   :  { %v2070_v20 = vadd.f32 1e-05, %v2038_v6  ;;  %v2007_v24 = vadd.f32 %v1885_v47, %v1533_v11 }
 0x253   :  { %3389 = vrsqrt.f32 %v2070_v20  ;;  %v2039_v27 = vmul.f32 0.0025510204, %v2007_v24  ;;  %v2199_v24 = vld [vmem:[%s6316_s3 + $0x8] sm:$0xff] }
 0x254   :  { %v1889_v25 = vpop.xlane.xlu0 %1888 }
 0x255   :  { %v2071_v9 = vadd.f32 1e-05, %v2039_v27  ;;  %v2008_v36 = vadd.f32 %v1889_v25, %v1537_v34  ;;  %v1541_v40 = vpop.xlane.xlu1 %1540  ;;  %v2198_v27 = vld [vmem:[%s6316_s3] sm:$0xff] }
 0x257   :  { %3391 = vrsqrt.f32 %v2071_v9  ;;  %v2040_v41 = vmul.f32 0.0025510204, %v2008_v36 }
 0x258   :  { %v1545_v45 = vpop.xlane.xlu0 %1544 }
 0x259   :  { %v2072_v46 = vadd.f32 1e-05, %v2040_v41  ;;  %v1893_v29 = vpop.xlane.xlu1 %1892 }
 0x25a   :  { %v2009_v48 = vadd.f32 %v1893_v29, %v1541_v40 }
 0x25b   :  { %3393 = vrsqrt.f32 %v2072_v46 }
 0x25c   :  { %v2041_v53 = vmul.f32 0.0025510204, %v2009_v48  ;;  %v1897_v56 = vpop.xlane.xlu0 %1896 }
 0x25d   :  { %v3390_v59 = vpop.eup %3389  ;;  %v2010_v58 = vadd.f32 %v1897_v56, %v1545_v45  ;;  %v1549_v60 = vpop.xlane.xlu1 %1548 }
 0x25e   :  { %v2073_v61 = vadd.f32 1e-05, %v2041_v53  ;;  %v2166_v63 = vmul.f32 %v3390_v59, %v2134_v50  ;;  %v2137_v53 = vld [vmem:[%s6315_s2 + $0x18] sm:$0xff] }
 0x25f   :  { %v2042_v16 = vmul.f32 0.0025510204, %v2010_v58 }
 0x260   :  { %3395 = vrsqrt.f32 %v2073_v61  ;;  %v1553_v2 = vpop.xlane.xlu0 %1552  ;;  %2360 = vperm.xlu0 %3387, %v2166_v63   ;;  %v2230_v20 = vmul.f32 %v2166_v63, %v4646_v44  ;;  %v2136_v44 = vld [vmem:[%s6315_s2 + $0x10] sm:$0xff] }
 0x261   :  { %v3392_v11 = vpop.eup %3391  ;;  %v1901_v6 = vpop.xlane.xlu1 %1900  ;;  %v2074_v40 = vadd.f32 1e-05, %v2042_v16 }
 0x262   :  { %v2011_v34 = vadd.f32 %v1901_v6, %v1549_v60  ;;  %v2167_v47 = vmul.f32 %v3392_v11, %v2135_v1  ;;  %v2262_v29 = vsub.f32 %v2198_v27, %v2230_v20  ;;  %v2201_v11 = vld [vmem:[%s6316_s3 + $0x18] sm:$0xff] }
 0x264   :  { %v2043_v25 = vmul.f32 0.0025510204, %v2011_v34  ;;  %v1905_v9 = vpop.xlane.xlu0 %1904  ;;  %2365 = vperm.xlu1 %3388, %v2167_v47   ;;  %v2231_v36 = vmul.f32 %v2167_v47, %v4660_v54 }
 0x265   :  { %v1557_v41 = vpop.xlane.xlu1 %1556  ;;  %v3394_v48 = vpop.eup %3393  ;;  %v2012_v54 = vadd.f32 %v1905_v9, %v1553_v2 }
 0x266   :  { %v2075_v45 = vadd.f32 1e-05, %v2043_v25  ;;  %v2263_v46 = vsub.f32 %v2199_v24, %v2231_v36  ;;  %v2168_v60 = vmul.f32 %v3394_v48, %v2136_v44  ;;  %v2200_v24 = vld [vmem:[%s6316_s3 + $0x10] sm:$0xff]  ;;  %v2139_v25 = vld [vmem:[%s6315_s2 + $0x28] sm:$0xff] }
 0x267   :  { %v2044_v16 = vmul.f32 0.0025510204, %v2012_v54 }
 0x268   :  { %3397 = vrsqrt.f32 %v2075_v45  ;;  %v1561_v50 = vpop.xlane.xlu0 %1560  ;;  %2653 = vperm.xlu0 %3387, %v2263_v46   ;;  %2648 = vperm.xlu1 %3388, %v2262_v29   ;;  %v2232_v20 = vmul.f32 %v2168_v60, %v4676_v10  ;;  %v2138_v29 = vld [vmem:[%s6315_s2 + $0x20] sm:$0xff] }
 0x269   :  { %3399 = vrsqrt.f32 %v2074_v40  ;;  %v1909_v56 = vpop.xlane.xlu1 %1908  ;;  %v2076_v9 = vadd.f32 1e-05, %v2044_v16 }
 0x26a   :  { %v3396_v59 = vpop.eup %3395  ;;  %v2013_v58 = vadd.f32 %v1909_v56, %v1557_v41  ;;  %v2264_v45 = vsub.f32 %v2200_v24, %v2232_v20 }
 0x26b   :  { %v2169_v61 = vmul.f32 %v3396_v59, %v2137_v53  ;;  %v2203_v53 = vld [vmem:[%s6316_s3 + $0x28] sm:$0xff] }
 0x26c   :  { %v2045_v63 = vmul.f32 0.0025510204, %v2013_v58  ;;  %v1913_v1 = vpop.xlane.xlu0 %1912  ;;  %2370 = vperm.xlu1 %3388, %v2168_v60  }
 0x26d   :  { %v1565_v6 = vpop.xlane.xlu1 %1564  ;;  %v2233_v34 = vmul.f32 %v2169_v61, %v4692_v35  ;;  %v2014_v36 = vadd.f32 %v1913_v1, %v1561_v50 }
 0x26e   :  { %v2077_v47 = vadd.f32 1e-05, %v2045_v63  ;;  %v2141_v63 = vld [vmem:[%s6315_s2 + $0x38] sm:$0xff] }
 0x26f   :  { %v2265_v2 = vsub.f32 %v2201_v11, %v2233_v34  ;;  %v2046_v50 = vmul.f32 0.0025510204, %v2014_v36 }
 0x270   :  { %3401 = vrsqrt.f32 %v2077_v47  ;;  %v1569_v27 = vpop.xlane.xlu0 %1568  ;;  %2375 = vperm.xlu1 %3388, %v2169_v61  }
 0x271   :  { %2663 = vperm.xlu0 %3387, %v2265_v2   ;;  %v1917_v40 = vpop.xlane.xlu1 %1916  ;;  %3403 = vrsqrt.f32 %v2076_v9  ;;  %v2078_v1 = vadd.f32 1e-05, %v2046_v50 }
 0x272   :  { %v3398_v35 = vpop.eup %3397  ;;  %v2015_v41 = vadd.f32 %v1917_v40, %v1565_v6 }
 0x273   :  { %v3400_v10 = vpop.eup %3399  ;;  %v2171_v46 = vmul.f32 %v3398_v35, %v2139_v25  ;;  %v2205_v25 = vld [vmem:[%s6316_s3 + $0x38] sm:$0xff] }
 0x274   :  { %v2047_v48 = vmul.f32 0.0025510204, %v2015_v41  ;;  %v1921_v44 = vpop.xlane.xlu0 %1920  ;;  %2658 = vperm.xlu1 %3388, %v2264_v45   ;;  %v2170_v58 = vmul.f32 %v3400_v10, %v2138_v29  ;;  %v2140_v45 = vld [vmem:[%s6315_s2 + $0x30] sm:$0xff] }
 0x275   :  { %v1573_v54 = vpop.xlane.xlu1 %1572  ;;  %v2235_v56 = vmul.f32 %v2171_v46, %v4723_v8  ;;  %v2016_v11 = vadd.f32 %v1921_v44, %v1569_v27  ;;  %v2202_v8 = vld [vmem:[%s6316_s3 + $0x20] sm:$0xff] }
 0x276   :  { %v2079_v59 = vadd.f32 1e-05, %v2047_v48  ;;  %v2234_v47 = vmul.f32 %v2170_v58, %v4705_v49 }
 0x277   :  { %v2267_v60 = vsub.f32 %v2203_v53, %v2235_v56  ;;  %v2048_v27 = vmul.f32 0.0025510204, %v2016_v11 }
 0x278   :  { %3405 = vrsqrt.f32 %v2079_v59  ;;  %v1577_v61 = vpop.xlane.xlu0 %1576  ;;  %2380 = vperm.xlu1 %3388, %v2170_v58   ;;  %v2266_v35 = vsub.f32 %v2202_v8, %v2234_v47  ;;  %v2207_v58 = vld [vmem:[%s6316_s3 + $0x48] sm:$0xff]  ;;  %v2142_v47 = vld [vmem:[%s6315_s2 + $0x40] sm:$0xff] }
 0x279   :  { %2673 = vperm.xlu0 %3387, %v2267_v60   ;;  %v1925_v16 = vpop.xlane.xlu1 %1924  ;;  %3407 = vrsqrt.f32 %v2078_v1  ;;  %v2080_v29 = vadd.f32 1e-05, %v2048_v27 }
 0x27a   :  { %v3402_v6 = vpop.eup %3401  ;;  %v2017_v34 = vadd.f32 %v1925_v16, %v1573_v54 }
 0x27b   :  { %v2173_v20 = vmul.f32 %v3402_v6, %v2141_v63  ;;  %v3404_v49 = vpop.eup %3403 }
 0x27c   :  { %v2049_v2 = vmul.f32 0.0025510204, %v2017_v34  ;;  %v1929_v24 = vpop.xlane.xlu0 %1928  ;;  %2385 = vperm.xlu1 %3388, %v2171_v46   ;;  %v2143_v46 = vld [vmem:[%s6315_s2 + $0x48] sm:$0xff]  ;;  %v2172_v50 = vmul.f32 %v3404_v49, %v2140_v45  ;;  %v2204_v34 = vld [vmem:[%s6316_s3 + $0x30] sm:$0xff] }
 0x27d   :  { %v1581_v9 = vpop.xlane.xlu1 %1580  ;;  %v2237_v36 = vmul.f32 %v2173_v20, %v4763_v57  ;;  %v2018_v48 = vadd.f32 %v1929_v24, %v1577_v61 }
 0x27e   :  { %v2081_v40 = vadd.f32 1e-05, %v2049_v2  ;;  %v2236_v11 = vmul.f32 %v2172_v50, %v4742_v28 }
 0x27f   :  { %v2269_v41 = vsub.f32 %v2205_v25, %v2237_v36  ;;  %v2050_v60 = vmul.f32 0.0025510204, %v2018_v48 }
 0x280   :  { %3409 = vrsqrt.f32 %v2081_v40  ;;  %v1585_v10 = vpop.xlane.xlu0 %1584  ;;  %2668 = vperm.xlu1 %3388, %v2266_v35  }
 0x281   :  { %2683 = vperm.xlu0 %3387, %v2269_v41   ;;  %v1933_v44 = vpop.xlane.xlu1 %1932  ;;  %3411 = vrsqrt.f32 %v2080_v29  ;;  %v2082_v2 = vadd.f32 1e-05, %v2050_v60 }
 0x282   :  { %v3406_v57 = vpop.eup %3405  ;;  %v2019_v53 = vadd.f32 %v1933_v44, %v1581_v9  ;;  %v2268_v9 = vsub.f32 %v2204_v34, %v2236_v11 }
 0x283   :  { %v2175_v54 = vmul.f32 %v3406_v57, %v2143_v46  ;;  %v3408_v16 = vpop.eup %3407  ;;  %v2206_v57 = vld [vmem:[%s6316_s3 + $0x40] sm:$0xff] }
 0x284   :  { %v2051_v56 = vmul.f32 0.0025510204, %v2019_v53  ;;  %v1937_v59 = vpop.xlane.xlu0 %1936  ;;  %2390 = vperm.xlu1 %3388, %v2172_v50   ;;  %v2174_v36 = vmul.f32 %v3408_v16, %v2142_v47  ;;  %v2144_v53 = vld [vmem:[%s6315_s2 + $0x50] sm:$0xff]  ;;  %v2211_v16 = vld [vmem:[%s6316_s3 + $0x68] sm:$0xff] }
 0x285   :  { %2405 = vperm.xlu0 %3387, %v2175_v54   ;;  %v1589_v63 = vpop.xlane.xlu1 %1588  ;;  %v2239_v1 = vmul.f32 %v2175_v54, %v4803_v42  ;;  %v2145_v42 = vld [vmem:[%s6315_s2 + $0x58] sm:$0xff]  ;;  %v2020_v24 = vadd.f32 %v1937_v59, %v1585_v10 }
 0x286   :  { %v2083_v61 = vadd.f32 1e-05, %v2051_v56  ;;  %v2238_v29 = vmul.f32 %v2174_v36, %v4782_v13 }
 0x287   :  { %v2271_v6 = vsub.f32 %v2207_v58, %v2239_v1  ;;  %v2052_v41 = vmul.f32 0.0025510204, %v2020_v24 }
 0x288   :  { %3413 = vrsqrt.f32 %v2083_v61  ;;  %v1593_v8 = vpop.xlane.xlu0 %1592  ;;  %2395 = vperm.xlu1 %3388, %v2173_v20   ;;  %v2209_v20 = vld [vmem:[%s6316_s3 + $0x58] sm:$0xff]  ;;  %v2270_v60 = vsub.f32 %v2206_v57, %v2238_v29 }
 0x289   :  { %2693 = vperm.xlu0 %3387, %v2271_v6   ;;  %v1941_v28 = vpop.xlane.xlu1 %1940  ;;  %3415 = vrsqrt.f32 %v2082_v2  ;;  %v2084_v54 = vadd.f32 1e-05, %v2052_v41 }
 0x28a   :  { %v3410_v25 = vpop.eup %3409  ;;  %v2021_v27 = vadd.f32 %v1941_v28, %v1589_v63  ;;  %v2208_v28 = vld [vmem:[%s6316_s3 + $0x50] sm:$0xff] }
 0x28b   :  { %v2177_v40 = vmul.f32 %v3410_v25, %v2145_v42  ;;  %v3412_v48 = vpop.eup %3411  ;;  %v2146_v25 = vld [vmem:[%s6315_s2 + $0x60] sm:$0xff] }
 0x28c   :  { %v2053_v35 = vmul.f32 0.0025510204, %v2021_v27  ;;  %v1945_v49 = vpop.xlane.xlu0 %1944  ;;  %2678 = vperm.xlu1 %3388, %v2268_v9   ;;  %v2176_v63 = vmul.f32 %v3412_v48, %v2144_v53 }
 0x28d   :  { %2415 = vperm.xlu0 %3387, %v2177_v40   ;;  %v1597_v45 = vpop.xlane.xlu1 %1596  ;;  %v2241_v10 = vmul.f32 %v2177_v40, %v4843_v30  ;;  %v2147_v30 = vld [vmem:[%s6315_s2 + $0x68] sm:$0xff]  ;;  %v2022_v56 = vadd.f32 %v1945_v49, %v1593_v8 }
 0x28e   :  { %v2085_v46 = vadd.f32 1e-05, %v2053_v35  ;;  %v2240_v42 = vmul.f32 %v2176_v63, %v4822_v26 }
 0x28f   :  { %v2273_v44 = vsub.f32 %v2209_v20, %v2241_v10  ;;  %v2054_v6 = vmul.f32 0.0025510204, %v2022_v56  ;;  %v2148_v56 = vld [vmem:[%s6315_s2 + $0x70] sm:$0xff] }
 0x290   :  { %3417 = vrsqrt.f32 %v2085_v46  ;;  %v1601_v50 = vpop.xlane.xlu0 %1600  ;;  %2400 = vperm.xlu1 %3388, %v2174_v36   ;;  %v2272_v49 = vsub.f32 %v2208_v28, %v2240_v42  ;;  %v2213_v46 = vld [vmem:[%s6316_s3 + $0x78] sm:$0xff] }
 0x291   :  { %2703 = vperm.xlu0 %3387, %v2273_v44   ;;  %v1949_v13 = vpop.xlane.xlu1 %1948  ;;  %3419 = vrsqrt.f32 %v2084_v54  ;;  %v2086_v9 = vadd.f32 1e-05, %v2054_v6  ;;  %v2210_v54 = vld [vmem:[%s6316_s3 + $0x60] sm:$0xff] }
 0x292   :  { %v3414_v59 = vpop.eup %3413  ;;  %v2023_v58 = vadd.f32 %v1949_v13, %v1597_v45 }
 0x293   :  { %v2179_v1 = vmul.f32 %v3414_v59, %v2147_v30  ;;  %v3416_v2 = vpop.eup %3415 }
 0x294   :  { %v2055_v61 = vmul.f32 0.0025510204, %v2023_v58  ;;  %v1953_v11 = vpop.xlane.xlu0 %1952  ;;  %2688 = vperm.xlu1 %3388, %v2270_v60   ;;  %v2178_v20 = vmul.f32 %v3416_v2, %v2146_v25 }
 0x295   :  { %2425 = vperm.xlu0 %3387, %v2179_v1   ;;  %v1605_v34 = vpop.xlane.xlu1 %1604  ;;  %v2243_v47 = vmul.f32 %v2179_v1, %v4883_v21  ;;  %v2149_v21 = vld [vmem:[%s6315_s2 + $0x78] sm:$0xff]  ;;  %v2024_v36 = vadd.f32 %v1953_v11, %v1601_v50 }
 0x296   :  { %v2087_v8 = vadd.f32 1e-05, %v2055_v61  ;;  %v2242_v53 = vmul.f32 %v2178_v20, %v4862_v52 }
 0x297   :  { %v2275_v24 = vsub.f32 %v2211_v16, %v2243_v47  ;;  %v2056_v29 = vmul.f32 0.0025510204, %v2024_v36 }
 0x298   :  { %3421 = vrsqrt.f32 %v2087_v8  ;;  %v1609_v27 = vpop.xlane.xlu0 %1608  ;;  %2410 = vperm.xlu1 %3388, %v2176_v63   ;;  %v2274_v1 = vsub.f32 %v2210_v54, %v2242_v53  ;;  %v2214_v54 = vld [vmem:[%s6316_s3 + $0x80] sm:$0xff] }
 0x299   :  { %2713 = vperm.xlu0 %3387, %v2275_v24   ;;  %v1957_v26 = vpop.xlane.xlu1 %1956  ;;  %3423 = vrsqrt.f32 %v2086_v9  ;;  %v2088_v59 = vadd.f32 1e-05, %v2056_v29 }
 0x29a   :  { %v3418_v40 = vpop.eup %3417  ;;  %v2025_v35 = vadd.f32 %v1957_v26, %v1605_v34  ;;  %v2215_v34 = vld [vmem:[%s6316_s3 + $0x88] sm:$0xff] }
 0x29b   :  { %v2181_v41 = vmul.f32 %v3418_v40, %v2149_v21  ;;  %v3420_v50 = vpop.eup %3419  ;;  %v2150_v21 = vld [vmem:[%s6315_s2 + $0x80] sm:$0xff] }
 0x29c   :  { %v2057_v45 = vmul.f32 0.0025510204, %v2025_v35  ;;  %v1961_v10 = vpop.xlane.xlu0 %1960  ;;  %2698 = vperm.xlu1 %3388, %v2272_v49   ;;  %v2180_v61 = vmul.f32 %v3420_v50, %v2148_v56  ;;  %v2152_v56 = vld [vmem:[%s6315_s2 + $0x90] sm:$0xff] }
 0x29d   :  { %2435 = vperm.xlu0 %3387, %v2181_v41   ;;  %v1613_v48 = vpop.xlane.xlu1 %1612  ;;  %v2245_v44 = vmul.f32 %v2181_v41, %v4923_v14  ;;  %v2151_v14 = vld [vmem:[%s6315_s2 + $0x88] sm:$0xff]  ;;  %v2026_v58 = vadd.f32 %v1961_v10, %v1609_v27  ;;  %v2212_v27 = vld [vmem:[%s6316_s3 + $0x70] sm:$0xff] }
 0x29e   :  { %v2089_v57 = vadd.f32 1e-05, %v2057_v45  ;;  %v2244_v24 = vmul.f32 %v2180_v61, %v4902_v43 }
 0x29f   :  { %v2277_v30 = vsub.f32 %v2213_v46, %v2245_v44  ;;  %v2058_v47 = vmul.f32 0.0025510204, %v2026_v58  ;;  %v2217_v46 = vld [vmem:[%s6316_s3 + $0x98] sm:$0xff] }
 0x2a0   :  { %3425 = vrsqrt.f32 %v2089_v57  ;;  %v1617_v13 = vpop.xlane.xlu0 %1616  ;;  %2420 = vperm.xlu1 %3388, %v2178_v20   ;;  %v2276_v49 = vsub.f32 %v2212_v27, %v2244_v24 }
 0x2a1   :  { %2723 = vperm.xlu0 %3387, %v2277_v30   ;;  %v1965_v52 = vpop.xlane.xlu1 %1964  ;;  %3427 = vrsqrt.f32 %v2088_v59  ;;  %v2090_v36 = vadd.f32 1e-05, %v2058_v47 }
 0x2a2   :  { %v3422_v60 = vpop.eup %3421  ;;  %v2027_v63 = vadd.f32 %v1965_v52, %v1613_v48 }
 0x2a3   :  { %v2183_v11 = vmul.f32 %v3422_v60, %v2151_v14  ;;  %v3424_v28 = vpop.eup %3423 }
 0x2a4   :  { %v2059_v16 = vmul.f32 0.0025510204, %v2027_v63  ;;  %v1969_v6 = vpop.xlane.xlu0 %1968  ;;  %2708 = vperm.xlu1 %3388, %v2274_v1   ;;  %v2182_v20 = vmul.f32 %v3424_v28, %v2150_v21  ;;  %v2216_v28 = vld [vmem:[%s6316_s3 + $0x90] sm:$0xff] }
 0x2a5   :  { %2445 = vperm.xlu0 %3387, %v2183_v11   ;;  %v1621_v8 = vpop.xlane.xlu1 %1620  ;;  %v2247_v42 = vmul.f32 %v2183_v11, %v4963_v5  ;;  %v2153_v5 = vld [vmem:[%s6315_s2 + $0x98] sm:$0xff]  ;;  %v2028_v26 = vadd.f32 %v1969_v6, %v1617_v13 }
 0x2a6   :  { %v2091_v2 = vadd.f32 1e-05, %v2059_v16  ;;  %v2246_v53 = vmul.f32 %v2182_v20, %v4942_v38  ;;  %v2219_v16 = vld [vmem:[%s6316_s3 + $0xa8] sm:$0xff] }
 0x2a7   :  { %v2279_v25 = vsub.f32 %v2215_v34, %v2247_v42  ;;  %v2060_v29 = vmul.f32 0.0025510204, %v2028_v26 }
 0x2a8   :  { %3429 = vrsqrt.f32 %v2091_v2  ;;  %v1625_v9 = vpop.xlane.xlu0 %1624  ;;  %2430 = vperm.xlu1 %3388, %v2180_v61   ;;  %v2278_v60 = vsub.f32 %v2214_v54, %v2246_v53  ;;  %v2156_v53 = vld [vmem:[%s6315_s2 + $0xb0] sm:$0xff] }
 0x2a9   :  { %2733 = vperm.xlu0 %3387, %v2279_v25   ;;  %v1973_v43 = vpop.xlane.xlu1 %1972  ;;  %3431 = vrsqrt.f32 %v2090_v36  ;;  %v2092_v14 = vadd.f32 1e-05, %v2060_v29  ;;  %v2154_v25 = vld [vmem:[%s6315_s2 + $0xa0] sm:$0xff] }
 0x2aa   :  { %v3426_v40 = vpop.eup %3425  ;;  %v2029_v35 = vadd.f32 %v1973_v43, %v1621_v8 }
 0x2ab   :  { %v2185_v41 = vmul.f32 %v3426_v40, %v2153_v5  ;;  %v3428_v50 = vpop.eup %3427 }
 0x2ac   :  { %v2061_v45 = vmul.f32 0.0025510204, %v2029_v35  ;;  %v1977_v10 = vpop.xlane.xlu0 %1976  ;;  %2718 = vperm.xlu1 %3388, %v2276_v49   ;;  %v2184_v63 = vmul.f32 %v3428_v50, %v2152_v56 }
 0x2ad   :  { %2455 = vperm.xlu0 %3387, %v2185_v41   ;;  %v1629_v48 = vpop.xlane.xlu1 %1628  ;;  %v2249_v44 = vmul.f32 %v2185_v41, %v5003_v3  ;;  %v2155_v3 = vld [vmem:[%s6315_s2 + $0xa8] sm:$0xff]  ;;  %v2030_v59 = vadd.f32 %v1977_v10, %v1625_v9 }
 0x2ae   :  { %v2093_v57 = vadd.f32 1e-05, %v2061_v45  ;;  %v2248_v42 = vmul.f32 %v2184_v63, %v4982_v33 }
 0x2af   :  { %v2281_v30 = vsub.f32 %v2217_v46, %v2249_v44  ;;  %v2062_v6 = vmul.f32 0.0025510204, %v2030_v59 }
 0x2b0   :  { %3433 = vrsqrt.f32 %v2093_v57  ;;  %v1633_v13 = vpop.xlane.xlu0 %1632  ;;  %2440 = vperm.xlu1 %3388, %v2182_v20   ;;  %v2280_v26 = vsub.f32 %v2216_v28, %v2248_v42  ;;  %v2221_v20 = vld [vmem:[%s6316_s3 + $0xb8] sm:$0xff]  ;;  %v2218_v57 = vld [vmem:[%s6316_s3 + $0xa0] sm:$0xff] }
 0x2b1   :  { %2743 = vperm.xlu0 %3387, %v2281_v30   ;;  %v1981_v38 = vpop.xlane.xlu1 %1980  ;;  %3435 = vrsqrt.f32 %v2092_v14  ;;  %v2094_v21 = vadd.f32 1e-05, %v2062_v6 }
 0x2b2   :  { %v3430_v58 = vpop.eup %3429  ;;  %v2031_v52 = vadd.f32 %v1981_v38, %v1629_v48 }
 0x2b3   :  { %v2187_v1 = vmul.f32 %v3430_v58, %v2155_v3  ;;  %v3432_v2 = vpop.eup %3431  ;;  %v2223_v58 = vld [vmem:[%s6316_s3 + $0xc8] sm:$0xff] }
 0x2b4   :  { %v2063_v61 = vmul.f32 0.0025510204, %v2031_v52  ;;  %v1985_v11 = vpop.xlane.xlu0 %1984  ;;  %2728 = vperm.xlu1 %3388, %v2278_v60   ;;  %v2186_v43 = vmul.f32 %v3432_v2, %v2154_v25 }
 0x2b5   :  { %2465 = vperm.xlu0 %3387, %v2187_v1   ;;  %v1637_v34 = vpop.xlane.xlu1 %1636  ;;  %v2251_v47 = vmul.f32 %v2187_v1, %v5043_v4  ;;  %v2157_v4 = vld [vmem:[%s6315_s2 + $0xb8] sm:$0xff]  ;;  %v2032_v9 = vadd.f32 %v1985_v11, %v1633_v13 }
 0x2b6   :  { %v2095_v8 = vadd.f32 1e-05, %v2063_v61  ;;  %v2250_v29 = vmul.f32 %v2186_v43, %v5022_v32 }
 0x2b7   :  { %v2283_v24 = vsub.f32 %v2219_v16, %v2251_v47  ;;  %v2064_v41 = vmul.f32 0.0025510204, %v2032_v9  ;;  %v2158_v47 = vld [vmem:[%s6315_s2 + $0xc0] sm:$0xff]  ;;  %v2225_v9 = vld [vmem:[%s6316_s3 + $0xd8] sm:$0xff] }
 0x2b8   :  { %3437 = vrsqrt.f32 %v2095_v8  ;;  %v1641_v27 = vpop.xlane.xlu0 %1640  ;;  %2450 = vperm.xlu1 %3388, %v2184_v63   ;;  %v2282_v3 = vsub.f32 %v2218_v57, %v2250_v29  ;;  %v2224_v57 = vld [vmem:[%s6316_s3 + $0xd0] sm:$0xff] }
 0x2b9   :  { %2753 = vperm.xlu0 %3387, %v2283_v24   ;;  %v1989_v33 = vpop.xlane.xlu1 %1988  ;;  %3439 = vrsqrt.f32 %v2094_v21  ;;  %v2096_v30 = vadd.f32 1e-05, %v2064_v41 }
 0x2ba   :  { %v3434_v5 = vpop.eup %3433  ;;  %v2033_v36 = vadd.f32 %v1989_v33, %v1637_v34  ;;  %v2220_v34 = vld [vmem:[%s6316_s3 + $0xb0] sm:$0xff] }
 0x2bb   :  { %v2189_v40 = vmul.f32 %v3434_v5, %v2157_v4  ;;  %v3436_v48 = vpop.eup %3435 }
 0x2bc   :  { %v2065_v35 = vmul.f32 0.0025510204, %v2033_v36  ;;  %v1993_v49 = vpop.xlane.xlu0 %1992  ;;  %2738 = vperm.xlu1 %3388, %v2280_v26   ;;  %v2188_v14 = vmul.f32 %v3436_v48, %v2156_v53  ;;  %v2162_v53 = vld [vmem:[%s6315_s2 + $0xe0] sm:$0xff] }
 0x2bd   :  { %2475 = vperm.xlu0 %3387, %v2189_v40   ;;  %v1645_v45 = vpop.xlane.xlu1 %1644  ;;  %v2253_v10 = vmul.f32 %v2189_v40, %v5083_v12  ;;  %v2159_v12 = vld [vmem:[%s6315_s2 + $0xc8] sm:$0xff]  ;;  %v2034_v54 = vadd.f32 %v1993_v49, %v1641_v27  ;;  %v2222_v40 = vld [vmem:[%s6316_s3 + $0xc0] sm:$0xff] }
 0x2be   :  { %v2097_v46 = vadd.f32 1e-05, %v2065_v35  ;;  %v2252_v11 = vmul.f32 %v2188_v14, %v5062_v37  ;;  %v2160_v35 = vld [vmem:[%s6315_s2 + $0xd0] sm:$0xff] }
 0x2bf   :  { %v2285_v44 = vsub.f32 %v2221_v20, %v2253_v10  ;;  %v2066_v52 = vmul.f32 0.0025510204, %v2034_v54  ;;  %v2227_v10 = vld [vmem:[%s6316_s3 + $0xe8] sm:$0xff]  ;;  %v2229_v54 = vld [vmem:[%s6316_s3 + $0xf8] sm:$0xff] }
 0x2c0   :  { %3441 = vrsqrt.f32 %v2097_v46  ;;  %v1649_v50 = vpop.xlane.xlu0 %1648  ;;  %2460 = vperm.xlu1 %3388, %v2186_v43   ;;  %v2284_v28 = vsub.f32 %v2220_v34, %v2252_v11 }
 0x2c1   :  { %2763 = vperm.xlu0 %3387, %v2285_v44   ;;  %v1997_v32 = vpop.xlane.xlu1 %1996  ;;  %3443 = vrsqrt.f32 %v2096_v30  ;;  %v2098_v42 = vadd.f32 1e-05, %v2066_v52 }
 0x2c2   :  { %v3438_v56 = vpop.eup %3437  ;;  %v2035_v13 = vadd.f32 %v1997_v32, %v1645_v45 }
 0x2c3   :  { %v2191_v59 = vmul.f32 %v3438_v56, %v2159_v12  ;;  %v3440_v16 = vpop.eup %3439 }
 0x2c4   :  { %v2067_v38 = vmul.f32 0.0025510204, %v2035_v13  ;;  %2748 = vperm.xlu1 %3388, %v2282_v3   ;;  %v2001_v60 = vpop.xlane.xlu0 %2000  ;;  %v2190_v25 = vmul.f32 %v3440_v16, %v2158_v47  ;;  %v2164_v3 = vld [vmem:[%s6315_s2 + $0xf0] sm:$0xff]  ;;  %v3453_v16 = vld [vmem:[%s6314_s4 + $0x18] sm:$0xff] }
 0x2c5   :  { %2485 = vperm.xlu0 %3387, %v2191_v59   ;;  %v1653_v63 = vpop.xlane.xlu1 %1652  ;;  %v2255_v1 = vmul.f32 %v2191_v59, %v5123_v19  ;;  %v2036_v8 = vadd.f32 %v2001_v60, %v1649_v50  ;;  %v2161_v19 = vld [vmem:[%s6315_s2 + $0xd8] sm:$0xff]  ;;  %v2226_v59 = vld [vmem:[%s6316_s3 + $0xe0] sm:$0xff] }
 0x2c6   :  { %v2099_v61 = vadd.f32 1e-05, %v2067_v38  ;;  %v2254_v36 = vmul.f32 %v2190_v25, %v5102_v18  ;;  %v2165_v50 = vld [vmem:[%s6315_s2 + $0xf8] sm:$0xff] }
 0x2c7   :  { %v2287_v6 = vsub.f32 %v2223_v58, %v2255_v1  ;;  %v2068_v4 = vmul.f32 0.0025510204, %v2036_v8  ;;  %v2294_v1 = vld [vmem:[%s6314_s4 + $0x200] sm:$0xff] }
 0x2c8   :  { %3445 = vrsqrt.f32 %v2099_v61  ;;  %2470 = vperm.xlu1 %3388, %v2188_v14   ;;  %v2286_v18 = vsub.f32 %v2222_v40, %v2254_v36  ;;  %v2295_v61 = vld [vmem:[%s6314_s4 + $0x208] sm:$0xff] }
 0x2c9   :  { %2773 = vperm.xlu0 %3387, %v2287_v6   ;;  %v2005_v37 = vpop.xlane.xlu1 %2004  ;;  %3447 = vrsqrt.f32 %v2098_v42  ;;  %v2100_v49 = vadd.f32 1e-05, %v2068_v4 }
 0x2ca   :  { %v3442_v2 = vpop.eup %3441  ;;  %v2037_v24 = vadd.f32 %v2005_v37, %v1653_v63 }
 0x2cb   :  { %v2193_v27 = vmul.f32 %v3442_v2, %v2161_v19  ;;  %v3444_v26 = vpop.eup %3443 }
 0x2cc   :  { %v2069_v21 = vmul.f32 0.0025510204, %v2037_v24  ;;  %2758 = vperm.xlu1 %3388, %v2284_v28   ;;  %v2192_v41 = vmul.f32 %v3444_v26, %v2160_v35  ;;  %v2300_v26 = vld [vmem:[%s6314_s4 + $0x230] sm:$0xff]  ;;  %v2298_v35 = vld [vmem:[%s6314_s4 + $0x220] sm:$0xff] }
 0x2cd   :  { %2495 = vperm.xlu0 %3387, %v2193_v27   ;;  %v2257_v33 = vmul.f32 %v2193_v27, %v5163_v39  ;;  %v2163_v39 = vld [vmem:[%s6315_s2 + $0xe8] sm:$0xff] }
 0x2ce   :  { %v2101_v5 = vadd.f32 1e-05, %v2069_v21  ;;  %v2256_v29 = vmul.f32 %v2192_v41, %v5142_v51 }
 0x2cf   :  { %v2289_v43 = vsub.f32 %v2225_v9, %v2257_v33 }
 0x2d0   :  { %3449 = vrsqrt.f32 %v2101_v5  ;;  %2480 = vperm.xlu1 %3388, %v2190_v25  }
 0x2d1   :  { %2783 = vperm.xlu0 %3387, %v2289_v43   ;;  %3451 = vrsqrt.f32 %v2100_v49  ;;  %v2301_v43 = vld [vmem:[%s6314_s4 + $0x238] sm:$0xff]  ;;  %v2299_v49 = vld [vmem:[%s6314_s4 + $0x228] sm:$0xff] }
 0x2d2   :  { %v3446_v20 = vpop.eup %3445 }
 0x2d3   :  { %v2195_v45 = vmul.f32 %v3446_v20, %v2163_v39  ;;  %v3448_v48 = vpop.eup %3447  ;;  %v3455_v20 = vld [vmem:[%s6314_s4 + $0x38] sm:$0xff] }
 0x2d4   :  { %2768 = vperm.xlu1 %3388, %v2286_v18   ;;  %v2194_v30 = vmul.f32 %v3448_v48, %v2162_v53 }
 0x2d5   :  { %2505 = vperm.xlu0 %3387, %v2195_v45   ;;  %v2259_v46 = vmul.f32 %v2195_v45, %v5203_v55  ;;  %v2288_v55 = vsub.f32 %v2224_v57, %v2256_v29 }
 0x2d6   :  { %v2258_v13 = vmul.f32 %v2194_v30, %v5182_v62  ;;  %v2296_v62 = vld [vmem:[%s6314_s4 + $0x210] sm:$0xff] }
 0x2d7   :  { %v2291_v44 = vsub.f32 %v2227_v10, %v2259_v46  ;;  %v3456_v46 = vld [vmem:[%s6314_s4 + $0x28] sm:$0xff] }
 0x2d8   :  { %2490 = vperm.xlu1 %3388, %v2192_v41   ;;  %v2290_v58 = vsub.f32 %v2226_v59, %v2258_v13  ;;  %v2305_v13 = vld [vmem:[%s6314_s4 + $0x258] sm:$0xff]  ;;  %v2302_v59 = vld [vmem:[%s6314_s4 + $0x240] sm:$0xff] }
 0x2d9   :  { %2793 = vperm.xlu0 %3387, %v2291_v44  }
 0x2da   :  { %v3450_v12 = vpop.eup %3449 }
 0x2db   :  { %v2197_v51 = vmul.f32 %v3450_v12, %v2165_v50  ;;  %v3452_v56 = vpop.eup %3451 }
 0x2dc   :  { %2778 = vperm.xlu1 %3388, %v2288_v55   ;;  %v2196_v38 = vmul.f32 %v3452_v56, %v2164_v3  ;;  %v2304_v56 = vld [vmem:[%s6314_s4 + $0x250] sm:$0xff] }
 0x2dd   :  { %2515 = vperm.xlu0 %3387, %v2197_v51   ;;  %v2261_v32 = vmul.f32 %v2197_v51, %v5243_v17  ;;  %v2297_v17 = vld [vmem:[%s6314_s4 + $0x218] sm:$0xff] }
 0x2de   :  { %v2260_v63 = vmul.f32 %v2196_v38, %v5222_v22  ;;  %v3454_v22 = vld [vmem:[%s6314_s4 + $0x8] sm:$0xff] }
 0x2df   :  { %v2293_v14 = vsub.f32 %v2229_v54, %v2261_v32  ;;  %v2361_v52 = vpop.permute.xlu0 %2360 }
 0x2e0   :  { %2500 = vperm.xlu1 %3388, %v2194_v30   ;;  %v2518_v8 = vmul.f32 %v2361_v52, %v4114_v0  ;;  %v2519_v19 = vmul.f32 %v3454_v22, %v2361_v52  ;;  %v2582_v42 = vmul.f32 %v2361_v52, %v2294_v1  ;;  %v2583_v37 = vmul.f32 %v2361_v52, %v2295_v61  ;;  %v3459_v61 = vld [vmem:[%s6314_s4 + $0x48] sm:$0xff] }
 0x2e1   :  { %2803 = vperm.xlu0 %3387, %v2293_v14  }
 0x2e3   :  { %v2366_v60 = vpop.permute.xlu1 %2365 }
 0x2e4   :  { %2788 = vperm.xlu1 %3388, %v2290_v58   ;;  %v2520_v11 = vmul.f32 %v2366_v60, %v4133_v7  ;;  %v2521_v6 = vmul.f32 %v3453_v16, %v2366_v60  ;;  %v2584_v34 = vmul.f32 %v2366_v60, %v2296_v62  ;;  %v2585_v47 = vmul.f32 %v2366_v60, %v2297_v17  ;;  %v2228_v7 = vld [vmem:[%s6316_s3 + $0xf0] sm:$0xff]  ;;  %v3458_v60 = vld [vmem:[%s6314_s4 + $0x58] sm:$0xff] }
 0x2e5   :  { %v2292_v5 = vsub.f32 %v2228_v7, %v2260_v63  ;;  %v3457_v58 = vld [vmem:[%s6314_s4 + $0x50] sm:$0xff] }
 0x2e7   :  { %v2654_v2 = vpop.permute.xlu0 %2653  ;;  %v2649_v24 = vpop.permute.xlu1 %2648 }
 0x2e8   :  { %v2808_v28 = vadd.f32 %v2654_v2, %v2520_v11  ;;  %v2809_v25 = vadd.f32 %v2654_v2, %v2521_v6  ;;  %v2872_v27 = vadd.f32 %v2654_v2, %v2584_v34  ;;  %v2873_v4 = vadd.f32 %v2654_v2, %v2585_v47  ;;  %2510 = vperm.xlu1 %3388, %v2196_v38   ;;  %v2303_v38 = vld [vmem:[%s6314_s4 + $0x248] sm:$0xff] }
 0x2e9   :  { %v2806_v21 = vadd.f32 %v2649_v24, %v2518_v8  ;;  %v2807_v0 = vadd.f32 %v2649_v24, %v2519_v19  ;;  %v2870_v9 = vadd.f32 %v2649_v24, %v2582_v42  ;;  %v2871_v33 = vadd.f32 %v2649_v24, %v2583_v37 }
 0x2ea   :  { %2936 = vst [vmem:[%s6314_s4 + $0x10] sm:$0xff] %v2808_v28  ;;  %2937 = vst.msk [vmem:[%s6314_s4 + $0x18] sm:$0xff] %vm467_vm0, %v2809_v25  ;;  %v2306_v25 = vld [vmem:[%s6314_s4 + $0x260] sm:$0xff] }
 0x2eb   :  { %3000 = vst [vmem:[%s6314_s4 + $0x210] sm:$0xff] %v2872_v27  ;;  %3001 = vst.msk [vmem:[%s6314_s4 + $0x218] sm:$0xff] %vm467_vm0, %v2873_v4  ;;  %v2371_v36 = vpop.permute.xlu1 %2370  ;;  %v2307_v27 = vld [vmem:[%s6314_s4 + $0x268] sm:$0xff]  ;;  %v2312_v4 = vld [vmem:[%s6314_s4 + $0x290] sm:$0xff] }
 0x2ec   :  { %2934 = vst [vmem:[%s6314_s4] sm:$0xff] %v2806_v21  ;;  %2935 = vst.msk [vmem:[%s6314_s4 + $0x8] sm:$0xff] %vm467_vm0, %v2807_v0  ;;  %2798 = vperm.xlu1 %3388, %v2292_v5   ;;  %v2522_v10 = vmul.f32 %v2371_v36, %v4153_v15  ;;  %v2523_v29 = vmul.f32 %v3456_v46, %v2371_v36  ;;  %v2586_v48 = vmul.f32 %v2371_v36, %v2298_v35  ;;  %v2313_v21 = vld [vmem:[%s6314_s4 + $0x298] sm:$0xff]  ;;  %v3460_v0 = vld [vmem:[%s6314_s4 + $0x60] sm:$0xff] }
 0x2ed   :  { %2998 = vst [vmem:[%s6314_s4 + $0x200] sm:$0xff] %v2870_v9  ;;  %2999 = vst.msk [vmem:[%s6314_s4 + $0x208] sm:$0xff] %vm467_vm0, %v2871_v33  ;;  %v2587_v44 = vmul.f32 %v2371_v36, %v2299_v49  ;;  %v3461_v33 = vld [vmem:[%s6314_s4 + $0x68] sm:$0xff]  ;;  %v3463_v35 = vld [vmem:[%s6314_s4 + $0x98] sm:$0xff] }
 0x2ee   :  { %v3464_v46 = vld [vmem:[%s6314_s4 + $0x70] sm:$0xff] }
 0x2ef   :  { %v2376_v40 = vpop.permute.xlu1 %2375 }
 0x2f0   :  { %v2524_v39 = vmul.f32 %v2376_v40, %v4173_v23  ;;  %v2525_v18 = vmul.f32 %v3455_v20, %v2376_v40  ;;  %v2588_v41 = vmul.f32 %v2376_v40, %v2300_v26  ;;  %v2589_v45 = vmul.f32 %v2376_v40, %v2301_v43  ;;  %v2664_v57 = vpop.permute.xlu0 %2663  ;;  %v3462_v43 = vld [vmem:[%s6314_s4 + $0x90] sm:$0xff] }
 0x2f2   :  { %v2812_v53 = vadd.f32 %v2664_v57, %v2524_v39  ;;  %v2813_v50 = vadd.f32 %v2664_v57, %v2525_v18  ;;  %v2876_v23 = vadd.f32 %v2664_v57, %v2588_v41  ;;  %v2877_v12 = vadd.f32 %v2664_v57, %v2589_v45  ;;  %v2308_v18 = vld [vmem:[%s6314_s4 + $0x270] sm:$0xff]  ;;  %v2309_v41 = vld [vmem:[%s6314_s4 + $0x278] sm:$0xff] }
 0x2f3   :  { %v2659_v55 = vpop.permute.xlu1 %2658 }
 0x2f4   :  { %2940 = vst [vmem:[%s6314_s4 + $0x30] sm:$0xff] %v2812_v53  ;;  %2941 = vst.msk [vmem:[%s6314_s4 + $0x38] sm:$0xff] %vm467_vm0, %v2813_v50  ;;  %v2810_v15 = vadd.f32 %v2659_v55, %v2522_v10  ;;  %v2811_v30 = vadd.f32 %v2659_v55, %v2523_v29  ;;  %v2874_v51 = vadd.f32 %v2659_v55, %v2586_v48  ;;  %v3465_v48 = vld [vmem:[%s6314_s4 + $0x78] sm:$0xff] }
 0x2f5   :  { %3004 = vst [vmem:[%s6314_s4 + $0x230] sm:$0xff] %v2876_v23  ;;  %3005 = vst.msk [vmem:[%s6314_s4 + $0x238] sm:$0xff] %vm467_vm0, %v2877_v12  ;;  %v2875_v54 = vadd.f32 %v2659_v55, %v2587_v44 }
 0x2f6   :  { %2938 = vst [vmem:[%s6314_s4 + $0x20] sm:$0xff] %v2810_v15  ;;  %2939 = vst.msk [vmem:[%s6314_s4 + $0x28] sm:$0xff] %vm467_vm0, %v2811_v30 }
 0x2f7   :  { %3002 = vst [vmem:[%s6314_s4 + $0x220] sm:$0xff] %v2874_v51  ;;  %3003 = vst.msk [vmem:[%s6314_s4 + $0x228] sm:$0xff] %vm467_vm0, %v2875_v54  ;;  %v2381_v32 = vpop.permute.xlu1 %2380 }
 0x2f8   :  { %v2674_v14 = vpop.permute.xlu0 %2673  ;;  %v2526_v1 = vmul.f32 %v2381_v32, %v4193_v31  ;;  %v2527_v11 = vmul.f32 %v3459_v61, %v2381_v32  ;;  %v2590_v16 = vmul.f32 %v2381_v32, %v2302_v59  ;;  %v2591_v6 = vmul.f32 %v2381_v32, %v2303_v38  ;;  %v2316_v38 = vld [vmem:[%s6314_s4 + $0x2b0] sm:$0xff] }
 0x2fb   :  { %v2386_v3 = vpop.permute.xlu1 %2385 }
 0x2fc   :  { %v2528_v52 = vmul.f32 %v3457_v58, %v2386_v3  ;;  %v2529_v62 = vmul.f32 %v3458_v60, %v2386_v3  ;;  %v2592_v17 = vmul.f32 %v2386_v3, %v2304_v56  ;;  %v2593_v63 = vmul.f32 %v2386_v3, %v2305_v13  ;;  %v2317_v58 = vld [vmem:[%s6314_s4 + $0x2b8] sm:$0xff] }
 0x2fe   :  { %v2816_v34 = vadd.f32 %v2674_v14, %v2528_v52  ;;  %v2817_v47 = vadd.f32 %v2674_v14, %v2529_v62  ;;  %v2880_v8 = vadd.f32 %v2674_v14, %v2592_v17  ;;  %v2881_v22 = vadd.f32 %v2674_v14, %v2593_v63  ;;  %v3466_v52 = vld [vmem:[%s6314_s4 + $0xb0] sm:$0xff]  ;;  %v3467_v62 = vld [vmem:[%s6314_s4 + $0xb8] sm:$0xff] }
 0x2ff   :  { %v2669_v19 = vpop.permute.xlu1 %2668 }
 0x300   :  { %2944 = vst [vmem:[%s6314_s4 + $0x50] sm:$0xff] %v2816_v34  ;;  %2945 = vst.msk [vmem:[%s6314_s4 + $0x58] sm:$0xff] %vm467_vm0, %v2817_v47  ;;  %v2684_v31 = vpop.permute.xlu0 %2683  ;;  %v2814_v42 = vadd.f32 %v2669_v19, %v2526_v1  ;;  %v2815_v37 = vadd.f32 %v2669_v19, %v2527_v11  ;;  %v2878_v2 = vadd.f32 %v2669_v19, %v2590_v16 }
 0x301   :  { %3008 = vst [vmem:[%s6314_s4 + $0x250] sm:$0xff] %v2880_v8  ;;  %3009 = vst.msk [vmem:[%s6314_s4 + $0x258] sm:$0xff] %vm467_vm0, %v2881_v22  ;;  %v2879_v24 = vadd.f32 %v2669_v19, %v2591_v6  ;;  %v2310_v8 = vld [vmem:[%s6314_s4 + $0x280] sm:$0xff]  ;;  %v2311_v22 = vld [vmem:[%s6314_s4 + $0x288] sm:$0xff] }
 0x302   :  { %2942 = vst [vmem:[%s6314_s4 + $0x40] sm:$0xff] %v2814_v42  ;;  %2943 = vst.msk [vmem:[%s6314_s4 + $0x48] sm:$0xff] %vm467_vm0, %v2815_v37  ;;  %v3468_v19 = vld [vmem:[%s6314_s4 + $0x80] sm:$0xff]  ;;  %v3469_v42 = vld [vmem:[%s6314_s4 + $0x88] sm:$0xff] }
 0x303   :  { %3006 = vst [vmem:[%s6314_s4 + $0x240] sm:$0xff] %v2878_v2  ;;  %3007 = vst.msk [vmem:[%s6314_s4 + $0x248] sm:$0xff] %vm467_vm0, %v2879_v24  ;;  %v2391_v7 = vpop.permute.xlu1 %2390 }
 0x304   :  { %v2406_v28 = vpop.permute.xlu0 %2405  ;;  %v2530_v9 = vmul.f32 %v3460_v0, %v2391_v7  ;;  %v2531_v5 = vmul.f32 %v3461_v33, %v2391_v7  ;;  %v2594_v36 = vmul.f32 %v2391_v7, %v2306_v25  ;;  %v2595_v26 = vmul.f32 %v2391_v7, %v2307_v27  ;;  %v2320_v0 = vld [vmem:[%s6314_s4 + $0x2d0] sm:$0xff] }
 0x305   :  { %v2536_v40 = vmul.f32 %v3462_v43, %v2406_v28  ;;  %v2537_v49 = vmul.f32 %v3463_v35, %v2406_v28  ;;  %v2600_v39 = vmul.f32 %v2406_v28, %v2312_v4  ;;  %v2601_v20 = vmul.f32 %v2406_v28, %v2313_v21  ;;  %v3470_v33 = vld [vmem:[%s6314_s4 + $0xd0] sm:$0xff] }
 0x307   :  { %v2396_v45 = vpop.permute.xlu1 %2395 }
 0x308   :  { %v2694_v10 = vpop.permute.xlu0 %2693  ;;  %v2532_v29 = vmul.f32 %v3464_v46, %v2396_v45  ;;  %v2533_v44 = vmul.f32 %v3465_v48, %v2396_v45  ;;  %v2596_v57 = vmul.f32 %v2396_v45, %v2308_v18  ;;  %v2597_v53 = vmul.f32 %v2396_v45, %v2309_v41  ;;  %v2314_v45 = vld [vmem:[%s6314_s4 + $0x2a0] sm:$0xff]  ;;  %v3473_v48 = vld [vmem:[%s6314_s4 + $0xa8] sm:$0xff] }
 0x309   :  { %v2824_v50 = vadd.f32 %v2694_v10, %v2536_v40  ;;  %v2825_v23 = vadd.f32 %v2694_v10, %v2537_v49  ;;  %v2888_v12 = vadd.f32 %v2694_v10, %v2600_v39  ;;  %v2889_v55 = vadd.f32 %v2694_v10, %v2601_v20  ;;  %v2315_v10 = vld [vmem:[%s6314_s4 + $0x2a8] sm:$0xff]  ;;  %v3472_v46 = vld [vmem:[%s6314_s4 + $0xa0] sm:$0xff] }
 0x30a   :  { %v2820_v15 = vadd.f32 %v2684_v31, %v2532_v29  ;;  %v2821_v30 = vadd.f32 %v2684_v31, %v2533_v44  ;;  %v2884_v51 = vadd.f32 %v2684_v31, %v2596_v57  ;;  %v2885_v54 = vadd.f32 %v2684_v31, %v2597_v53 }
 0x30b   :  { %2952 = vst [vmem:[%s6314_s4 + $0x90] sm:$0xff] %v2824_v50  ;;  %2953 = vst.msk [vmem:[%s6314_s4 + $0x98] sm:$0xff] %vm467_vm0, %v2825_v23  ;;  %v2679_v32 = vpop.permute.xlu1 %2678 }
 0x30c   :  { %3016 = vst [vmem:[%s6314_s4 + $0x290] sm:$0xff] %v2888_v12  ;;  %3017 = vst.msk [vmem:[%s6314_s4 + $0x298] sm:$0xff] %vm467_vm0, %v2889_v55  ;;  %v2416_v56 = vpop.permute.xlu0 %2415  ;;  %v2818_v13 = vadd.f32 %v2679_v32, %v2530_v9  ;;  %v2819_v3 = vadd.f32 %v2679_v32, %v2531_v5  ;;  %v2882_v14 = vadd.f32 %v2679_v32, %v2594_v36  ;;  %v2321_v9 = vld [vmem:[%s6314_s4 + $0x2d8] sm:$0xff] }
 0x30d   :  { %2948 = vst [vmem:[%s6314_s4 + $0x70] sm:$0xff] %v2820_v15  ;;  %2949 = vst.msk [vmem:[%s6314_s4 + $0x78] sm:$0xff] %vm467_vm0, %v2821_v30  ;;  %v2883_v59 = vadd.f32 %v2679_v32, %v2595_v26  ;;  %v2540_v60 = vmul.f32 %v3466_v52, %v2416_v56  ;;  %v2541_v17 = vmul.f32 %v3467_v62, %v2416_v56  ;;  %v3471_v36 = vld [vmem:[%s6314_s4 + $0xd8] sm:$0xff]  ;;  %v3474_v32 = vld [vmem:[%s6314_s4 + $0xf0] sm:$0xff] }
 0x30e   :  { %3012 = vst [vmem:[%s6314_s4 + $0x270] sm:$0xff] %v2884_v51  ;;  %3013 = vst.msk [vmem:[%s6314_s4 + $0x278] sm:$0xff] %vm467_vm0, %v2885_v54  ;;  %v2604_v63 = vmul.f32 %v2416_v56, %v2316_v38  ;;  %v2605_v1 = vmul.f32 %v2416_v56, %v2317_v58  ;;  %v2324_v51 = vld [vmem:[%s6314_s4 + $0x2f0] sm:$0xff]  ;;  %v2325_v54 = vld [vmem:[%s6314_s4 + $0x2f8] sm:$0xff] }
 0x30f   :  { %2946 = vst [vmem:[%s6314_s4 + $0x60] sm:$0xff] %v2818_v13  ;;  %2947 = vst.msk [vmem:[%s6314_s4 + $0x68] sm:$0xff] %vm467_vm0, %v2819_v3  ;;  %v2401_v61 = vpop.permute.xlu1 %2400  ;;  %v3475_v13 = vld [vmem:[%s6314_s4 + $0xf8] sm:$0xff] }
 0x310   :  { %3010 = vst [vmem:[%s6314_s4 + $0x260] sm:$0xff] %v2882_v14  ;;  %3011 = vst.msk [vmem:[%s6314_s4 + $0x268] sm:$0xff] %vm467_vm0, %v2883_v59  ;;  %v2704_v11 = vpop.permute.xlu0 %2703  ;;  %v2534_v31 = vmul.f32 %v3468_v19, %v2401_v61  ;;  %v2535_v37 = vmul.f32 %v3469_v42, %v2401_v61  ;;  %v2598_v2 = vmul.f32 %v2401_v61, %v2310_v8 }
 0x311   :  { %v2828_v16 = vadd.f32 %v2704_v11, %v2540_v60  ;;  %v2829_v6 = vadd.f32 %v2704_v11, %v2541_v17  ;;  %v2892_v34 = vadd.f32 %v2704_v11, %v2604_v63  ;;  %v2893_v47 = vadd.f32 %v2704_v11, %v2605_v1  ;;  %v2318_v63 = vld [vmem:[%s6314_s4 + $0x2c0] sm:$0xff]  ;;  %v2319_v1 = vld [vmem:[%s6314_s4 + $0x2c8] sm:$0xff] }
 0x312   :  { %v2599_v24 = vmul.f32 %v2401_v61, %v2311_v22  ;;  %v3476_v61 = vld [vmem:[%s6314_s4 + $0xc0] sm:$0xff] }
 0x313   :  { %2956 = vst [vmem:[%s6314_s4 + $0xb0] sm:$0xff] %v2828_v16  ;;  %2957 = vst.msk [vmem:[%s6314_s4 + $0xb8] sm:$0xff] %vm467_vm0, %v2829_v6  ;;  %v2689_v7 = vpop.permute.xlu1 %2688  ;;  %v3477_v16 = vld [vmem:[%s6314_s4 + $0xc8] sm:$0xff] }
 0x314   :  { %3020 = vst [vmem:[%s6314_s4 + $0x2b0] sm:$0xff] %v2892_v34  ;;  %3021 = vst.msk [vmem:[%s6314_s4 + $0x2b8] sm:$0xff] %vm467_vm0, %v2893_v47  ;;  %v2426_v28 = vpop.permute.xlu0 %2425  ;;  %v2822_v25 = vadd.f32 %v2689_v7, %v2534_v31  ;;  %v2823_v27 = vadd.f32 %v2689_v7, %v2535_v37  ;;  %v2886_v4 = vadd.f32 %v2689_v7, %v2598_v2  ;;  %v2328_v2 = vld [vmem:[%s6314_s4 + $0x310] sm:$0xff] }
 0x315   :  { %v2887_v21 = vadd.f32 %v2689_v7, %v2599_v24  ;;  %v2544_v5 = vmul.f32 %v3470_v33, %v2426_v28  ;;  %v2545_v26 = vmul.f32 %v3471_v36, %v2426_v28  ;;  %v2608_v43 = vmul.f32 %v2426_v28, %v2320_v0  ;;  %v2329_v24 = vld [vmem:[%s6314_s4 + $0x318] sm:$0xff]  ;;  %v3478_v7 = vld [vmem:[%s6314_s4 + $0x110] sm:$0xff] }
 0x316   :  { %2950 = vst [vmem:[%s6314_s4 + $0x80] sm:$0xff] %v2822_v25  ;;  %2951 = vst.msk [vmem:[%s6314_s4 + $0x88] sm:$0xff] %vm467_vm0, %v2823_v27  ;;  %v2609_v40 = vmul.f32 %v2426_v28, %v2321_v9  ;;  %v3479_v25 = vld [vmem:[%s6314_s4 + $0x118] sm:$0xff] }
 0x317   :  { %3014 = vst [vmem:[%s6314_s4 + $0x280] sm:$0xff] %v2886_v4  ;;  %3015 = vst.msk [vmem:[%s6314_s4 + $0x288] sm:$0xff] %vm467_vm0, %v2887_v21  ;;  %v2411_v35 = vpop.permute.xlu1 %2410 }
 0x318   :  { %v2714_v49 = vpop.permute.xlu0 %2713  ;;  %v2538_v29 = vmul.f32 %v3472_v46, %v2411_v35  ;;  %v2539_v44 = vmul.f32 %v3473_v48, %v2411_v35  ;;  %v2602_v57 = vmul.f32 %v2411_v35, %v2314_v45  ;;  %v2603_v53 = vmul.f32 %v2411_v35, %v2315_v10  ;;  %v3480_v35 = vld [vmem:[%s6314_s4 + $0xe0] sm:$0xff] }
 0x319   :  { %v2832_v39 = vadd.f32 %v2714_v49, %v2544_v5  ;;  %v2833_v20 = vadd.f32 %v2714_v49, %v2545_v26  ;;  %v2896_v18 = vadd.f32 %v2714_v49, %v2608_v43  ;;  %v2897_v41 = vadd.f32 %v2714_v49, %v2609_v40  ;;  %v2322_v43 = vld [vmem:[%s6314_s4 + $0x2e0] sm:$0xff]  ;;  %v2323_v40 = vld [vmem:[%s6314_s4 + $0x2e8] sm:$0xff] }
 0x31b   :  { %2960 = vst [vmem:[%s6314_s4 + $0xd0] sm:$0xff] %v2832_v39  ;;  %2961 = vst.msk [vmem:[%s6314_s4 + $0xd8] sm:$0xff] %vm467_vm0, %v2833_v20  ;;  %v2699_v50 = vpop.permute.xlu1 %2698  ;;  %v3481_v39 = vld [vmem:[%s6314_s4 + $0xe8] sm:$0xff] }
 0x31c   :  { %3024 = vst [vmem:[%s6314_s4 + $0x2d0] sm:$0xff] %v2896_v18  ;;  %3025 = vst.msk [vmem:[%s6314_s4 + $0x2d8] sm:$0xff] %vm467_vm0, %v2897_v41  ;;  %v2436_v23 = vpop.permute.xlu0 %2435  ;;  %v2826_v12 = vadd.f32 %v2699_v50, %v2538_v29  ;;  %v2827_v55 = vadd.f32 %v2699_v50, %v2539_v44  ;;  %v2890_v15 = vadd.f32 %v2699_v50, %v2602_v57  ;;  %v2332_v57 = vld [vmem:[%s6314_s4 + $0x330] sm:$0xff] }
 0x31d   :  { %v2891_v30 = vadd.f32 %v2699_v50, %v2603_v53  ;;  %v2548_v56 = vmul.f32 %v3474_v32, %v2436_v23  ;;  %v2549_v3 = vmul.f32 %v3475_v13, %v2436_v23  ;;  %v2612_v14 = vmul.f32 %v2436_v23, %v2324_v51  ;;  %v2333_v53 = vld [vmem:[%s6314_s4 + $0x338] sm:$0xff]  ;;  %v3482_v50 = vld [vmem:[%s6314_s4 + $0x130] sm:$0xff] }
 0x31e   :  { %2954 = vst [vmem:[%s6314_s4 + $0xa0] sm:$0xff] %v2826_v12  ;;  %2955 = vst.msk [vmem:[%s6314_s4 + $0xa8] sm:$0xff] %vm467_vm0, %v2827_v55  ;;  %v2613_v59 = vmul.f32 %v2436_v23, %v2325_v54  ;;  %v3483_v12 = vld [vmem:[%s6314_s4 + $0x138] sm:$0xff] }
 0x31f   :  { %3018 = vst [vmem:[%s6314_s4 + $0x2a0] sm:$0xff] %v2890_v15  ;;  %3019 = vst.msk [vmem:[%s6314_s4 + $0x2a8] sm:$0xff] %vm467_vm0, %v2891_v30  ;;  %v2421_v38 = vpop.permute.xlu1 %2420 }
 0x320   :  { %v2724_v58 = vpop.permute.xlu0 %2723  ;;  %v2542_v11 = vmul.f32 %v3476_v61, %v2421_v38  ;;  %v2543_v6 = vmul.f32 %v3477_v16, %v2421_v38  ;;  %v2606_v34 = vmul.f32 %v2421_v38, %v2318_v63  ;;  %v2607_v47 = vmul.f32 %v2421_v38, %v2319_v1  ;;  %v3484_v38 = vld [vmem:[%s6314_s4 + $0x100] sm:$0xff] }
 0x321   :  { %v2836_v52 = vadd.f32 %v2724_v58, %v2548_v56  ;;  %v2837_v60 = vadd.f32 %v2724_v58, %v2549_v3  ;;  %v2900_v62 = vadd.f32 %v2724_v58, %v2612_v14  ;;  %v2901_v17 = vadd.f32 %v2724_v58, %v2613_v59  ;;  %v2326_v14 = vld [vmem:[%s6314_s4 + $0x300] sm:$0xff]  ;;  %v2327_v59 = vld [vmem:[%s6314_s4 + $0x308] sm:$0xff] }
 0x323   :  { %2964 = vst [vmem:[%s6314_s4 + $0xf0] sm:$0xff] %v2836_v52  ;;  %2965 = vst.msk [vmem:[%s6314_s4 + $0xf8] sm:$0xff] %vm467_vm0, %v2837_v60  ;;  %v2709_v8 = vpop.permute.xlu1 %2708  ;;  %v3485_v52 = vld [vmem:[%s6314_s4 + $0x108] sm:$0xff] }
 0x324   :  { %3028 = vst [vmem:[%s6314_s4 + $0x2f0] sm:$0xff] %v2900_v62  ;;  %3029 = vst.msk [vmem:[%s6314_s4 + $0x2f8] sm:$0xff] %vm467_vm0, %v2901_v17  ;;  %v2446_v22 = vpop.permute.xlu0 %2445  ;;  %v2830_v19 = vadd.f32 %v2709_v8, %v2542_v11  ;;  %v2831_v31 = vadd.f32 %v2709_v8, %v2543_v6  ;;  %v2894_v42 = vadd.f32 %v2709_v8, %v2606_v34  ;;  %v2336_v34 = vld [vmem:[%s6314_s4 + $0x350] sm:$0xff] }
 0x325   :  { %v2895_v37 = vadd.f32 %v2709_v8, %v2607_v47  ;;  %v2552_v28 = vmul.f32 %v3478_v7, %v2446_v22  ;;  %v2553_v27 = vmul.f32 %v3479_v25, %v2446_v22  ;;  %v2616_v4 = vmul.f32 %v2446_v22, %v2328_v2  ;;  %v2337_v47 = vld [vmem:[%s6314_s4 + $0x358] sm:$0xff]  ;;  %v3486_v8 = vld [vmem:[%s6314_s4 + $0x150] sm:$0xff] }
 0x326   :  { %2958 = vst [vmem:[%s6314_s4 + $0xc0] sm:$0xff] %v2830_v19  ;;  %2959 = vst.msk [vmem:[%s6314_s4 + $0xc8] sm:$0xff] %vm467_vm0, %v2831_v31  ;;  %v2617_v21 = vmul.f32 %v2446_v22, %v2329_v24  ;;  %v3487_v19 = vld [vmem:[%s6314_s4 + $0x158] sm:$0xff] }
 0x327   :  { %3022 = vst [vmem:[%s6314_s4 + $0x2c0] sm:$0xff] %v2894_v42  ;;  %3023 = vst.msk [vmem:[%s6314_s4 + $0x2c8] sm:$0xff] %vm467_vm0, %v2895_v37  ;;  %v2431_v0 = vpop.permute.xlu1 %2430 }
 0x328   :  { %v2734_v9 = vpop.permute.xlu0 %2733  ;;  %v2546_v49 = vmul.f32 %v3480_v35, %v2431_v0  ;;  %v2547_v20 = vmul.f32 %v3481_v39, %v2431_v0  ;;  %v2610_v18 = vmul.f32 %v2431_v0, %v2322_v43  ;;  %v2611_v41 = vmul.f32 %v2431_v0, %v2323_v40  ;;  %v3488_v0 = vld [vmem:[%s6314_s4 + $0x120] sm:$0xff] }
 0x329   :  { %v2840_v33 = vadd.f32 %v2734_v9, %v2552_v28  ;;  %v2841_v5 = vadd.f32 %v2734_v9, %v2553_v27  ;;  %v2904_v36 = vadd.f32 %v2734_v9, %v2616_v4  ;;  %v2905_v26 = vadd.f32 %v2734_v9, %v2617_v21  ;;  %v2330_v4 = vld [vmem:[%s6314_s4 + $0x320] sm:$0xff]  ;;  %v2331_v21 = vld [vmem:[%s6314_s4 + $0x328] sm:$0xff] }
 0x32b   :  { %2968 = vst [vmem:[%s6314_s4 + $0x110] sm:$0xff] %v2840_v33  ;;  %2969 = vst.msk [vmem:[%s6314_s4 + $0x118] sm:$0xff] %vm467_vm0, %v2841_v5  ;;  %v2719_v45 = vpop.permute.xlu1 %2718  ;;  %v3489_v33 = vld [vmem:[%s6314_s4 + $0x128] sm:$0xff] }
 0x32c   :  { %3032 = vst [vmem:[%s6314_s4 + $0x310] sm:$0xff] %v2904_v36  ;;  %3033 = vst.msk [vmem:[%s6314_s4 + $0x318] sm:$0xff] %vm467_vm0, %v2905_v26  ;;  %v2456_v10 = vpop.permute.xlu0 %2455  ;;  %v2834_v46 = vadd.f32 %v2719_v45, %v2546_v49  ;;  %v2835_v29 = vadd.f32 %v2719_v45, %v2547_v20  ;;  %v2898_v48 = vadd.f32 %v2719_v45, %v2610_v18  ;;  %v2340_v18 = vld [vmem:[%s6314_s4 + $0x370] sm:$0xff] }
 0x32d   :  { %v2899_v44 = vadd.f32 %v2719_v45, %v2611_v41  ;;  %v2556_v23 = vmul.f32 %v3482_v50, %v2456_v10  ;;  %v2557_v55 = vmul.f32 %v3483_v12, %v2456_v10  ;;  %v2620_v15 = vmul.f32 %v2456_v10, %v2332_v57  ;;  %v2341_v41 = vld [vmem:[%s6314_s4 + $0x378] sm:$0xff]  ;;  %v3490_v45 = vld [vmem:[%s6314_s4 + $0x170] sm:$0xff] }
 0x32e   :  { %2962 = vst [vmem:[%s6314_s4 + $0xe0] sm:$0xff] %v2834_v46  ;;  %2963 = vst.msk [vmem:[%s6314_s4 + $0xe8] sm:$0xff] %vm467_vm0, %v2835_v29  ;;  %v2621_v30 = vmul.f32 %v2456_v10, %v2333_v53  ;;  %v3491_v46 = vld [vmem:[%s6314_s4 + $0x178] sm:$0xff] }
 0x32f   :  { %3026 = vst [vmem:[%s6314_s4 + $0x2e0] sm:$0xff] %v2898_v48  ;;  %3027 = vst.msk [vmem:[%s6314_s4 + $0x2e8] sm:$0xff] %vm467_vm0, %v2899_v44  ;;  %v2441_v51 = vpop.permute.xlu1 %2440 }
 0x330   :  { %v2744_v54 = vpop.permute.xlu0 %2743  ;;  %v2550_v58 = vmul.f32 %v3484_v38, %v2441_v51  ;;  %v2551_v60 = vmul.f32 %v3485_v52, %v2441_v51  ;;  %v2614_v62 = vmul.f32 %v2441_v51, %v2326_v14  ;;  %v2615_v17 = vmul.f32 %v2441_v51, %v2327_v59  ;;  %v3492_v51 = vld [vmem:[%s6314_s4 + $0x140] sm:$0xff] }
 0x331   :  { %v2844_v32 = vadd.f32 %v2744_v54, %v2556_v23  ;;  %v2845_v56 = vadd.f32 %v2744_v54, %v2557_v55  ;;  %v2908_v13 = vadd.f32 %v2744_v54, %v2620_v15  ;;  %v2909_v3 = vadd.f32 %v2744_v54, %v2621_v30  ;;  %v2334_v15 = vld [vmem:[%s6314_s4 + $0x340] sm:$0xff]  ;;  %v2335_v30 = vld [vmem:[%s6314_s4 + $0x348] sm:$0xff] }
 0x333   :  { %2972 = vst [vmem:[%s6314_s4 + $0x130] sm:$0xff] %v2844_v32  ;;  %2973 = vst.msk [vmem:[%s6314_s4 + $0x138] sm:$0xff] %vm467_vm0, %v2845_v56  ;;  %v2729_v63 = vpop.permute.xlu1 %2728  ;;  %v3493_v32 = vld [vmem:[%s6314_s4 + $0x148] sm:$0xff] }
 0x334   :  { %3036 = vst [vmem:[%s6314_s4 + $0x330] sm:$0xff] %v2908_v13  ;;  %3037 = vst.msk [vmem:[%s6314_s4 + $0x338] sm:$0xff] %vm467_vm0, %v2909_v3  ;;  %v2466_v1 = vpop.permute.xlu0 %2465  ;;  %v2838_v61 = vadd.f32 %v2729_v63, %v2550_v58  ;;  %v2839_v11 = vadd.f32 %v2729_v63, %v2551_v60  ;;  %v2902_v16 = vadd.f32 %v2729_v63, %v2614_v62  ;;  %v2344_v62 = vld [vmem:[%s6314_s4 + $0x390] sm:$0xff] }
 0x335   :  { %v2903_v6 = vadd.f32 %v2729_v63, %v2615_v17  ;;  %v2560_v22 = vmul.f32 %v3486_v8, %v2466_v1  ;;  %v2561_v31 = vmul.f32 %v3487_v19, %v2466_v1  ;;  %v2624_v42 = vmul.f32 %v2466_v1, %v2336_v34  ;;  %v2345_v17 = vld [vmem:[%s6314_s4 + $0x398] sm:$0xff]  ;;  %v3494_v63 = vld [vmem:[%s6314_s4 + $0x190] sm:$0xff] }
 0x336   :  { %2966 = vst [vmem:[%s6314_s4 + $0x100] sm:$0xff] %v2838_v61  ;;  %2967 = vst.msk [vmem:[%s6314_s4 + $0x108] sm:$0xff] %vm467_vm0, %v2839_v11  ;;  %v2625_v37 = vmul.f32 %v2466_v1, %v2337_v47  ;;  %v3495_v61 = vld [vmem:[%s6314_s4 + $0x198] sm:$0xff] }
 0x337   :  { %3030 = vst [vmem:[%s6314_s4 + $0x300] sm:$0xff] %v2902_v16  ;;  %3031 = vst.msk [vmem:[%s6314_s4 + $0x308] sm:$0xff] %vm467_vm0, %v2903_v6  ;;  %v2451_v2 = vpop.permute.xlu1 %2450 }
 0x338   :  { %v2754_v24 = vpop.permute.xlu0 %2753  ;;  %v2554_v9 = vmul.f32 %v3488_v0, %v2451_v2  ;;  %v2555_v5 = vmul.f32 %v3489_v33, %v2451_v2  ;;  %v2618_v36 = vmul.f32 %v2451_v2, %v2330_v4  ;;  %v2619_v26 = vmul.f32 %v2451_v2, %v2331_v21  ;;  %v3496_v2 = vld [vmem:[%s6314_s4 + $0x160] sm:$0xff] }
 0x339   :  { %v2848_v7 = vadd.f32 %v2754_v24, %v2560_v22  ;;  %v2849_v28 = vadd.f32 %v2754_v24, %v2561_v31  ;;  %v2912_v25 = vadd.f32 %v2754_v24, %v2624_v42  ;;  %v2913_v27 = vadd.f32 %v2754_v24, %v2625_v37  ;;  %v2338_v42 = vld [vmem:[%s6314_s4 + $0x360] sm:$0xff]  ;;  %v2339_v37 = vld [vmem:[%s6314_s4 + $0x368] sm:$0xff] }
 0x33b   :  { %2976 = vst [vmem:[%s6314_s4 + $0x150] sm:$0xff] %v2848_v7  ;;  %2977 = vst.msk [vmem:[%s6314_s4 + $0x158] sm:$0xff] %vm467_vm0, %v2849_v28  ;;  %v2739_v43 = vpop.permute.xlu1 %2738  ;;  %v3497_v7 = vld [vmem:[%s6314_s4 + $0x168] sm:$0xff] }
 0x33c   :  { %3040 = vst [vmem:[%s6314_s4 + $0x350] sm:$0xff] %v2912_v25  ;;  %3041 = vst.msk [vmem:[%s6314_s4 + $0x358] sm:$0xff] %vm467_vm0, %v2913_v27  ;;  %v2476_v40 = vpop.permute.xlu0 %2475  ;;  %v2842_v35 = vadd.f32 %v2739_v43, %v2554_v9  ;;  %v2843_v49 = vadd.f32 %v2739_v43, %v2555_v5  ;;  %v2906_v39 = vadd.f32 %v2739_v43, %v2618_v36  ;;  %v2348_v36 = vld [vmem:[%s6314_s4 + $0x3b0] sm:$0xff] }
 0x33d   :  { %v2907_v20 = vadd.f32 %v2739_v43, %v2619_v26  ;;  %v2564_v10 = vmul.f32 %v3490_v45, %v2476_v40  ;;  %v2565_v29 = vmul.f32 %v3491_v46, %v2476_v40  ;;  %v2628_v48 = vmul.f32 %v2476_v40, %v2340_v18  ;;  %v2349_v26 = vld [vmem:[%s6314_s4 + $0x3b8] sm:$0xff]  ;;  %v3498_v43 = vld [vmem:[%s6314_s4 + $0x1b0] sm:$0xff] }
 0x33e   :  { %2970 = vst [vmem:[%s6314_s4 + $0x120] sm:$0xff] %v2842_v35  ;;  %2971 = vst.msk [vmem:[%s6314_s4 + $0x128] sm:$0xff] %vm467_vm0, %v2843_v49  ;;  %v2629_v44 = vmul.f32 %v2476_v40, %v2341_v41  ;;  %v3499_v35 = vld [vmem:[%s6314_s4 + $0x1b8] sm:$0xff] }
 0x33f   :  { %3034 = vst [vmem:[%s6314_s4 + $0x320] sm:$0xff] %v2906_v39  ;;  %3035 = vst.msk [vmem:[%s6314_s4 + $0x328] sm:$0xff] %vm467_vm0, %v2907_v20  ;;  %v2461_v57 = vpop.permute.xlu1 %2460 }
 0x340   :  { %v2764_v53 = vpop.permute.xlu0 %2763  ;;  %v2558_v54 = vmul.f32 %v3492_v51, %v2461_v57  ;;  %v2559_v56 = vmul.f32 %v3493_v32, %v2461_v57  ;;  %v2622_v13 = vmul.f32 %v2461_v57, %v2334_v15  ;;  %v2623_v3 = vmul.f32 %v2461_v57, %v2335_v30  ;;  %v3500_v57 = vld [vmem:[%s6314_s4 + $0x180] sm:$0xff] }
 0x341   :  { %v2852_v50 = vadd.f32 %v2764_v53, %v2564_v10  ;;  %v2853_v23 = vadd.f32 %v2764_v53, %v2565_v29  ;;  %v2916_v12 = vadd.f32 %v2764_v53, %v2628_v48  ;;  %v2917_v55 = vadd.f32 %v2764_v53, %v2629_v44  ;;  %v2342_v48 = vld [vmem:[%s6314_s4 + $0x380] sm:$0xff]  ;;  %v2343_v44 = vld [vmem:[%s6314_s4 + $0x388] sm:$0xff] }
 0x343   :  { %2980 = vst [vmem:[%s6314_s4 + $0x170] sm:$0xff] %v2852_v50  ;;  %2981 = vst.msk [vmem:[%s6314_s4 + $0x178] sm:$0xff] %vm467_vm0, %v2853_v23  ;;  %v2749_v14 = vpop.permute.xlu1 %2748  ;;  %v3501_v50 = vld [vmem:[%s6314_s4 + $0x188] sm:$0xff] }
 0x344   :  { %3044 = vst [vmem:[%s6314_s4 + $0x370] sm:$0xff] %v2916_v12  ;;  %3045 = vst.msk [vmem:[%s6314_s4 + $0x378] sm:$0xff] %vm467_vm0, %v2917_v55  ;;  %v2486_v59 = vpop.permute.xlu0 %2485  ;;  %v2846_v38 = vadd.f32 %v2749_v14, %v2558_v54  ;;  %v2847_v58 = vadd.f32 %v2749_v14, %v2559_v56  ;;  %v2910_v52 = vadd.f32 %v2749_v14, %v2622_v13  ;;  %v2352_v13 = vld [vmem:[%s6314_s4 + $0x3d0] sm:$0xff] }
 0x345   :  { %v2911_v60 = vadd.f32 %v2749_v14, %v2623_v3  ;;  %v2568_v1 = vmul.f32 %v3494_v63, %v2486_v59  ;;  %v2569_v11 = vmul.f32 %v3495_v61, %v2486_v59  ;;  %v2632_v16 = vmul.f32 %v2486_v59, %v2344_v62  ;;  %v2353_v3 = vld [vmem:[%s6314_s4 + $0x3d8] sm:$0xff]  ;;  %v3502_v14 = vld [vmem:[%s6314_s4 + $0x1d0] sm:$0xff] }
 0x346   :  { %2974 = vst [vmem:[%s6314_s4 + $0x140] sm:$0xff] %v2846_v38  ;;  %2975 = vst.msk [vmem:[%s6314_s4 + $0x148] sm:$0xff] %vm467_vm0, %v2847_v58  ;;  %v2633_v6 = vmul.f32 %v2486_v59, %v2345_v17  ;;  %v3503_v38 = vld [vmem:[%s6314_s4 + $0x1d8] sm:$0xff] }
 0x347   :  { %3038 = vst [vmem:[%s6314_s4 + $0x340] sm:$0xff] %v2910_v52  ;;  %3039 = vst.msk [vmem:[%s6314_s4 + $0x348] sm:$0xff] %vm467_vm0, %v2911_v60  ;;  %v2471_v34 = vpop.permute.xlu1 %2470 }
 0x348   :  { %v2774_v47 = vpop.permute.xlu0 %2773  ;;  %v2562_v24 = vmul.f32 %v3496_v2, %v2471_v34  ;;  %v2563_v28 = vmul.f32 %v3497_v7, %v2471_v34  ;;  %v2626_v25 = vmul.f32 %v2471_v34, %v2338_v42  ;;  %v2627_v27 = vmul.f32 %v2471_v34, %v2339_v37  ;;  %v3504_v34 = vld [vmem:[%s6314_s4 + $0x1a0] sm:$0xff] }
 0x349   :  { %v2856_v8 = vadd.f32 %v2774_v47, %v2568_v1  ;;  %v2857_v22 = vadd.f32 %v2774_v47, %v2569_v11  ;;  %v2920_v19 = vadd.f32 %v2774_v47, %v2632_v16  ;;  %v2921_v31 = vadd.f32 %v2774_v47, %v2633_v6  ;;  %v2346_v16 = vld [vmem:[%s6314_s4 + $0x3a0] sm:$0xff]  ;;  %v2347_v6 = vld [vmem:[%s6314_s4 + $0x3a8] sm:$0xff] }
 0x34b   :  { %2984 = vst [vmem:[%s6314_s4 + $0x190] sm:$0xff] %v2856_v8  ;;  %2985 = vst.msk [vmem:[%s6314_s4 + $0x198] sm:$0xff] %vm467_vm0, %v2857_v22  ;;  %v2759_v4 = vpop.permute.xlu1 %2758  ;;  %v3505_v8 = vld [vmem:[%s6314_s4 + $0x1a8] sm:$0xff] }
 0x34c   :  { %3048 = vst [vmem:[%s6314_s4 + $0x390] sm:$0xff] %v2920_v19  ;;  %3049 = vst.msk [vmem:[%s6314_s4 + $0x398] sm:$0xff] %vm467_vm0, %v2921_v31  ;;  %v2496_v21 = vpop.permute.xlu0 %2495  ;;  %v2850_v0 = vadd.f32 %v2759_v4, %v2562_v24  ;;  %v2851_v9 = vadd.f32 %v2759_v4, %v2563_v28  ;;  %v2914_v33 = vadd.f32 %v2759_v4, %v2626_v25  ;;  %v2356_v25 = vld [vmem:[%s6314_s4 + $0x3f0] sm:$0xff] }
 0x34d   :  { %v2915_v5 = vadd.f32 %v2759_v4, %v2627_v27  ;;  %v2572_v40 = vmul.f32 %v3498_v43, %v2496_v21  ;;  %v2573_v49 = vmul.f32 %v3499_v35, %v2496_v21  ;;  %v2636_v39 = vmul.f32 %v2496_v21, %v2348_v36  ;;  %v2357_v27 = vld [vmem:[%s6314_s4 + $0x3f8] sm:$0xff]  ;;  %v3506_v4 = vld [vmem:[%s6314_s4 + $0x1f0] sm:$0xff] }
 0x34e   :  { %2978 = vst [vmem:[%s6314_s4 + $0x160] sm:$0xff] %v2850_v0  ;;  %2979 = vst.msk [vmem:[%s6314_s4 + $0x168] sm:$0xff] %vm467_vm0, %v2851_v9  ;;  %v2637_v20 = vmul.f32 %v2496_v21, %v2349_v26  ;;  %v3507_v0 = vld [vmem:[%s6314_s4 + $0x1f8] sm:$0xff] }
 0x34f   :  { %3042 = vst [vmem:[%s6314_s4 + $0x360] sm:$0xff] %v2914_v33  ;;  %3043 = vst.msk [vmem:[%s6314_s4 + $0x368] sm:$0xff] %vm467_vm0, %v2915_v5  ;;  %v2481_v18 = vpop.permute.xlu1 %2480 }
 0x350   :  { %v2784_v41 = vpop.permute.xlu0 %2783  ;;  %v2566_v53 = vmul.f32 %v3500_v57, %v2481_v18  ;;  %v2567_v23 = vmul.f32 %v3501_v50, %v2481_v18  ;;  %v2630_v12 = vmul.f32 %v2481_v18, %v2342_v48  ;;  %v2631_v55 = vmul.f32 %v2481_v18, %v2343_v44  ;;  %v3508_v18 = vld [vmem:[%s6314_s4 + $0x1c0] sm:$0xff] }
 0x351   :  { %v2860_v45 = vadd.f32 %v2784_v41, %v2572_v40  ;;  %v2861_v10 = vadd.f32 %v2784_v41, %v2573_v49  ;;  %v2924_v46 = vadd.f32 %v2784_v41, %v2636_v39  ;;  %v2925_v29 = vadd.f32 %v2784_v41, %v2637_v20  ;;  %v2350_v39 = vld [vmem:[%s6314_s4 + $0x3c0] sm:$0xff]  ;;  %v2351_v20 = vld [vmem:[%s6314_s4 + $0x3c8] sm:$0xff] }
 0x353   :  { %2988 = vst [vmem:[%s6314_s4 + $0x1b0] sm:$0xff] %v2860_v45  ;;  %2989 = vst.msk [vmem:[%s6314_s4 + $0x1b8] sm:$0xff] %vm467_vm0, %v2861_v10  ;;  %v2769_v15 = vpop.permute.xlu1 %2768  ;;  %v3509_v45 = vld [vmem:[%s6314_s4 + $0x1c8] sm:$0xff] }
 0x354   :  { %3052 = vst [vmem:[%s6314_s4 + $0x3b0] sm:$0xff] %v2924_v46  ;;  %3053 = vst.msk [vmem:[%s6314_s4 + $0x3b8] sm:$0xff] %vm467_vm0, %v2925_v29  ;;  %v2506_v30 = vpop.permute.xlu0 %2505  ;;  %v2854_v51 = vadd.f32 %v2769_v15, %v2566_v53  ;;  %v2855_v54 = vadd.f32 %v2769_v15, %v2567_v23  ;;  %v2918_v32 = vadd.f32 %v2769_v15, %v2630_v12  ;;  %v2354_v12 = vld [vmem:[%s6314_s4 + $0x3e0] sm:$0xff] }
 0x355   :  { %v2919_v56 = vadd.f32 %v2769_v15, %v2631_v55  ;;  %v2576_v59 = vmul.f32 %v3502_v14, %v2506_v30  ;;  %v2577_v58 = vmul.f32 %v3503_v38, %v2506_v30  ;;  %v2640_v52 = vmul.f32 %v2506_v30, %v2352_v13  ;;  %v2355_v55 = vld [vmem:[%s6314_s4 + $0x3e8] sm:$0xff]  ;;  %v3510_v15 = vld [vmem:[%s6314_s4 + $0x1e0] sm:$0xff] }
 0x356   :  { %2982 = vst [vmem:[%s6314_s4 + $0x180] sm:$0xff] %v2854_v51  ;;  %2983 = vst.msk [vmem:[%s6314_s4 + $0x188] sm:$0xff] %vm467_vm0, %v2855_v54  ;;  %v2641_v60 = vmul.f32 %v2506_v30, %v2353_v3  ;;  %v3511_v51 = vld [vmem:[%s6314_s4 + $0x1e8] sm:$0xff] }
 0x357   :  { %3046 = vst [vmem:[%s6314_s4 + $0x380] sm:$0xff] %v2918_v32  ;;  %3047 = vst.msk [vmem:[%s6314_s4 + $0x388] sm:$0xff] %vm467_vm0, %v2919_v56  ;;  %v2491_v62 = vpop.permute.xlu1 %2490 }
 0x358   :  { %v2794_v17 = vpop.permute.xlu0 %2793  ;;  %v2570_v47 = vmul.f32 %v3504_v34, %v2491_v62  ;;  %v2571_v22 = vmul.f32 %v3505_v8, %v2491_v62  ;;  %v2634_v19 = vmul.f32 %v2491_v62, %v2346_v16  ;;  %v2635_v31 = vmul.f32 %v2491_v62, %v2347_v6 }
 0x359   :  { %v2864_v63 = vadd.f32 %v2794_v17, %v2576_v59  ;;  %v2865_v1 = vadd.f32 %v2794_v17, %v2577_v58  ;;  %v2928_v61 = vadd.f32 %v2794_v17, %v2640_v52  ;;  %v2929_v11 = vadd.f32 %v2794_v17, %v2641_v60 }
 0x35b   :  { %2992 = vst [vmem:[%s6314_s4 + $0x1d0] sm:$0xff] %v2864_v63  ;;  %2993 = vst.msk [vmem:[%s6314_s4 + $0x1d8] sm:$0xff] %vm467_vm0, %v2865_v1  ;;  %v2779_v42 = vpop.permute.xlu1 %2778 }
 0x35c   :  { %3056 = vst [vmem:[%s6314_s4 + $0x3d0] sm:$0xff] %v2928_v61  ;;  %3057 = vst.msk [vmem:[%s6314_s4 + $0x3d8] sm:$0xff] %vm467_vm0, %v2929_v11  ;;  %v2516_v37 = vpop.permute.xlu0 %2515  ;;  %v2858_v2 = vadd.f32 %v2779_v42, %v2570_v47  ;;  %v2859_v24 = vadd.f32 %v2779_v42, %v2571_v22  ;;  %v2922_v7 = vadd.f32 %v2779_v42, %v2634_v19 }
 0x35d   :  { %v2923_v28 = vadd.f32 %v2779_v42, %v2635_v31  ;;  %v2580_v21 = vmul.f32 %v3506_v4, %v2516_v37  ;;  %v2581_v9 = vmul.f32 %v3507_v0, %v2516_v37  ;;  %v2644_v33 = vmul.f32 %v2516_v37, %v2356_v25 }
 0x35e   :  { %2986 = vst [vmem:[%s6314_s4 + $0x1a0] sm:$0xff] %v2858_v2  ;;  %2987 = vst.msk [vmem:[%s6314_s4 + $0x1a8] sm:$0xff] %vm467_vm0, %v2859_v24  ;;  %v2645_v5 = vmul.f32 %v2516_v37, %v2357_v27 }
 0x35f   :  { %3050 = vst [vmem:[%s6314_s4 + $0x3a0] sm:$0xff] %v2922_v7  ;;  %3051 = vst.msk [vmem:[%s6314_s4 + $0x3a8] sm:$0xff] %vm467_vm0, %v2923_v28  ;;  %v2501_v36 = vpop.permute.xlu1 %2500 }
 0x360   :  { %v2804_v26 = vpop.permute.xlu0 %2803  ;;  %v2574_v41 = vmul.f32 %v3508_v18, %v2501_v36  ;;  %v2575_v10 = vmul.f32 %v3509_v45, %v2501_v36  ;;  %v2638_v46 = vmul.f32 %v2501_v36, %v2350_v39  ;;  %v2639_v29 = vmul.f32 %v2501_v36, %v2351_v20 }
 0x361   :  { %v2868_v43 = vadd.f32 %v2804_v26, %v2580_v21  ;;  %v2869_v40 = vadd.f32 %v2804_v26, %v2581_v9  ;;  %v2932_v35 = vadd.f32 %v2804_v26, %v2644_v33  ;;  %v2933_v49 = vadd.f32 %v2804_v26, %v2645_v5 }
 0x363   :  { %2996 = vst [vmem:[%s6314_s4 + $0x1f0] sm:$0xff] %v2868_v43  ;;  %2997 = vst.msk [vmem:[%s6314_s4 + $0x1f8] sm:$0xff] %vm467_vm0, %v2869_v40  ;;  %v2789_v48 = vpop.permute.xlu1 %2788 }
 0x364   :  { %3060 = vst [vmem:[%s6314_s4 + $0x3f0] sm:$0xff] %v2932_v35  ;;  %3061 = vst.msk [vmem:[%s6314_s4 + $0x3f8] sm:$0xff] %vm467_vm0, %v2933_v49  ;;  %v2862_v44 = vadd.f32 %v2789_v48, %v2574_v41  ;;  %v2863_v57 = vadd.f32 %v2789_v48, %v2575_v10  ;;  %v2926_v53 = vadd.f32 %v2789_v48, %v2638_v46 }
 0x365   :  { %v2927_v50 = vadd.f32 %v2789_v48, %v2639_v29 }
 0x366   :  { %2990 = vst [vmem:[%s6314_s4 + $0x1c0] sm:$0xff] %v2862_v44  ;;  %2991 = vst.msk [vmem:[%s6314_s4 + $0x1c8] sm:$0xff] %vm467_vm0, %v2863_v57 }
 0x367   :  { %3054 = vst [vmem:[%s6314_s4 + $0x3c0] sm:$0xff] %v2926_v53  ;;  %3055 = vst.msk [vmem:[%s6314_s4 + $0x3c8] sm:$0xff] %vm467_vm0, %v2927_v50  ;;  %v2511_v23 = vpop.permute.xlu1 %2510 }
 0x368   :  { %v2578_v30 = vmul.f32 %v3510_v15, %v2511_v23  ;;  %v2579_v54 = vmul.f32 %v3511_v51, %v2511_v23  ;;  %v2642_v32 = vmul.f32 %v2511_v23, %v2354_v12  ;;  %v2643_v56 = vmul.f32 %v2511_v23, %v2355_v55 }
 0x36b   :  { %v2799_v13 = vpop.permute.xlu1 %2798 }
 0x36c   :  { %v2866_v3 = vadd.f32 %v2799_v13, %v2578_v30  ;;  %v2867_v14 = vadd.f32 %v2799_v13, %v2579_v54  ;;  %v2930_v59 = vadd.f32 %v2799_v13, %v2642_v32  ;;  %v2931_v38 = vadd.f32 %v2799_v13, %v2643_v56 }
 0x36e   :  { %2994 = vst [vmem:[%s6314_s4 + $0x1e0] sm:$0xff] %v2866_v3  ;;  %2995 = vst.msk [vmem:[%s6314_s4 + $0x1e8] sm:$0xff] %vm467_vm0, %v2867_v14 }
 0x36f   :  { %3058 = vst [vmem:[%s6314_s4 + $0x3e0] sm:$0xff] %v2930_v59  ;;  %3059 = vst.msk [vmem:[%s6314_s4 + $0x3e8] sm:$0xff] %vm467_vm0, %v2931_v38 }

</bundles_post_ra>
